<compile_context>
chip_gen: v6e
topology: v6e:2x2x1
jax: 0.10.0
libtpu: 0.0.40
codegen_flags: <defaults>
</compile_context>

<pallas_src>
import functools

import jax
import jax.numpy as jnp
from jax.experimental import pallas as pl
from jax.experimental.pallas import tpu as pltpu


def _round_up(x: int, m: int) -> int:
    return (x + m - 1) // m * m


def _pick_tile_m(Mp: int, halo: int, Cp: int) -> int:
    """Lane-tile size (multiple of 128) derived from a conservative VMEM budget."""
    # Rough live-VMEM bytes per tile_m column:
    #   x window (bf16) + acc1/h (f32) + acc2 (f32) + concat staging (bf16, ~2 live)
    #   + double-buffered f32 output block.
    per_col = (Cp + 1) * 2 + 2 * Cp * 4 + Cp * 4 + 2 * 3 * Cp * 2 + 2 * Cp * 4
    budget = 28 << 20                       # fits v5e/v6e/v7x scoped VMEM comfortably
    cap = max(256, (budget // per_col) // 128 * 128)
    # Aim for >= 2 tiles (pipelined writeback / megacore), but keep the conv1 halo
    # recompute from dominating when VMEM allows a bigger tile.
    tile_m = min(cap, _round_up(max(pl.cdiv(Mp, 2), 128), 128))
    tile_m = max(tile_m, min(cap, _round_up(4 * halo, 128)))
    return max(tile_m, 128)


# ---------------- fused Pallas kernel (whole VoxRex block) ----------------

def _voxrex_kernel(x_hbm, w1_ref, w2_ref, o_ref, xbuf, sem, *,
                   group_deltas, halo, tile_m, cp):
    """One output tile of relu(conv2(relu(conv1(x)))) + x in (Cp, M_flat) layout.

    x_hbm  : (Cp+1, Mext) bf16 in HBM; rows [0:Cp] = channels, row Cp = interior mask
    w1_ref : (9, Cp, 3*Cp) bf16 conv1 weights, g = kd*3+kh, last axis = kw-major C_in
    w2_ref : (9, Cp, 3*Cp) bf16 conv2 weights
    o_ref  : (Cp, tile_m)  f32 output tile (padded-frame flat coordinates)
    xbuf   : (Cp+1, tile_m + 4*halo) bf16 VMEM scratch for this tile's haloed window
    """
    j = pl.program_id(0)
    base = pl.multiple_of(j * tile_m, 128)          # lane-aligned window start
    win = tile_m + 4 * halo                          # x window incl. both halos
    w_h = tile_m + 2 * halo                          # conv1 output window

    # Manual DMA of just this tile's haloed window (activations + mask row).
    copy = pltpu.make_async_copy(x_hbm.at[:, pl.ds(base, win)], xbuf, sem)
    copy.start()
    copy.wait()
    # TODO(synk): double-buffer this DMA across grid steps to overlap with compute.

    mask = xbuf[cp:cp + 1, halo:halo + w_h]          # 1.0 at valid interior positions

    # ---- conv1 + ReLU over the haloed window (h never touches HBM) ----
    acc1 = jnp.zeros((cp, w_h), jnp.float32)
    for g, dg in enumerate(group_deltas):
        s = halo + dg
        opnd = jnp.concatenate(
            [xbuf[0:cp, s - 1:s - 1 + w_h],          # kw = 0  (shift -1)
             xbuf[0:cp, s:s + w_h],                   # kw = 1  (shift  0)
             xbuf[0:cp, s + 1:s + 1 + w_h]],          # kw = 2  (shift +1)
            axis=0)                                   # (3*Cp, w_h) bf16
        acc1 = acc1 + jnp.dot(w1_ref[g], opnd, preferred_element_type=jnp.float32)
    # Zero spatial-padding / halo columns so conv2 sees true zero-padded conv1 output.
    h = (jnp.maximum(acc1, 0.0) * mask).astype(jnp.bfloat16)

    # ---- conv2 + ReLU + residual over the output tile ----
    acc2 = jnp.zeros((cp, tile_m), jnp.float32)
    for g, dg in enumerate(group_deltas):
        s = halo + dg
        opnd = jnp.concatenate(
            [h[:, s - 1:s - 1 + tile_m],
             h[:, s:s + tile_m],
             h[:, s + 1:s + 1 + tile_m]],
            axis=0)                                   # (3*Cp, tile_m) bf16
        acc2 = acc2 + jnp.dot(w2_ref[g], opnd, preferred_element_type=jnp.float32)

    res = xbuf[0:cp, 2 * halo:2 * halo + tile_m].astype(jnp.float32)
    o_ref[...] = (jnp.maximum(acc2, 0.0) + res).astype(o_ref.dtype)


# ---------------- wrapper: one transpose in, one transpose out ----------------

def voxrex_forward(x, w1, w2):
    """VoxRex.forward: relu(conv2(relu(conv1(x)))) + x, NCDHW in/out, no bias."""
    N, C, D, H, W = x.shape
    Dp, Hp, Wp = D + 2, H + 2, W + 2
    Mp = N * Dp * Hp * Wp                              # padded-frame flat length
    Cp = max(16, _round_up(C, 16))                     # bf16 sublane-tile channel pad
    halo = _round_up(Hp * Wp + Wp + 1, 128)            # >= max |tap shift| + 1

    tile_m = _pick_tile_m(Mp, halo, Cp)
    num_tiles = pl.cdiv(Mp, tile_m)
    Mp_pad = num_tiles * tile_m
    Mext = Mp_pad + 4 * halo

    # Flat-coordinate shift for each (kd, kh) group; the kw +/-1 shifts are applied
    # in-kernel by the 3-slice stacking.
    group_deltas = tuple((kd - 1) * Hp * Wp + (kh - 1) * Wp
                         for kd in range(3) for kh in range(3))

    # Channel-major, spatially padded, flattened activations (bf16) with a zero halo,
    # plus one extra row holding the interior (valid-output) mask.
    xp = jnp.pad(x, ((0, 0), (0, 0), (1, 1), (1, 1), (1, 1)))
    x_cm = jnp.transpose(xp, (1, 0, 2, 3, 4)).reshape(C, Mp)
    x_cm = jnp.pad(x_cm, ((0, Cp - C), (0, 0)))
    interior = jnp.pad(jnp.ones((N, D, H, W), x.dtype),
                       ((0, 0), (1, 1), (1, 1), (1, 1))).reshape(1, Mp)
    x_full = jnp.concatenate([x_cm, interior], axis=0)                 # (Cp+1, Mp)
    x_full = jnp.pad(x_full, ((0, 0), (2 * halo, Mext - 2 * halo - Mp)))
    x_full = x_full.astype(jnp.bfloat16)

    # Weights: (C_out, C_in, kd, kh, kw) -> (kd*3+kh, C_out, kw-major C_in), bf16.
    def _stack_w(w):
        wp = jnp.pad(w, ((0, Cp - C), (0, Cp - C), (0, 0), (0, 0), (0, 0)))
        wp = jnp.transpose(wp, (2, 3, 0, 4, 1)).reshape(9, Cp, 3 * Cp)
        return wp.astype(jnp.bfloat16)

    w1_s, w2_s = _stack_w(w1), _stack_w(w2)

    kernel = functools.partial(_voxrex_kernel, group_deltas=group_deltas,
                               halo=halo, tile_m=tile_m, cp=Cp)

    # Explicit scoped-VMEM limit with headroom (defaults are 16/32 MiB).
    per_col = (Cp + 1) * 2 + 2 * Cp * 4 + Cp * 4 + 2 * 3 * Cp * 2 + 2 * Cp * 4
    est = (per_col * tile_m
           + 4 * halo * ((Cp + 1) * 2 + 2 * Cp * 4 + 2 * 3 * Cp * 2)
           + 4 * 9 * Cp * 3 * Cp * 2)
    vmem_limit = int(min(56 << 20, max(16 << 20, 2 * est)))

    out = pl.pallas_call(
        kernel,
        out_shape=jax.ShapeDtypeStruct((Cp, Mp_pad), jnp.float32),
        grid=(num_tiles,),
        in_specs=[
            pl.BlockSpec(memory_space=pl.ANY),                      # activations in HBM
            pl.BlockSpec((9, Cp, 3 * Cp), lambda j: (0, 0, 0)),     # conv1 weights
            pl.BlockSpec((9, Cp, 3 * Cp), lambda j: (0, 0, 0)),     # conv2 weights
        ],
        out_specs=pl.BlockSpec((Cp, tile_m), lambda j: (0, j)),
        scratch_shapes=[
            pltpu.VMEM((Cp + 1, tile_m + 4 * halo), jnp.bfloat16),  # haloed window
            pltpu.SemaphoreType.DMA,
        ],
        compiler_params=pltpu.CompilerParams(
            dimension_semantics=("parallel",),
            vmem_limit_bytes=vmem_limit),
    )(x_full, w1_s, w2_s)

    # (Cp, Mp_pad) -> drop channel/lane padding -> un-flatten -> drop spatial padding.
    out = out[:C, :Mp].reshape(C, N, Dp, Hp, Wp)[:, :, 1:D + 1, 1:H + 1, 1:W + 1]
    return jnp.transpose(out, (1, 0, 2, 3, 4))


# ---------------- pure-JAX reference for validation ----------------

def voxrex_reference(x, w1, w2):
    dn = jax.lax.conv_dimension_numbers(x.shape, w1.shape, ('NCDHW', 'OIDHW', 'NCDHW'))

    def conv(a, w):
        return jax.lax.conv_general_dilated(
            a, w, window_strides=(1, 1, 1), padding=[(1, 1)] * 3,
            dimension_numbers=dn, precision=jax.lax.Precision.HIGHEST)

    h = jax.nn.relu(conv(x, w1))
    return jax.nn.relu(conv(h, w2)) + x


if __name__ == "__main__":
    key = jax.random.PRNGKey(0)
    kx, k1, k2 = jax.random.split(key, 3)

    N, C, D, H, W = 2, 8, 8, 8, 8
    x = jax.random.normal(kx, (N, C, D, H, W), dtype=jnp.float32)

    # Deterministic synthetic Conv3d weights: (out_ch, in_ch, 3, 3, 3), no bias.
    fan_in = C * 3 * 3 * 3
    w1 = jax.random.normal(k1, (C, C, 3, 3, 3), dtype=jnp.float32) / jnp.sqrt(fan_in)
    w2 = jax.random.normal(k2, (C, C, 3, 3, 3), dtype=jnp.float32) / jnp.sqrt(fan_in)

    out = jax.jit(voxrex_forward)(x, w1, w2)
    out = jax.block_until_ready(out)

    ref = voxrex_reference(x, w1, w2)
    assert out.shape == ref.shape == (N, C, D, H, W)
    # bf16 MXU operands with f32 accumulation -> loosened absolute tolerance.
    max_err = float(jnp.max(jnp.abs(out - ref)))
    assert max_err < 5e-2, f"max abs err {max_err}"

    print("KERNEL_OK")
</pallas_src>

<mosaic_0001>
module attributes {stable_mosaic.version = 11 : i64} {
  func.func @_voxrex_kernel(%arg0: i32, %arg1: memref<17x2560xbf16, #tpu.memory_space<any>>, %arg2: memref<9x16x48xbf16, #tpu.memory_space<vmem>>, %arg3: memref<9x16x48xbf16, #tpu.memory_space<vmem>>, %arg4: memref<16x1024xf32, #tpu.memory_space<vmem>>, %arg5: memref<17x1536xbf16, #tpu.memory_space<vmem>>, %arg6: memref<!tpu.dma_semaphore, #tpu.memory_space<semaphore_mem>>) attributes {dimension_semantics = [#tpu.dimension_semantics<parallel>], iteration_bounds = array<i64: 2>, scalar_prefetch = 0 : i64, scratch_operands = 2 : i64, tpu.core_type = #tpu.core_type<tc>, window_params = [{}, {pipeline_mode = #tpu.pipeline_mode<synchronous>, transform_indices = @transform_1, window_bounds = array<i64: 9, 16, 48>}, {pipeline_mode = #tpu.pipeline_mode<synchronous>, transform_indices = @transform_2, window_bounds = array<i64: 9, 16, 48>}, {transform_indices = @transform_3, window_bounds = array<i64: 16, 1024>}]} {
    %c1024_i32 = arith.constant 1024 : i32
    %0 = arith.muli %arg0, %c1024_i32 : i32
    %1 = tpu.assume_multiple %0, 128 : i32
    %c0_i32 = arith.constant 0 : i32
    %2 = tpu.memref_slice %arg1[%c0_i32, %1] : memref<17x2560xbf16, #tpu.memory_space<any>> -> memref<17x1536xbf16, #tpu.memory_space<any>>
    tpu.enqueue_dma source(%2 : memref<17x1536xbf16, #tpu.memory_space<any>>) target(%arg5 : memref<17x1536xbf16, #tpu.memory_space<vmem>>) target_semaphore(%arg6 : memref<!tpu.dma_semaphore, #tpu.memory_space<semaphore_mem>>)
    %c0_i32_0 = arith.constant 0 : i32
    %3 = tpu.memref_slice %arg1[%c0_i32_0, %1] : memref<17x2560xbf16, #tpu.memory_space<any>> -> memref<17x1536xbf16, #tpu.memory_space<any>>
    tpu.wait_dma2 semaphore(%arg6 : memref<!tpu.dma_semaphore, #tpu.memory_space<semaphore_mem>>) src(%3 : memref<17x1536xbf16, #tpu.memory_space<any>>) dst(%arg5 : memref<17x1536xbf16, #tpu.memory_space<vmem>>)
    %c16 = arith.constant 16 : index
    %c128 = arith.constant 128 : index
    %4 = vector.load %arg5[%c16, %c128] : memref<17x1536xbf16, #tpu.memory_space<vmem>>, vector<1x1280xbf16>
    %cst = arith.constant 0.000000e+00 : f32
    %5 = vector.broadcast %cst : f32 to vector<16x1280xf32>
    %c0 = arith.constant 0 : index
    %c17 = arith.constant 17 : index
    %6 = vector.load %arg5[%c0, %c17] : memref<17x1536xbf16, #tpu.memory_space<vmem>>, vector<16x1280xbf16>
    %c0_1 = arith.constant 0 : index
    %c18 = arith.constant 18 : index
    %7 = vector.load %arg5[%c0_1, %c18] : memref<17x1536xbf16, #tpu.memory_space<vmem>>, vector<16x1280xbf16>
    %c0_2 = arith.constant 0 : index
    %c19 = arith.constant 19 : index
    %8 = vector.load %arg5[%c0_2, %c19] : memref<17x1536xbf16, #tpu.memory_space<vmem>>, vector<16x1280xbf16>
    %9 = tpu.concatenate %6, %7, %8 in 0 : vector<16x1280xbf16>, vector<16x1280xbf16>, vector<16x1280xbf16> -> vector<48x1280xbf16>
    %c0_3 = arith.constant 0 : index
    %c0_4 = arith.constant 0 : index
    %c0_5 = arith.constant 0 : index
    %10 = vector.load %arg2[%c0_3, %c0_4, %c0_5] : memref<9x16x48xbf16, #tpu.memory_space<vmem>>, vector<1x16x48xbf16>
    %11 = vector.shape_cast %10 : vector<1x16x48xbf16> to vector<16x48xbf16>
    %cst_6 = arith.constant dense<0.000000e+00> : vector<16x1280xf32>
    %12 = tpu.matmul %11, %9, %cst_6 {dimension_numbers = #tpu.dot_dimension_numbers<[1], [0], [0], [1], [0, 0, 1, 1], [], []>} : vector<16x48xbf16>, vector<48x1280xbf16>, vector<16x1280xf32> -> vector<16x1280xf32>
    %13 = arith.addf %5, %12 : vector<16x1280xf32>
    %c0_7 = arith.constant 0 : index
    %c27 = arith.constant 27 : index
    %14 = vector.load %arg5[%c0_7, %c27] : memref<17x1536xbf16, #tpu.memory_space<vmem>>, vector<16x1280xbf16>
    %c0_8 = arith.constant 0 : index
    %c28 = arith.constant 28 : index
    %15 = vector.load %arg5[%c0_8, %c28] : memref<17x1536xbf16, #tpu.memory_space<vmem>>, vector<16x1280xbf16>
    %c0_9 = arith.constant 0 : index
    %c29 = arith.constant 29 : index
    %16 = vector.load %arg5[%c0_9, %c29] : memref<17x1536xbf16, #tpu.memory_space<vmem>>, vector<16x1280xbf16>
    %17 = tpu.concatenate %14, %15, %16 in 0 : vector<16x1280xbf16>, vector<16x1280xbf16>, vector<16x1280xbf16> -> vector<48x1280xbf16>
    %c1 = arith.constant 1 : index
    %c0_10 = arith.constant 0 : index
    %c0_11 = arith.constant 0 : index
    %18 = vector.load %arg2[%c1, %c0_10, %c0_11] : memref<9x16x48xbf16, #tpu.memory_space<vmem>>, vector<1x16x48xbf16>
    %19 = vector.shape_cast %18 : vector<1x16x48xbf16> to vector<16x48xbf16>
    %cst_12 = arith.constant dense<0.000000e+00> : vector<16x1280xf32>
    %20 = tpu.matmul %19, %17, %cst_12 {dimension_numbers = #tpu.dot_dimension_numbers<[1], [0], [0], [1], [0, 0, 1, 1], [], []>} : vector<16x48xbf16>, vector<48x1280xbf16>, vector<16x1280xf32> -> vector<16x1280xf32>
    %21 = arith.addf %13, %20 : vector<16x1280xf32>
    %c0_13 = arith.constant 0 : index
    %c37 = arith.constant 37 : index
    %22 = vector.load %arg5[%c0_13, %c37] : memref<17x1536xbf16, #tpu.memory_space<vmem>>, vector<16x1280xbf16>
    %c0_14 = arith.constant 0 : index
    %c38 = arith.constant 38 : index
    %23 = vector.load %arg5[%c0_14, %c38] : memref<17x1536xbf16, #tpu.memory_space<vmem>>, vector<16x1280xbf16>
    %c0_15 = arith.constant 0 : index
    %c39 = arith.constant 39 : index
    %24 = vector.load %arg5[%c0_15, %c39] : memref<17x1536xbf16, #tpu.memory_space<vmem>>, vector<16x1280xbf16>
    %25 = tpu.concatenate %22, %23, %24 in 0 : vector<16x1280xbf16>, vector<16x1280xbf16>, vector<16x1280xbf16> -> vector<48x1280xbf16>
    %c2 = arith.constant 2 : index
    %c0_16 = arith.constant 0 : index
    %c0_17 = arith.constant 0 : index
    %26 = vector.load %arg2[%c2, %c0_16, %c0_17] : memref<9x16x48xbf16, #tpu.memory_space<vmem>>, vector<1x16x48xbf16>
    %27 = vector.shape_cast %26 : vector<1x16x48xbf16> to vector<16x48xbf16>
    %cst_18 = arith.constant dense<0.000000e+00> : vector<16x1280xf32>
    %28 = tpu.matmul %27, %25, %cst_18 {dimension_numbers = #tpu.dot_dimension_numbers<[1], [0], [0], [1], [0, 0, 1, 1], [], []>} : vector<16x48xbf16>, vector<48x1280xbf16>, vector<16x1280xf32> -> vector<16x1280xf32>
    %29 = arith.addf %21, %28 : vector<16x1280xf32>
    %c0_19 = arith.constant 0 : index
    %c117 = arith.constant 117 : index
    %30 = vector.load %arg5[%c0_19, %c117] : memref<17x1536xbf16, #tpu.memory_space<vmem>>, vector<16x1280xbf16>
    %c0_20 = arith.constant 0 : index
    %c118 = arith.constant 118 : index
    %31 = vector.load %arg5[%c0_20, %c118] : memref<17x1536xbf16, #tpu.memory_space<vmem>>, vector<16x1280xbf16>
    %c0_21 = arith.constant 0 : index
    %c119 = arith.constant 119 : index
    %32 = vector.load %arg5[%c0_21, %c119] : memref<17x1536xbf16, #tpu.memory_space<vmem>>, vector<16x1280xbf16>
    %33 = tpu.concatenate %30, %31, %32 in 0 : vector<16x1280xbf16>, vector<16x1280xbf16>, vector<16x1280xbf16> -> vector<48x1280xbf16>
    %c3 = arith.constant 3 : index
    %c0_22 = arith.constant 0 : index
    %c0_23 = arith.constant 0 : index
    %34 = vector.load %arg2[%c3, %c0_22, %c0_23] : memref<9x16x48xbf16, #tpu.memory_space<vmem>>, vector<1x16x48xbf16>
    %35 = vector.shape_cast %34 : vector<1x16x48xbf16> to vector<16x48xbf16>
    %cst_24 = arith.constant dense<0.000000e+00> : vector<16x1280xf32>
    %36 = tpu.matmul %35, %33, %cst_24 {dimension_numbers = #tpu.dot_dimension_numbers<[1], [0], [0], [1], [0, 0, 1, 1], [], []>} : vector<16x48xbf16>, vector<48x1280xbf16>, vector<16x1280xf32> -> vector<16x1280xf32>
    %37 = arith.addf %29, %36 : vector<16x1280xf32>
    %c0_25 = arith.constant 0 : index
    %c127 = arith.constant 127 : index
    %38 = vector.load %arg5[%c0_25, %c127] : memref<17x1536xbf16, #tpu.memory_space<vmem>>, vector<16x1280xbf16>
    %c0_26 = arith.constant 0 : index
    %c128_27 = arith.constant 128 : index
    %39 = vector.load %arg5[%c0_26, %c128_27] : memref<17x1536xbf16, #tpu.memory_space<vmem>>, vector<16x1280xbf16>
    %c0_28 = arith.constant 0 : index
    %c129 = arith.constant 129 : index
    %40 = vector.load %arg5[%c0_28, %c129] : memref<17x1536xbf16, #tpu.memory_space<vmem>>, vector<16x1280xbf16>
    %41 = tpu.concatenate %38, %39, %40 in 0 : vector<16x1280xbf16>, vector<16x1280xbf16>, vector<16x1280xbf16> -> vector<48x1280xbf16>
    %c4 = arith.constant 4 : index
    %c0_29 = arith.constant 0 : index
    %c0_30 = arith.constant 0 : index
    %42 = vector.load %arg2[%c4, %c0_29, %c0_30] : memref<9x16x48xbf16, #tpu.memory_space<vmem>>, vector<1x16x48xbf16>
    %43 = vector.shape_cast %42 : vector<1x16x48xbf16> to vector<16x48xbf16>
    %cst_31 = arith.constant dense<0.000000e+00> : vector<16x1280xf32>
    %44 = tpu.matmul %43, %41, %cst_31 {dimension_numbers = #tpu.dot_dimension_numbers<[1], [0], [0], [1], [0, 0, 1, 1], [], []>} : vector<16x48xbf16>, vector<48x1280xbf16>, vector<16x1280xf32> -> vector<16x1280xf32>
    %45 = arith.addf %37, %44 : vector<16x1280xf32>
    %c0_32 = arith.constant 0 : index
    %c137 = arith.constant 137 : index
    %46 = vector.load %arg5[%c0_32, %c137] : memref<17x1536xbf16, #tpu.memory_space<vmem>>, vector<16x1280xbf16>
    %c0_33 = arith.constant 0 : index
    %c138 = arith.constant 138 : index
    %47 = vector.load %arg5[%c0_33, %c138] : memref<17x1536xbf16, #tpu.memory_space<vmem>>, vector<16x1280xbf16>
    %c0_34 = arith.constant 0 : index
    %c139 = arith.constant 139 : index
    %48 = vector.load %arg5[%c0_34, %c139] : memref<17x1536xbf16, #tpu.memory_space<vmem>>, vector<16x1280xbf16>
    %49 = tpu.concatenate %46, %47, %48 in 0 : vector<16x1280xbf16>, vector<16x1280xbf16>, vector<16x1280xbf16> -> vector<48x1280xbf16>
    %c5 = arith.constant 5 : index
    %c0_35 = arith.constant 0 : index
    %c0_36 = arith.constant 0 : index
    %50 = vector.load %arg2[%c5, %c0_35, %c0_36] : memref<9x16x48xbf16, #tpu.memory_space<vmem>>, vector<1x16x48xbf16>
    %51 = vector.shape_cast %50 : vector<1x16x48xbf16> to vector<16x48xbf16>
    %cst_37 = arith.constant dense<0.000000e+00> : vector<16x1280xf32>
    %52 = tpu.matmul %51, %49, %cst_37 {dimension_numbers = #tpu.dot_dimension_numbers<[1], [0], [0], [1], [0, 0, 1, 1], [], []>} : vector<16x48xbf16>, vector<48x1280xbf16>, vector<16x1280xf32> -> vector<16x1280xf32>
    %53 = arith.addf %45, %52 : vector<16x1280xf32>
    %c0_38 = arith.constant 0 : index
    %c217 = arith.constant 217 : index
    %54 = vector.load %arg5[%c0_38, %c217] : memref<17x1536xbf16, #tpu.memory_space<vmem>>, vector<16x1280xbf16>
    %c0_39 = arith.constant 0 : index
    %c218 = arith.constant 218 : index
    %55 = vector.load %arg5[%c0_39, %c218] : memref<17x1536xbf16, #tpu.memory_space<vmem>>, vector<16x1280xbf16>
    %c0_40 = arith.constant 0 : index
    %c219 = arith.constant 219 : index
    %56 = vector.load %arg5[%c0_40, %c219] : memref<17x1536xbf16, #tpu.memory_space<vmem>>, vector<16x1280xbf16>
    %57 = tpu.concatenate %54, %55, %56 in 0 : vector<16x1280xbf16>, vector<16x1280xbf16>, vector<16x1280xbf16> -> vector<48x1280xbf16>
    %c6 = arith.constant 6 : index
    %c0_41 = arith.constant 0 : index
    %c0_42 = arith.constant 0 : index
    %58 = vector.load %arg2[%c6, %c0_41, %c0_42] : memref<9x16x48xbf16, #tpu.memory_space<vmem>>, vector<1x16x48xbf16>
    %59 = vector.shape_cast %58 : vector<1x16x48xbf16> to vector<16x48xbf16>
    %cst_43 = arith.constant dense<0.000000e+00> : vector<16x1280xf32>
    %60 = tpu.matmul %59, %57, %cst_43 {dimension_numbers = #tpu.dot_dimension_numbers<[1], [0], [0], [1], [0, 0, 1, 1], [], []>} : vector<16x48xbf16>, vector<48x1280xbf16>, vector<16x1280xf32> -> vector<16x1280xf32>
    %61 = arith.addf %53, %60 : vector<16x1280xf32>
    %c0_44 = arith.constant 0 : index
    %c227 = arith.constant 227 : index
    %62 = vector.load %arg5[%c0_44, %c227] : memref<17x1536xbf16, #tpu.memory_space<vmem>>, vector<16x1280xbf16>
    %c0_45 = arith.constant 0 : index
    %c228 = arith.constant 228 : index
    %63 = vector.load %arg5[%c0_45, %c228] : memref<17x1536xbf16, #tpu.memory_space<vmem>>, vector<16x1280xbf16>
    %c0_46 = arith.constant 0 : index
    %c229 = arith.constant 229 : index
    %64 = vector.load %arg5[%c0_46, %c229] : memref<17x1536xbf16, #tpu.memory_space<vmem>>, vector<16x1280xbf16>
    %65 = tpu.concatenate %62, %63, %64 in 0 : vector<16x1280xbf16>, vector<16x1280xbf16>, vector<16x1280xbf16> -> vector<48x1280xbf16>
    %c7 = arith.constant 7 : index
    %c0_47 = arith.constant 0 : index
    %c0_48 = arith.constant 0 : index
    %66 = vector.load %arg2[%c7, %c0_47, %c0_48] : memref<9x16x48xbf16, #tpu.memory_space<vmem>>, vector<1x16x48xbf16>
    %67 = vector.shape_cast %66 : vector<1x16x48xbf16> to vector<16x48xbf16>
    %cst_49 = arith.constant dense<0.000000e+00> : vector<16x1280xf32>
    %68 = tpu.matmul %67, %65, %cst_49 {dimension_numbers = #tpu.dot_dimension_numbers<[1], [0], [0], [1], [0, 0, 1, 1], [], []>} : vector<16x48xbf16>, vector<48x1280xbf16>, vector<16x1280xf32> -> vector<16x1280xf32>
    %69 = arith.addf %61, %68 : vector<16x1280xf32>
    %c0_50 = arith.constant 0 : index
    %c237 = arith.constant 237 : index
    %70 = vector.load %arg5[%c0_50, %c237] : memref<17x1536xbf16, #tpu.memory_space<vmem>>, vector<16x1280xbf16>
    %c0_51 = arith.constant 0 : index
    %c238 = arith.constant 238 : index
    %71 = vector.load %arg5[%c0_51, %c238] : memref<17x1536xbf16, #tpu.memory_space<vmem>>, vector<16x1280xbf16>
    %c0_52 = arith.constant 0 : index
    %c239 = arith.constant 239 : index
    %72 = vector.load %arg5[%c0_52, %c239] : memref<17x1536xbf16, #tpu.memory_space<vmem>>, vector<16x1280xbf16>
    %73 = tpu.concatenate %70, %71, %72 in 0 : vector<16x1280xbf16>, vector<16x1280xbf16>, vector<16x1280xbf16> -> vector<48x1280xbf16>
    %c8 = arith.constant 8 : index
    %c0_53 = arith.constant 0 : index
    %c0_54 = arith.constant 0 : index
    %74 = vector.load %arg2[%c8, %c0_53, %c0_54] : memref<9x16x48xbf16, #tpu.memory_space<vmem>>, vector<1x16x48xbf16>
    %75 = vector.shape_cast %74 : vector<1x16x48xbf16> to vector<16x48xbf16>
    %cst_55 = arith.constant dense<0.000000e+00> : vector<16x1280xf32>
    %76 = tpu.matmul %75, %73, %cst_55 {dimension_numbers = #tpu.dot_dimension_numbers<[1], [0], [0], [1], [0, 0, 1, 1], [], []>} : vector<16x48xbf16>, vector<48x1280xbf16>, vector<16x1280xf32> -> vector<16x1280xf32>
    %77 = arith.addf %69, %76 : vector<16x1280xf32>
    %cst_56 = arith.constant 0.000000e+00 : f32
    %78 = vector.broadcast %cst_56 : f32 to vector<16x1280xf32>
    %79 = arith.maximumf %77, %78 : vector<16x1280xf32>
    %80 = arith.extf %4 : vector<1x1280xbf16> to vector<1x1280xf32>
    %81 = vector.broadcast %80 : vector<1x1280xf32> to vector<16x1280xf32>
    %82 = arith.mulf %79, %81 : vector<16x1280xf32>
    %83 = arith.truncf %82 : vector<16x1280xf32> to vector<16x1280xbf16>
    %cst_57 = arith.constant 0.000000e+00 : f32
    %84 = vector.broadcast %cst_57 : f32 to vector<16x1024xf32>
    %85 = vector.extract_strided_slice %83 {offsets = [0, 17], sizes = [16, 1024], strides = [1, 1]} : vector<16x1280xbf16> to vector<16x1024xbf16>
    %86 = vector.extract_strided_slice %83 {offsets = [0, 18], sizes = [16, 1024], strides = [1, 1]} : vector<16x1280xbf16> to vector<16x1024xbf16>
    %87 = vector.extract_strided_slice %83 {offsets = [0, 19], sizes = [16, 1024], strides = [1, 1]} : vector<16x1280xbf16> to vector<16x1024xbf16>
    %88 = tpu.concatenate %85, %86, %87 in 0 : vector<16x1024xbf16>, vector<16x1024xbf16>, vector<16x1024xbf16> -> vector<48x1024xbf16>
    %c0_58 = arith.constant 0 : index
    %c0_59 = arith.constant 0 : index
    %c0_60 = arith.constant 0 : index
    %89 = vector.load %arg3[%c0_58, %c0_59, %c0_60] : memref<9x16x48xbf16, #tpu.memory_space<vmem>>, vector<1x16x48xbf16>
    %90 = vector.shape_cast %89 : vector<1x16x48xbf16> to vector<16x48xbf16>
    %cst_61 = arith.constant dense<0.000000e+00> : vector<16x1024xf32>
    %91 = tpu.matmul %90, %88, %cst_61 {dimension_numbers = #tpu.dot_dimension_numbers<[1], [0], [0], [1], [0, 0, 1, 1], [], []>} : vector<16x48xbf16>, vector<48x1024xbf16>, vector<16x1024xf32> -> vector<16x1024xf32>
    %92 = arith.addf %84, %91 : vector<16x1024xf32>
    %93 = vector.extract_strided_slice %83 {offsets = [0, 27], sizes = [16, 1024], strides = [1, 1]} : vector<16x1280xbf16> to vector<16x1024xbf16>
    %94 = vector.extract_strided_slice %83 {offsets = [0, 28], sizes = [16, 1024], strides = [1, 1]} : vector<16x1280xbf16> to vector<16x1024xbf16>
    %95 = vector.extract_strided_slice %83 {offsets = [0, 29], sizes = [16, 1024], strides = [1, 1]} : vector<16x1280xbf16> to vector<16x1024xbf16>
    %96 = tpu.concatenate %93, %94, %95 in 0 : vector<16x1024xbf16>, vector<16x1024xbf16>, vector<16x1024xbf16> -> vector<48x1024xbf16>
    %c1_62 = arith.constant 1 : index
    %c0_63 = arith.constant 0 : index
    %c0_64 = arith.constant 0 : index
    %97 = vector.load %arg3[%c1_62, %c0_63, %c0_64] : memref<9x16x48xbf16, #tpu.memory_space<vmem>>, vector<1x16x48xbf16>
    %98 = vector.shape_cast %97 : vector<1x16x48xbf16> to vector<16x48xbf16>
    %cst_65 = arith.constant dense<0.000000e+00> : vector<16x1024xf32>
    %99 = tpu.matmul %98, %96, %cst_65 {dimension_numbers = #tpu.dot_dimension_numbers<[1], [0], [0], [1], [0, 0, 1, 1], [], []>} : vector<16x48xbf16>, vector<48x1024xbf16>, vector<16x1024xf32> -> vector<16x1024xf32>
    %100 = arith.addf %92, %99 : vector<16x1024xf32>
    %101 = vector.extract_strided_slice %83 {offsets = [0, 37], sizes = [16, 1024], strides = [1, 1]} : vector<16x1280xbf16> to vector<16x1024xbf16>
    %102 = vector.extract_strided_slice %83 {offsets = [0, 38], sizes = [16, 1024], strides = [1, 1]} : vector<16x1280xbf16> to vector<16x1024xbf16>
    %103 = vector.extract_strided_slice %83 {offsets = [0, 39], sizes = [16, 1024], strides = [1, 1]} : vector<16x1280xbf16> to vector<16x1024xbf16>
    %104 = tpu.concatenate %101, %102, %103 in 0 : vector<16x1024xbf16>, vector<16x1024xbf16>, vector<16x1024xbf16> -> vector<48x1024xbf16>
    %c2_66 = arith.constant 2 : index
    %c0_67 = arith.constant 0 : index
    %c0_68 = arith.constant 0 : index
    %105 = vector.load %arg3[%c2_66, %c0_67, %c0_68] : memref<9x16x48xbf16, #tpu.memory_space<vmem>>, vector<1x16x48xbf16>
    %106 = vector.shape_cast %105 : vector<1x16x48xbf16> to vector<16x48xbf16>
    %cst_69 = arith.constant dense<0.000000e+00> : vector<16x1024xf32>
    %107 = tpu.matmul %106, %104, %cst_69 {dimension_numbers = #tpu.dot_dimension_numbers<[1], [0], [0], [1], [0, 0, 1, 1], [], []>} : vector<16x48xbf16>, vector<48x1024xbf16>, vector<16x1024xf32> -> vector<16x1024xf32>
    %108 = arith.addf %100, %107 : vector<16x1024xf32>
    %109 = vector.extract_strided_slice %83 {offsets = [0, 117], sizes = [16, 1024], strides = [1, 1]} : vector<16x1280xbf16> to vector<16x1024xbf16>
    %110 = vector.extract_strided_slice %83 {offsets = [0, 118], sizes = [16, 1024], strides = [1, 1]} : vector<16x1280xbf16> to vector<16x1024xbf16>
    %111 = vector.extract_strided_slice %83 {offsets = [0, 119], sizes = [16, 1024], strides = [1, 1]} : vector<16x1280xbf16> to vector<16x1024xbf16>
    %112 = tpu.concatenate %109, %110, %111 in 0 : vector<16x1024xbf16>, vector<16x1024xbf16>, vector<16x1024xbf16> -> vector<48x1024xbf16>
    %c3_70 = arith.constant 3 : index
    %c0_71 = arith.constant 0 : index
    %c0_72 = arith.constant 0 : index
    %113 = vector.load %arg3[%c3_70, %c0_71, %c0_72] : memref<9x16x48xbf16, #tpu.memory_space<vmem>>, vector<1x16x48xbf16>
    %114 = vector.shape_cast %113 : vector<1x16x48xbf16> to vector<16x48xbf16>
    %cst_73 = arith.constant dense<0.000000e+00> : vector<16x1024xf32>
    %115 = tpu.matmul %114, %112, %cst_73 {dimension_numbers = #tpu.dot_dimension_numbers<[1], [0], [0], [1], [0, 0, 1, 1], [], []>} : vector<16x48xbf16>, vector<48x1024xbf16>, vector<16x1024xf32> -> vector<16x1024xf32>
    %116 = arith.addf %108, %115 : vector<16x1024xf32>
    %117 = vector.extract_strided_slice %83 {offsets = [0, 127], sizes = [16, 1024], strides = [1, 1]} : vector<16x1280xbf16> to vector<16x1024xbf16>
    %118 = vector.extract_strided_slice %83 {offsets = [0, 128], sizes = [16, 1024], strides = [1, 1]} : vector<16x1280xbf16> to vector<16x1024xbf16>
    %119 = vector.extract_strided_slice %83 {offsets = [0, 129], sizes = [16, 1024], strides = [1, 1]} : vector<16x1280xbf16> to vector<16x1024xbf16>
    %120 = tpu.concatenate %117, %118, %119 in 0 : vector<16x1024xbf16>, vector<16x1024xbf16>, vector<16x1024xbf16> -> vector<48x1024xbf16>
    %c4_74 = arith.constant 4 : index
    %c0_75 = arith.constant 0 : index
    %c0_76 = arith.constant 0 : index
    %121 = vector.load %arg3[%c4_74, %c0_75, %c0_76] : memref<9x16x48xbf16, #tpu.memory_space<vmem>>, vector<1x16x48xbf16>
    %122 = vector.shape_cast %121 : vector<1x16x48xbf16> to vector<16x48xbf16>
    %cst_77 = arith.constant dense<0.000000e+00> : vector<16x1024xf32>
    %123 = tpu.matmul %122, %120, %cst_77 {dimension_numbers = #tpu.dot_dimension_numbers<[1], [0], [0], [1], [0, 0, 1, 1], [], []>} : vector<16x48xbf16>, vector<48x1024xbf16>, vector<16x1024xf32> -> vector<16x1024xf32>
    %124 = arith.addf %116, %123 : vector<16x1024xf32>
    %125 = vector.extract_strided_slice %83 {offsets = [0, 137], sizes = [16, 1024], strides = [1, 1]} : vector<16x1280xbf16> to vector<16x1024xbf16>
    %126 = vector.extract_strided_slice %83 {offsets = [0, 138], sizes = [16, 1024], strides = [1, 1]} : vector<16x1280xbf16> to vector<16x1024xbf16>
    %127 = vector.extract_strided_slice %83 {offsets = [0, 139], sizes = [16, 1024], strides = [1, 1]} : vector<16x1280xbf16> to vector<16x1024xbf16>
    %128 = tpu.concatenate %125, %126, %127 in 0 : vector<16x1024xbf16>, vector<16x1024xbf16>, vector<16x1024xbf16> -> vector<48x1024xbf16>
    %c5_78 = arith.constant 5 : index
    %c0_79 = arith.constant 0 : index
    %c0_80 = arith.constant 0 : index
    %129 = vector.load %arg3[%c5_78, %c0_79, %c0_80] : memref<9x16x48xbf16, #tpu.memory_space<vmem>>, vector<1x16x48xbf16>
    %130 = vector.shape_cast %129 : vector<1x16x48xbf16> to vector<16x48xbf16>
    %cst_81 = arith.constant dense<0.000000e+00> : vector<16x1024xf32>
    %131 = tpu.matmul %130, %128, %cst_81 {dimension_numbers = #tpu.dot_dimension_numbers<[1], [0], [0], [1], [0, 0, 1, 1], [], []>} : vector<16x48xbf16>, vector<48x1024xbf16>, vector<16x1024xf32> -> vector<16x1024xf32>
    %132 = arith.addf %124, %131 : vector<16x1024xf32>
    %133 = vector.extract_strided_slice %83 {offsets = [0, 217], sizes = [16, 1024], strides = [1, 1]} : vector<16x1280xbf16> to vector<16x1024xbf16>
    %134 = vector.extract_strided_slice %83 {offsets = [0, 218], sizes = [16, 1024], strides = [1, 1]} : vector<16x1280xbf16> to vector<16x1024xbf16>
    %135 = vector.extract_strided_slice %83 {offsets = [0, 219], sizes = [16, 1024], strides = [1, 1]} : vector<16x1280xbf16> to vector<16x1024xbf16>
    %136 = tpu.concatenate %133, %134, %135 in 0 : vector<16x1024xbf16>, vector<16x1024xbf16>, vector<16x1024xbf16> -> vector<48x1024xbf16>
    %c6_82 = arith.constant 6 : index
    %c0_83 = arith.constant 0 : index
    %c0_84 = arith.constant 0 : index
    %137 = vector.load %arg3[%c6_82, %c0_83, %c0_84] : memref<9x16x48xbf16, #tpu.memory_space<vmem>>, vector<1x16x48xbf16>
    %138 = vector.shape_cast %137 : vector<1x16x48xbf16> to vector<16x48xbf16>
    %cst_85 = arith.constant dense<0.000000e+00> : vector<16x1024xf32>
    %139 = tpu.matmul %138, %136, %cst_85 {dimension_numbers = #tpu.dot_dimension_numbers<[1], [0], [0], [1], [0, 0, 1, 1], [], []>} : vector<16x48xbf16>, vector<48x1024xbf16>, vector<16x1024xf32> -> vector<16x1024xf32>
    %140 = arith.addf %132, %139 : vector<16x1024xf32>
    %141 = vector.extract_strided_slice %83 {offsets = [0, 227], sizes = [16, 1024], strides = [1, 1]} : vector<16x1280xbf16> to vector<16x1024xbf16>
    %142 = vector.extract_strided_slice %83 {offsets = [0, 228], sizes = [16, 1024], strides = [1, 1]} : vector<16x1280xbf16> to vector<16x1024xbf16>
    %143 = vector.extract_strided_slice %83 {offsets = [0, 229], sizes = [16, 1024], strides = [1, 1]} : vector<16x1280xbf16> to vector<16x1024xbf16>
    %144 = tpu.concatenate %141, %142, %143 in 0 : vector<16x1024xbf16>, vector<16x1024xbf16>, vector<16x1024xbf16> -> vector<48x1024xbf16>
    %c7_86 = arith.constant 7 : index
    %c0_87 = arith.constant 0 : index
    %c0_88 = arith.constant 0 : index
    %145 = vector.load %arg3[%c7_86, %c0_87, %c0_88] : memref<9x16x48xbf16, #tpu.memory_space<vmem>>, vector<1x16x48xbf16>
    %146 = vector.shape_cast %145 : vector<1x16x48xbf16> to vector<16x48xbf16>
    %cst_89 = arith.constant dense<0.000000e+00> : vector<16x1024xf32>
    %147 = tpu.matmul %146, %144, %cst_89 {dimension_numbers = #tpu.dot_dimension_numbers<[1], [0], [0], [1], [0, 0, 1, 1], [], []>} : vector<16x48xbf16>, vector<48x1024xbf16>, vector<16x1024xf32> -> vector<16x1024xf32>
    %148 = arith.addf %140, %147 : vector<16x1024xf32>
    %149 = vector.extract_strided_slice %83 {offsets = [0, 237], sizes = [16, 1024], strides = [1, 1]} : vector<16x1280xbf16> to vector<16x1024xbf16>
    %150 = vector.extract_strided_slice %83 {offsets = [0, 238], sizes = [16, 1024], strides = [1, 1]} : vector<16x1280xbf16> to vector<16x1024xbf16>
    %151 = vector.extract_strided_slice %83 {offsets = [0, 239], sizes = [16, 1024], strides = [1, 1]} : vector<16x1280xbf16> to vector<16x1024xbf16>
    %152 = tpu.concatenate %149, %150, %151 in 0 : vector<16x1024xbf16>, vector<16x1024xbf16>, vector<16x1024xbf16> -> vector<48x1024xbf16>
    %c8_90 = arith.constant 8 : index
    %c0_91 = arith.constant 0 : index
    %c0_92 = arith.constant 0 : index
    %153 = vector.load %arg3[%c8_90, %c0_91, %c0_92] : memref<9x16x48xbf16, #tpu.memory_space<vmem>>, vector<1x16x48xbf16>
    %154 = vector.shape_cast %153 : vector<1x16x48xbf16> to vector<16x48xbf16>
    %cst_93 = arith.constant dense<0.000000e+00> : vector<16x1024xf32>
    %155 = tpu.matmul %154, %152, %cst_93 {dimension_numbers = #tpu.dot_dimension_numbers<[1], [0], [0], [1], [0, 0, 1, 1], [], []>} : vector<16x48xbf16>, vector<48x1024xbf16>, vector<16x1024xf32> -> vector<16x1024xf32>
    %156 = arith.addf %148, %155 : vector<16x1024xf32>
    %c0_94 = arith.constant 0 : index
    %c256 = arith.constant 256 : index
    %157 = vector.load %arg5[%c0_94, %c256] : memref<17x1536xbf16, #tpu.memory_space<vmem>>, vector<16x1024xbf16>
    %158 = arith.extf %157 : vector<16x1024xbf16> to vector<16x1024xf32>
    %cst_95 = arith.constant 0.000000e+00 : f32
    %159 = vector.broadcast %cst_95 : f32 to vector<16x1024xf32>
    %160 = arith.maximumf %156, %159 : vector<16x1024xf32>
    %161 = arith.addf %160, %158 : vector<16x1024xf32>
    %c0_96 = arith.constant 0 : index
    %c0_97 = arith.constant 0 : index
    %162 = vector.load %arg4[%c0_96, %c0_97] : memref<16x1024xf32, #tpu.memory_space<vmem>>, vector<16x1024xf32>
    tpu.vector_store %arg4[%c0_96, %c0_97], %161 {strides = array<i32>} : memref<16x1024xf32, #tpu.memory_space<vmem>>, vector<16x1024xf32>,
    return
  }
  func.func @transform_1(%arg0: i32) -> (i32, i32, i32) {
    %c0_i32 = arith.constant 0 : i32
    %c0_i32_0 = arith.constant 0 : i32
    %c0_i32_1 = arith.constant 0 : i32
    %c0_i32_2 = arith.constant 0 : i32
    return %c0_i32, %c0_i32_0, %c0_i32_1 : i32, i32, i32
  }
  func.func @transform_2(%arg0: i32) -> (i32, i32, i32) {
    %c0_i32 = arith.constant 0 : i32
    %c0_i32_0 = arith.constant 0 : i32
    %c0_i32_1 = arith.constant 0 : i32
    %c0_i32_2 = arith.constant 0 : i32
    return %c0_i32, %c0_i32_0, %c0_i32_1 : i32, i32, i32
  }
  func.func @transform_3(%arg0: i32) -> (i32, i32) {
    %c0_i32 = arith.constant 0 : i32
    %c0_i32_0 = arith.constant 0 : i32
    return %c0_i32, %arg0 : i32, i32
  }
}

</mosaic_0001>

<bundles_post_ra>
// kernel: voxrex_forward.1
= control target key start
LH: loop header
LB: loop body
LE: loop exit
PB: predicated region body
PF: predicated region fallthrough
CT: control target
= control target key end

     0   :  { %s7139_s12 = smov 0   ;;  %s7141_s13 = smov 0   ;;  %s10913_s0 = inlined_call_operand.vmem [shape: bf16[17,2560], index: 0, kind: input, shape index: {}]   ;;  %s10914_s1 = inlined_call_operand.vmem [shape: bf16[9,16,48], index: 1, kind: input, shape index: {}]   ;;  %s10915_s2 = inlined_call_operand.vmem [shape: bf16[9,16,48], index: 2, kind: input, shape index: {}]   ;;  %s10916_s3 = inlined_call_operand.vmem [shape: f32[16,2048], index: 3, kind: output, shape index: {}]  }
   0x1   :  { %s7143_s14 = smov 0  }
   0x2 LB: > { %s7150_s15 = sadd.s32 4294967295, %s7105_s14   ;;  %s7152_s16 = sadd.s32 1, %s7105_s14   ;;  %s7105_s14 = sphi %s7143_s14, %s11096_s14   ;;  %s7101_s13 = sphi %s7141_s13, %s11095_s13   ;;  %s7097_s12 = sphi %s7139_s12, %s11094_s12  }
   0x3   : > { %s59_s17 = ssub.s32 %s7105_s14, %s7152_s16  ;;  %s62_s18 = sadd.s32 1, %s7101_s13 }
   0x4   : > { %p60_p0 = scmp.eq.s32.totalorder %s59_s17, 0  ;;  %p72_p1 = scmp.ne.s32.totalorder %s7101_s13, %s7097_s12 }
   0x5   : > { %p73_p2 = scmp.eq.s32.totalorder %s7150_s15, 1  ;;  %p6807_p3 = scmp.ge.s32.totalorder %s7105_s14, 1 }
   0x6   : > { %s7159_s19 = scalar_select %p60_p0, %s7101_s13, %s62_s18  }
   0x7   : > { %p7161_p4 = por %p73_p2, %p72_p1  ;;  %p103_p5 = scmp.lt.s32.totalorder %s7105_s14, 3 }
   0x9   : > { %p104_p6 = pnand %p6807_p3, %p103_p5 }
   0xb   : > { %107 = sbr.rel (%p104_p6) target bundleno = 1989 (0x7c5), region = 28 }
  0x10   : > { %s116_s21 = sand.u32 1, %s7097_s12   ;;  %s6809_s22 = sshll.u32 %s7150_s15, 10 }
  0x11   : > { %s7166_s23 = sshll.u32 %s116_s21, 7  ;;  %s122_s24 = sshra.s32 %s6809_s22, 7 }
  0x12   : > { %s6810_s25 = sshll.u32 %s122_s24, 2  ;;  %s7192_s29 = scalar_lea.vmem [#allocation4], %s7166_s23 }
  0x13   : > { %s7171_s28 = scalar_lea.vmem %s10913_s0, %s6810_s25 }
  0x14   : > { %v163_v0 = vld [vmem:[%s7171_s28] sm:$0xff]  ;;  %v165_v1 = vld [vmem:[%s7171_s28 + $0x8] sm:$0xff]  ;;  %v167_v2 = vld [vmem:[%s7171_s28 + $0x10] sm:$0xff] }
  0x15   : > { %164 = vst [vmem:[#allocation2] sm:$0xff] %v163_v0  ;;  %166 = vst [vmem:[#allocation2 + $0x8] sm:$0xff] %v165_v1  ;;  %v169_v3 = vld [vmem:[%s7171_s28 + $0x18] sm:$0xff]  ;;  %v171_v4 = vld [vmem:[%s7171_s28 + $0x20] sm:$0xff] }
  0x16   : > { %168 = vst [vmem:[#allocation2 + $0x10] sm:$0xff] %v167_v2  ;;  %v173_v5 = vld [vmem:[%s7171_s28 + $0x28] sm:$0xff]  ;;  %170 = vst [vmem:[#allocation2 + $0x18] sm:$0xff] %v169_v3  ;;  %v175_v6 = vld [vmem:[%s7171_s28 + $0x50] sm:$0xff] }
  0x17   : > { %172 = vst [vmem:[#allocation2 + $0x20] sm:$0xff] %v171_v4  ;;  %174 = vst [vmem:[#allocation2 + $0x28] sm:$0xff] %v173_v5  ;;  %v177_v7 = vld [vmem:[%s7171_s28 + $0x58] sm:$0xff]  ;;  %v179_v8 = vld [vmem:[%s7171_s28 + $0x60] sm:$0xff] }
  0x18   : > { %176 = vst [vmem:[#allocation2 + $0x30] sm:$0xff] %v175_v6  ;;  %178 = vst [vmem:[#allocation2 + $0x38] sm:$0xff] %v177_v7  ;;  %v181_v9 = vld [vmem:[%s7171_s28 + $0x68] sm:$0xff]  ;;  %v183_v10 = vld [vmem:[%s7171_s28 + $0x70] sm:$0xff] }
  0x19   : > { %180 = vst [vmem:[#allocation2 + $0x40] sm:$0xff] %v179_v8  ;;  %v185_v11 = vld [vmem:[%s7171_s28 + $0x78] sm:$0xff]  ;;  %182 = vst [vmem:[#allocation2 + $0x48] sm:$0xff] %v181_v9  ;;  %v187_v12 = vld [vmem:[%s7171_s28 + $0xa0] sm:$0xff] }
  0x1a   : > { %184 = vst [vmem:[#allocation2 + $0x50] sm:$0xff] %v183_v10  ;;  %186 = vst [vmem:[#allocation2 + $0x58] sm:$0xff] %v185_v11  ;;  %v189_v13 = vld [vmem:[%s7171_s28 + $0xa8] sm:$0xff]  ;;  %v191_v14 = vld [vmem:[%s7171_s28 + $0xb0] sm:$0xff] }
  0x1b   : > { %188 = vst [vmem:[#allocation2 + $0x60] sm:$0xff] %v187_v12  ;;  %190 = vst [vmem:[#allocation2 + $0x68] sm:$0xff] %v189_v13  ;;  %v193_v15 = vld [vmem:[%s7171_s28 + $0xb8] sm:$0xff]  ;;  %v195_v16 = vld [vmem:[%s7171_s28 + $0xc0] sm:$0xff] }
  0x1c   : > { %192 = vst [vmem:[#allocation2 + $0x70] sm:$0xff] %v191_v14  ;;  %v197_v17 = vld [vmem:[%s7171_s28 + $0xc8] sm:$0xff]  ;;  %194 = vst [vmem:[#allocation2 + $0x78] sm:$0xff] %v193_v15 }
  0x1d   : > { %196 = vst [vmem:[#allocation2 + $0x80] sm:$0xff] %v195_v16  ;;  %198 = vst [vmem:[#allocation2 + $0x88] sm:$0xff] %v197_v17 }
  0x1e   : > { %206 = vsyncadd [#allocation3], 2304 }
  0x1f   : > { %7093 = dma.done.wait [#allocation3], 2304 }
  0x20   : > { %7094 = vsyncadd [#allocation3], 4294964992  ;;  %v7194_v18 = vld [vmem:[#allocation2 + $0x8] ss:$48 sps:$4 sm:$0xff]   ;;  %v7196_v19 = vld [vmem:[#allocation2] ss:$48 sps:$4 sm:$0xff]  }
  0x21   : > { %s7107_s30 = smov 127   ;;  %v7200_v20 = vld [vmem:[#allocation2 + $0xc] ss:$48 sps:$4 sm:$0xff]   ;;  %v7204_v21 = vld [vmem:[#allocation2 + $0x4] ss:$48 sps:$4 sm:$0xff]   ;;  %s7108_s4 = smov 126  }
  0x22   : > { %277 = vrot.lane.b32.xlu1 %v7194_v18, %s7107_s30  ;;  %10956 = vst [vmem:[#allocation7_spill] sm:$0xff] %v7200_v20  ;;  %273 = vrot.lane.b32.xlu0 %v7196_v19, %s7107_s30  ;;  %10957 = vst [vmem:[#allocation8_spill] sm:$0xff] %v7204_v21  ;;  %v7208_v22 = vld [vmem:[#allocation2 + $0x14] ss:$48 sps:$4 sm:$0xff]   ;;  %v7212_v23 = vld [vmem:[#allocation2 + $0x10] ss:$48 sps:$4 sm:$0xff]  }
  0x23   : > { %10958 = vst [vmem:[#allocation9_spill] sm:$0xff] %v7208_v22  ;;  %v7214_v24 = vld [vmem:[#allocation2 + $0x1c] ss:$48 sps:$4 sm:$0xff]   ;;  %v7216_v25 = vld [vmem:[#allocation2 + $0x18] ss:$48 sps:$4 sm:$0xff]   ;;  %s7109_s5 = smov 101  }
  0x24   : > { %10959 = vst [vmem:[#allocation10_spill] sm:$0xff] %v7214_v24  ;;  %v7222_v26 = vld [vmem:[#allocation2 + $0x24] ss:$48 sps:$4 sm:$0xff]   ;;  %v7224_v27 = vld [vmem:[#allocation2 + $0x20] ss:$48 sps:$4 sm:$0xff]   ;;  %s7110_s6 = smov 111  }
  0x25   : > { %v7230_v28 = vld [vmem:[#allocation2 + $0x28] ss:$48 sps:$4 sm:$0xff]   ;;  %vm295_vm0 = vcmask 1039360   ;;  %vm328_vm1 = vcmask 1031168   ;;  %v10917_v4 = vmov 0   ;;  %s7112_s7 = smov 91  }
  0x26   : > { %279 = vrot.lane.b32.xlu1 %v7200_v20, %s7107_s30  ;;  %275 = vrot.lane.b32.xlu0 %v7204_v21, %s7107_s30  ;;  %vm415_vm2 = vcmask 826368   ;;  %vm476_vm3 = vcmask 392192   ;;  %s7113_s10 = smov 11   ;;  %vm766_vm4 = vcmask 908288   ;;  %vm1119_vm5 = vcmask 744448   ;;  %s7114_s14 = smov 1  }
  0x27   : > { %512 = vmatprep.mubr.bf16.mxu0 %v10917_v4  ;;  %555 = vmatprep.mubr.bf16.mxu1 %v10917_v4  ;;  %v7029_v4 = vld [vmem:[#allocation2 + $0x18] ss:$48 sps:$4 sm:$0xff]   ;;  %vm1492_vm6 = vcmask 89088   ;;  %s7115_s21 = smov 119   ;;  %vm1983_vm7 = vcmask 7168   ;;  %s7116_s24 = smov 39  }
  0x28   : > { %vm2359_vm8 = vcmask 973824   ;;  %s7117_s27 = smov 29   ;;  %vm2732_vm9 = vcmask 318464   ;;  %s7118_s9 = smov 19   ;;  %vm3105_vm10 = vcmask 236544   ;;  %vm3478_vm11 = vcmask 154624  }
  0x29   : > { %s6970_s18 = sshll.u32 (%p7161_p4), %s7150_s15, 6 }
  0x2a   : > { %283 = vrot.lane.b32.xlu1 %v7208_v22, %s7107_s30  ;;  %281 = vrot.lane.b32.xlu0 %v7212_v23, %s7107_s30 }
  0x2e   : > { %287 = vrot.lane.b32.xlu1 %v7214_v24, %s7107_s30  ;;  %285 = vrot.lane.b32.xlu0 %v7216_v25, %s7107_s30 }
  0x32   : > { %291 = vrot.lane.b32.xlu1 %v7222_v26, %s7107_s30  ;;  %289 = vrot.lane.b32.xlu0 %v7224_v27, %s7107_s30 }
  0x36   : > { %306 = vrot.lane.b32.xlu1 %v7196_v19, %s7108_s4  ;;  %293 = vrot.lane.b32.xlu0 %v7230_v28, %s7107_s30 }
  0x3a   : > { %310 = vrot.lane.b32.xlu1 %v7194_v18, %s7108_s4  ;;  %308 = vrot.lane.b32.xlu0 %v7204_v21, %s7108_s4 }
  0x3e   : > { %314 = vrot.lane.b32.xlu1 %v7212_v23, %s7108_s4  ;;  %312 = vrot.lane.b32.xlu0 %v7200_v20, %s7108_s4 }
  0x42   : > { %318 = vrot.lane.b32.xlu1 %v7216_v25, %s7108_s4  ;;  %316 = vrot.lane.b32.xlu0 %v7208_v22, %s7108_s4 }
  0x46   : > { %322 = vrot.lane.b32.xlu1 %v7224_v27, %s7108_s4  ;;  %320 = vrot.lane.b32.xlu0 %v7214_v24, %s7108_s4 }
  0x4a   : > { %326 = vrot.lane.b32.xlu1 %v7230_v28, %s7108_s4  ;;  %324 = vrot.lane.b32.xlu0 %v7222_v26, %s7108_s4 }
  0x4e   : > { %351 = vrot.lane.b32.xlu1 %v7204_v21, %s7109_s5  ;;  %349 = vrot.lane.b32.xlu0 %v7196_v19, %s7109_s5 }
  0x52   : > { %355 = vrot.lane.b32.xlu1 %v7200_v20, %s7109_s5  ;;  %353 = vrot.lane.b32.xlu0 %v7194_v18, %s7109_s5 }
  0x56   : > { %359 = vrot.lane.b32.xlu1 %v7208_v22, %s7109_s5  ;;  %357 = vrot.lane.b32.xlu0 %v7212_v23, %s7109_s5 }
  0x5a   : > { %363 = vrot.lane.b32.xlu1 %v7214_v24, %s7109_s5  ;;  %361 = vrot.lane.b32.xlu0 %v7216_v25, %s7109_s5 }
  0x5e   : > { %367 = vrot.lane.b32.xlu1 %v7222_v26, %s7109_s5  ;;  %365 = vrot.lane.b32.xlu0 %v7224_v27, %s7109_s5 }
  0x62   : > { %700 = vrot.lane.b32.xlu1 %v7196_v19, %s7110_s6  ;;  %369 = vrot.lane.b32.xlu0 %v7230_v28, %s7109_s5 }
  0x66   : > { %704 = vrot.lane.b32.xlu1 %v7194_v18, %s7110_s6  ;;  %702 = vrot.lane.b32.xlu0 %v7204_v21, %s7110_s6 }
  0x6a   : > { %708 = vrot.lane.b32.xlu1 %v7212_v23, %s7110_s6  ;;  %706 = vrot.lane.b32.xlu0 %v7200_v20, %s7110_s6 }
  0x6e   : > { %712 = vrot.lane.b32.xlu1 %v7216_v25, %s7110_s6  ;;  %710 = vrot.lane.b32.xlu0 %v7208_v22, %s7110_s6 }
  0x72   : > { %716 = vrot.lane.b32.xlu1 %v7224_v27, %s7110_s6  ;;  %714 = vrot.lane.b32.xlu0 %v7214_v24, %s7110_s6 }
  0x94   : > { %v278_v29 = vpop.permute.xlu1 %277  ;;  %v274_v30 = vpop.permute.xlu0 %273 }
  0x98   : > { %v280_v31 = vpop.permute.xlu1 %279  ;;  %v276_v32 = vpop.permute.xlu0 %275 }
  0x99   : > { %v7305_v41 = vsel %vm295_vm0, %v274_v30, %v276_v32  ;;  %v7310_v44 = vsel %vm295_vm0, %v278_v29, %v280_v31  ;;  %v7334_v53 = vsel %vm295_vm0, %v276_v32, %v278_v29 }
  0x9a   : > { %10960 = vst [vmem:[#allocation11_spill] sm:$0xff] %v7310_v44 }
  0x9c   : > { %v284_v33 = vpop.permute.xlu1 %283  ;;  %v282_v34 = vpop.permute.xlu0 %281 }
  0x9d   : > { %v7315_v46 = vsel %vm295_vm0, %v282_v34, %v284_v33  ;;  %v7344_v56 = vsel %vm295_vm0, %v280_v31, %v282_v34 }
  0xa0   : > { %v288_v35 = vpop.permute.xlu1 %287  ;;  %v286_v36 = vpop.permute.xlu0 %285 }
  0xa1   : > { %v7320_v49 = vsel %vm295_vm0, %v286_v36, %v288_v35  ;;  %v7354_v59 = vsel %vm295_vm0, %v284_v33, %v286_v36 }
  0xa2   : > { %10961 = vst [vmem:[#allocation12_spill] sm:$0xff] %v7354_v59 }
  0xa4   : > { %v292_v37 = vpop.permute.xlu1 %291  ;;  %v290_v38 = vpop.permute.xlu0 %289 }
  0xa5   : > { %v7329_v52 = vsel %vm295_vm0, %v290_v38, %v292_v37  ;;  %v7364_v61 = vsel %vm295_vm0, %v288_v35, %v290_v38 }
  0xa8   : > { %v307_v39 = vpop.permute.xlu1 %306  ;;  %v7300_v40 = vpop.permute.xlu0 %293 }
  0xa9   : > { %391 = vrot.lane.b32.xlu1 %v7300_v40, %s7109_s5  ;;  %v7375_v0 = vsel %vm295_vm0, %v292_v37, %v7300_v40 }
  0xac   : > { %v311_v42 = vpop.permute.xlu1 %310  ;;  %v309_v47 = vpop.permute.xlu0 %308 }
  0xad   : > { %371 = vrot.lane.b32.xlu1 %v7305_v41, %s7109_s5  ;;  %v7339_v54 = vsel %vm328_vm1, %v309_v47, %v311_v42  ;;  %v7386_v2 = vsel %vm328_vm1, %v307_v39, %v309_v47  ;;  %v7536_v47 = vld [vmem:[#allocation2 + $0x8] ss:$48 sps:$4 sm:$0xff]  }
  0xae   : > { %10963 = vst [vmem:[#allocation14_spill] sm:$0xff] %v7386_v2  ;;  %10968 = vst [vmem:[#allocation19_spill] sm:$0xff] %v7536_v47 }
  0xb0   : > { %v315_v43 = vpop.permute.xlu1 %314  ;;  %v313_v50 = vpop.permute.xlu0 %312 }
  0xb1   : > { %375 = vrot.lane.b32.xlu1 %v7310_v44, %s7109_s5  ;;  %v7349_v57 = vsel %vm328_vm1, %v313_v50, %v315_v43  ;;  %v7393_v3 = vsel %vm328_vm1, %v311_v42, %v313_v50 }
  0xb4   : > { %v319_v45 = vpop.permute.xlu1 %318  ;;  %v317_v55 = vpop.permute.xlu0 %316 }
  0xb5   : > { %379 = vrot.lane.b32.xlu1 %v7315_v46, %s7109_s5  ;;  %v7359_v60 = vsel %vm328_vm1, %v317_v55, %v319_v45  ;;  %v7402_v5 = vsel %vm328_vm1, %v315_v43, %v317_v55 }
  0xb6   : > { %10962 = vst [vmem:[#allocation13_spill] sm:$0xff] %v7359_v60 }
  0xb8   : > { %v323_v48 = vpop.permute.xlu1 %322  ;;  %v321_v58 = vpop.permute.xlu0 %320 }
  0xb9   : > { %383 = vrot.lane.b32.xlu1 %v7320_v49, %s7109_s5  ;;  %v7369_v62 = vsel %vm328_vm1, %v321_v58, %v323_v48  ;;  %v7409_v6 = vsel %vm328_vm1, %v319_v45, %v321_v58 }
  0xbc   : > { %v7324_v51 = vpop.permute.xlu1 %326  ;;  %v325_v63 = vpop.permute.xlu0 %324 }
  0xbd   : > { %413 = vrot.lane.b32.xlu0 %v7324_v51, %s7109_s5  ;;  %387 = vrot.lane.b32.xlu1 %v7329_v52, %s7109_s5  ;;  %v7381_v1 = vsel %vm328_vm1, %v325_v63, %v7324_v51  ;;  %v7418_v8 = vsel %vm328_vm1, %v323_v48, %v325_v63 }
  0xc0   : > { %v7411_v7 = vpop.permute.xlu1 %351  ;;  %v7442_v12 = vpop.permute.xlu0 %349 }
  0xc1   : > { %373 = vrot.lane.b32.xlu0 %v7334_v53, %s7109_s5  ;;  %395 = vrot.lane.b32.xlu1 %v7339_v54, %s7109_s5 }
  0xc4   : > { %v7424_v9 = vpop.permute.xlu1 %355  ;;  %v7452_v14 = vpop.permute.xlu0 %353 }
  0xc5   : > { %377 = vrot.lane.b32.xlu0 %v7344_v56, %s7109_s5  ;;  %399 = vrot.lane.b32.xlu1 %v7349_v57, %s7109_s5 }
  0xc8   : > { %v7430_v10 = vpop.permute.xlu1 %359  ;;  %v7462_v16 = vpop.permute.xlu0 %357 }
  0xc9   : > { %381 = vrot.lane.b32.xlu0 %v7354_v59, %s7109_s5  ;;  %403 = vrot.lane.b32.xlu1 %v7359_v60, %s7109_s5 }
  0xcc   : > { %v7440_v11 = vpop.permute.xlu1 %363  ;;  %v7472_v29 = vpop.permute.xlu0 %361 }
  0xcd   : > { %385 = vrot.lane.b32.xlu0 %v7364_v61, %s7109_s5  ;;  %407 = vrot.lane.b32.xlu1 %v7369_v62, %s7109_s5 }
  0xd0   : > { %v7448_v13 = vpop.permute.xlu1 %367  ;;  %v7482_v31 = vpop.permute.xlu0 %365 }
  0xd1   : > { %389 = vrot.lane.b32.xlu0 %v7375_v0, %s7109_s5  ;;  %411 = vrot.lane.b32.xlu1 %v7381_v1, %s7109_s5 }
  0xd4   : > { %v7460_v15 = vpop.permute.xlu1 %700  ;;  %v7492_v33 = vpop.permute.xlu0 %369 }
  0xd5   : > { %393 = vrot.lane.b32.xlu0 %v7386_v2, %s7109_s5  ;;  %720 = vrot.lane.b32.xlu1 %v7230_v28, %s7110_s6 }
  0xd8   : > { %v7468_v17 = vpop.permute.xlu1 %704  ;;  %v7502_v35 = vpop.permute.xlu0 %702 }
  0xd9   : > { %397 = vrot.lane.b32.xlu0 %v7393_v3, %s7109_s5  ;;  %724 = vrot.lane.b32.xlu1 %v7334_v53, %s7110_s6 }
  0xdc   : > { %v7480_v30 = vpop.permute.xlu1 %708  ;;  %v7512_v37 = vpop.permute.xlu0 %706 }
  0xdd   : > { %401 = vrot.lane.b32.xlu0 %v7402_v5, %s7109_s5  ;;  %728 = vrot.lane.b32.xlu1 %v7344_v56, %s7110_s6 }
  0xe0   : > { %v7488_v32 = vpop.permute.xlu1 %712  ;;  %v7521_v39 = vpop.permute.xlu0 %710 }
  0xe1   : > { %405 = vrot.lane.b32.xlu0 %v7409_v6, %s7109_s5  ;;  %732 = vrot.lane.b32.xlu1 %v7354_v59, %s7110_s6  ;;  %10964 = vst [vmem:[#allocation15_spill] sm:$0xff] %v7488_v32  ;;  %10966 = vst [vmem:[#allocation17_spill] sm:$0xff] %v7521_v39 }
  0xe4   : > { %v7500_v34 = vpop.permute.xlu1 %716  ;;  %v7532_v45 = vpop.permute.xlu0 %714 }
  0xe5   : > { %409 = vrot.lane.b32.xlu0 %v7418_v8, %s7109_s5  ;;  %736 = vrot.lane.b32.xlu1 %v7364_v61, %s7110_s6  ;;  %10965 = vst [vmem:[#allocation16_spill] sm:$0xff] %v7500_v34  ;;  %10967 = vst [vmem:[#allocation18_spill] sm:$0xff] %v7532_v45 }
  0xe9   : > { %718 = vrot.lane.b32.xlu0 %v7222_v26, %s7110_s6  ;;  %740 = vrot.lane.b32.xlu1 %v7375_v0, %s7110_s6 }
  0xed   : > { %722 = vrot.lane.b32.xlu0 %v7305_v41, %s7110_s6  ;;  %744 = vrot.lane.b32.xlu1 %v7386_v2, %s7110_s6 }
  0xf1   : > { %726 = vrot.lane.b32.xlu0 %v7310_v44, %s7110_s6  ;;  %748 = vrot.lane.b32.xlu1 %v7393_v3, %s7110_s6 }
  0xf5   : > { %730 = vrot.lane.b32.xlu0 %v7315_v46, %s7110_s6  ;;  %752 = vrot.lane.b32.xlu1 %v7402_v5, %s7110_s6 }
  0xf9   : > { %734 = vrot.lane.b32.xlu0 %v7320_v49, %s7110_s6  ;;  %756 = vrot.lane.b32.xlu1 %v7409_v6, %s7110_s6 }
  0xfd   : > { %738 = vrot.lane.b32.xlu0 %v7329_v52, %s7110_s6  ;;  %760 = vrot.lane.b32.xlu1 %v7418_v8, %s7110_s6 }
 0x101   : > { %742 = vrot.lane.b32.xlu0 %v7300_v40, %s7110_s6  ;;  %764 = vrot.lane.b32.xlu1 %v7324_v51, %s7110_s6 }
 0x105   : > { %746 = vrot.lane.b32.xlu0 %v7339_v54, %s7110_s6  ;;  %1055 = vrot.lane.b32.xlu1 %v7204_v21, %s7112_s7 }
 0x109   : > { %750 = vrot.lane.b32.xlu0 %v7349_v57, %s7110_s6  ;;  %1059 = vrot.lane.b32.xlu1 %v7200_v20, %s7112_s7 }
 0x10d   : > { %754 = vrot.lane.b32.xlu0 %v7359_v60, %s7110_s6  ;;  %1063 = vrot.lane.b32.xlu1 %v7208_v22, %s7112_s7 }
 0x111   : > { %758 = vrot.lane.b32.xlu0 %v7369_v62, %s7110_s6  ;;  %1067 = vrot.lane.b32.xlu1 %v7214_v24, %s7112_s7 }
 0x115   : > { %762 = vrot.lane.b32.xlu0 %v7381_v1, %s7110_s6  ;;  %1071 = vrot.lane.b32.xlu1 %v7222_v26, %s7112_s7  ;;  %v7023_v26 = vld [vmem:[#allocation2 + $0x4] ss:$48 sps:$4 sm:$0xff]  }
 0x119   : > { %1053 = vrot.lane.b32.xlu0 %v7196_v19, %s7112_s7  ;;  %1075 = vrot.lane.b32.xlu1 %v7305_v41, %s7112_s7  ;;  %v7025_v19 = vld [vmem:[#allocation2 + $0xc] ss:$48 sps:$4 sm:$0xff]  }
 0x11b   : > { %v7508_v36 = vpop.permute.xlu1 %391 }
 0x11d   : > { %1057 = vrot.lane.b32.xlu0 %v7194_v18, %s7112_s7  ;;  %1101 = vrot.lane.b32.xlu1 %v7393_v3, %s7112_s7 }
 0x11f   : > { %v7516_v38 = vpop.permute.xlu1 %371 }
 0x121   : > { %1061 = vrot.lane.b32.xlu0 %v7212_v23, %s7112_s7  ;;  %1877 = vrot.lane.b32.xlu1 %v7023_v26, %s7108_s4 }
 0x123   : > { %v7523_v42 = vpop.permute.xlu1 %375 }
 0x125   : > { %1065 = vrot.lane.b32.xlu0 %v7216_v25, %s7112_s7  ;;  %1881 = vrot.lane.b32.xlu1 %v7025_v19, %s7108_s4 }
 0x127   : > { %v7528_v43 = vpop.permute.xlu1 %379 }
 0x129   : > { %1069 = vrot.lane.b32.xlu0 %v7224_v27, %s7112_s7  ;;  %1079 = vrot.lane.b32.xlu1 %v7310_v44, %s7112_s7 }
 0x12b   : > { %v7538_v48 = vpop.permute.xlu1 %383 }
 0x12d   : > { %1073 = vrot.lane.b32.xlu0 %v7230_v28, %s7112_s7  ;;  %1845 = vrot.lane.b32.xlu1 %v7536_v47, %s7107_s30  ;;  %v7556_v28 = vld [vmem:[#allocation2 + $0x10] ss:$48 sps:$4 sm:$0xff]  }
 0x12e   : > { %10969 = vst [vmem:[#allocation20_spill] sm:$0xff] %v7556_v28 }
 0x12f   : > { %v7544_v25 = vpop.permute.xlu0 %413  ;;  %v7546_v50 = vpop.permute.xlu1 %387 }
 0x131   : > { %1099 = vrot.lane.b32.xlu0 %v7339_v54, %s7112_s7  ;;  %1103 = vrot.lane.b32.xlu1 %v7349_v57, %s7112_s7 }
 0x133   : > { %v374_v27 = vpop.permute.xlu0 %373  ;;  %v396_v55 = vpop.permute.xlu1 %395 }
 0x135   : > { %1097 = vrot.lane.b32.xlu0 %v7386_v2, %s7112_s7  ;;  %1107 = vrot.lane.b32.xlu1 %v7359_v60, %s7112_s7 }
 0x137   : > { %v378_v58 = vpop.permute.xlu0 %377  ;;  %v400_v63 = vpop.permute.xlu1 %399 }
 0x139   : > { %1879 = vrot.lane.b32.xlu0 %v7536_v47, %s7108_s4  ;;  %1883 = vrot.lane.b32.xlu1 %v7556_v28, %s7108_s4 }
 0x13b   : > { %v7562_v24 = vpop.permute.xlu0 %381  ;;  %v404_v22 = vpop.permute.xlu1 %403 }
 0x13d   : > { %1077 = vrot.lane.b32.xlu0 %v7334_v53, %s7112_s7  ;;  %1887 = vrot.lane.b32.xlu1 %v7029_v4, %s7108_s4 }
 0x13f   : > { %v7567_v20 = vpop.permute.xlu0 %385  ;;  %v7569_v21 = vpop.permute.xlu1 %407 }
 0x141   : > { %1843 = vrot.lane.b32.xlu0 %v7023_v26, %s7107_s30  ;;  %1081 = vrot.lane.b32.xlu1 %v7344_v56, %s7112_s7 }
 0x143   : > { %v7574_v47 = vpop.permute.xlu0 %389  ;;  %v7576_v44 = vpop.permute.xlu1 %411 }
 0x145   : > { %1847 = vrot.lane.b32.xlu0 %v7025_v19, %s7107_s30  ;;  %1085 = vrot.lane.b32.xlu1 %v7354_v59, %s7112_s7  ;;  %v7593_v59 = vld [vmem:[#allocation2 + $0x14] ss:$48 sps:$4 sm:$0xff]  }
 0x147   : > { %v394_v45 = vpop.permute.xlu0 %393  ;;  %v7581_v34 = vpop.permute.xlu1 %720 }
 0x148   : > { %10970 = vst [vmem:[#allocation21_spill] sm:$0xff] %v7581_v34  ;;  %v436_v19 = vsel %vm415_vm2, %v394_v45, %v396_v55  ;;  %v7605_v45 = vld [vmem:[#allocation2 + $0x1c] ss:$48 sps:$4 sm:$0xff]  }
 0x149   : > { %1105 = vrot.lane.b32.xlu0 %v7402_v5, %s7112_s7  ;;  %1849 = vrot.lane.b32.xlu1 %v7556_v28, %s7107_s30  ;;  %v427_v28 = vsel %vm415_vm2, %v374_v27, %v7523_v42 }
 0x14b   : > { %v398_v26 = vpop.permute.xlu0 %397  ;;  %v7587_v60 = vpop.permute.xlu1 %724 }
 0x14c   : > { %v437_v2 = vsel %vm415_vm2, %v396_v55, %v398_v26  ;;  %v417_v55 = vsel %vm415_vm2, %v7411_v7, %v7452_v14 }
 0x14d   : > { %1109 = vrot.lane.b32.xlu0 %v7409_v6, %s7112_s7  ;;  %490 = vmatprep.subr.bf16.mxu0 %v437_v2  ;;  %v426_v2 = vsel %vm415_vm2, %v7516_v38, %v374_v27  ;;  %v416_v38 = vsel %vm415_vm2, %v7442_v12, %v7411_v7  ;;  %v7625_v27 = vld [vmem:[%s10914_s1 + $0x8] sm:$0xff]   ;;  %v419_v7 = vsel %vm415_vm2, %v7424_v9, %v7462_v16 }
 0x14e   : > { %1853 = vrot.lane.b32.xlu1 %v7029_v4, %s7107_s30  ;;  %491 = vmatpush1.bf16.msra.mxu0 %v436_v19  ;;  %v438_v4 = vsel %vm415_vm2, %v398_v26, %v400_v63 }
 0x14f   : > { %492 = vmatprep.subr.bf16.mxu0 %v427_v28  ;;  %v402_v34 = vpop.permute.xlu0 %401  ;;  %v7598_v39 = vpop.permute.xlu1 %728 }
 0x150   : > { %v439_v32 = vsel %vm415_vm2, %v400_v63, %v402_v34  ;;  %v428_v63 = vsel %vm415_vm2, %v7523_v42, %v378_v58  ;;  %v440_v42 = vsel %vm415_vm2, %v402_v34, %v404_v22  ;;  %v10971_v34 = vmov 0  }
 0x151   : > { %1885 = vrot.lane.b32.xlu0 %v7593_v59, %s7108_s4  ;;  %533 = vmatprep.subr.bf16.mxu1 %v439_v32  ;;  %v429_v32 = vsel %vm415_vm2, %v378_v58, %v7528_v43  ;;  %v418_v58 = vsel %vm415_vm2, %v7452_v14, %v7424_v9  ;;  %v430_v9 = vsel %vm415_vm2, %v7528_v43, %v7562_v24 }
 0x152   : > { %1111 = vrot.lane.b32.xlu1 %v7369_v62, %s7112_s7  ;;  %493 = vmatpush1.bf16.msra.mxu0 %v426_v2  ;;  %v7034_v2 = vld [vmem:[#allocation2 + $0x20] ss:$48 sps:$4 sm:$0xff]   ;;  %v423_v43 = vsel %vm415_vm2, %v7440_v11, %v7482_v31 }
 0x153   : > { %534 = vmatpush1.bf16.msra.mxu1 %v438_v4  ;;  %494 = vmatprep.subr.bf16.mxu0 %v417_v55  ;;  %v406_v28 = vpop.permute.xlu0 %405  ;;  %v7615_v19 = vpop.permute.xlu1 %732  ;;  %v431_v55 = vsel %vm415_vm2, %v7562_v24, %v7538_v48  ;;  %v432_v24 = vsel %vm415_vm2, %v7538_v48, %v7567_v20 }
 0x154   : > { %535 = vmatprep.subr.bf16.mxu1 %v429_v32  ;;  %v441_v26 = vsel %vm415_vm2, %v404_v22, %v406_v28  ;;  %v7036_v32 = vld [vmem:[#allocation2 + $0x28] ss:$48 sps:$4 sm:$0xff]   ;;  %v442_v14 = vsel %vm415_vm2, %v406_v28, %v7569_v21  ;;  %v445_v28 = vsel %vm415_vm2, %v7576_v44, %v7544_v25 }
 0x155   : > { %1889 = vrot.lane.b32.xlu0 %v7605_v45, %s7108_s4 }
 0x156   : > { %1115 = vrot.lane.b32.xlu1 %v7381_v1, %s7112_s7  ;;  %495 = vmatpush1.bf16.msra.mxu0 %v416_v38 }
 0x157   : > { %536 = vmatpush1.bf16.msra.mxu1 %v428_v63  ;;  %576 = vmatprep.subr.bf16.mxu0 %v441_v26  ;;  %v410_v12 = vpop.permute.xlu0 %409  ;;  %v7635_v4 = vpop.permute.xlu1 %736  ;;  %v421_v26 = vsel %vm415_vm2, %v7430_v10, %v7472_v29 }
 0x158   : > { %537 = vmatprep.subr.bf16.mxu1 %v419_v7  ;;  %v443_v38 = vsel %vm415_vm2, %v7569_v21, %v410_v12  ;;  %v433_v7 = vsel %vm415_vm2, %v7567_v20, %v7546_v50  ;;  %v420_v21 = vsel %vm415_vm2, %v7462_v16, %v7430_v10  ;;  %v422_v20 = vsel %vm415_vm2, %v7472_v29, %v7440_v11 }
 0x159   : > { %1083 = vrot.lane.b32.xlu0 %v7315_v46, %s7112_s7  ;;  %6825 = vmatmul.mubr.msk.bf16.vlgmr.msra.gmra.mxu0 %vm476_vm3, %v7625_v27  ;;  %v444_v10 = vsel %vm415_vm2, %v410_v12, %v7576_v44  ;;  %v435_v16 = vsel %vm415_vm2, %v7574_v47, %v7508_v36  ;;  %v434_v44 = vsel %vm415_vm2, %v7546_v50, %v7574_v47  ;;  %v7742_v12 = vld [vmem:[#allocation2 + $0x2c] ss:$48 sps:$4 sm:$0xff]  }
 0x15a   : > { %1891 = vrot.lane.b32.xlu1 %v7034_v2, %s7108_s4  ;;  %577 = vmatpush1.bf16.msra.mxu0 %v440_v42  ;;  %v425_v11 = vsel %vm415_vm2, %v7448_v13, %v7492_v33  ;;  %v424_v47 = vsel %vm415_vm2, %v7482_v31, %v7448_v13 }
 0x15b   : > { %538 = vmatpush1.bf16.msra.mxu1 %v418_v58  ;;  %578 = vmatprep.subr.bf16.mxu0 %v431_v55  ;;  %v7651_v63 = vpop.permute.xlu0 %718  ;;  %v7653_v22 = vpop.permute.xlu1 %740 }
 0x15c   : > { %619 = vmatprep.subr.bf16.mxu1 %v443_v38  ;;  %598 = vmatprep.mubr.bf16.mxu0 %v10971_v34 }
 0x15d   : > { %1087 = vrot.lane.b32.xlu0 %v7320_v49, %s7112_s7 }
 0x15e   : > { %1895 = vrot.lane.b32.xlu1 %v7036_v32, %s7108_s4  ;;  %6826 = vmatmul.mubr.msk.bf16.vlgmr.msra.gmra.mxu1 %vm476_vm3, %v7625_v27 }
 0x15f   : > { %579 = vmatpush1.bf16.msra.mxu0 %v430_v9  ;;  %620 = vmatpush1.bf16.msra.mxu1 %v442_v14  ;;  %v7672_v42 = vpop.permute.xlu0 %722  ;;  %v745_v58 = vpop.permute.xlu1 %744 }
 0x160   : > { %580 = vmatprep.subr.bf16.mxu0 %v421_v26  ;;  %621 = vmatprep.subr.bf16.mxu1 %v433_v7 }
 0x161   : > { %1851 = vrot.lane.b32.xlu0 %v7593_v59, %s7107_s30  ;;  %641 = vmatprep.mubr.bf16.mxu1 %v10971_v34 }
 0x162   : > { %1089 = vrot.lane.b32.xlu1 %v7364_v61, %s7112_s7 }
 0x163   : > { %581 = vmatpush1.bf16.msra.mxu0 %v420_v21  ;;  %622 = vmatpush1.bf16.msra.mxu1 %v432_v24  ;;  %v7691_v55 = vpop.permute.xlu0 %726  ;;  %v749_v38 = vpop.permute.xlu1 %748  ;;  %v777_v21 = vsel %vm766_vm4, %v7672_v42, %v7587_v60  ;;  %v7796_v42 = vld [vmem:[%s10914_s1] sm:$0xff]  }
 0x164   : > { %623 = vmatprep.subr.bf16.mxu1 %v423_v43  ;;  %662 = vmatprep.subr.bf16.mxu0 %v445_v28  ;;  %v779_v28 = vsel %vm766_vm4, %v7691_v55, %v7598_v39 }
 0x165   : > { %1855 = vrot.lane.b32.xlu0 %v7605_v45, %s7107_s30 }
 0x166   : > { %1093 = vrot.lane.b32.xlu1 %v7375_v0, %s7112_s7  ;;  %6827 = vmatmul.mubr.msk.bf16.vlgmr.msra.gmra.mxu0 %vm476_vm3, %v7625_v27 }
 0x167   : > { %624 = vmatpush1.bf16.msra.mxu1 %v422_v20  ;;  %663 = vmatpush1.bf16.msra.mxu0 %v444_v10  ;;  %v7707_v48 = vpop.permute.xlu0 %730  ;;  %v7709_v25 = vpop.permute.xlu1 %752 }
 0x168   : > { %664 = vmatprep.subr.bf16.mxu0 %v435_v16  ;;  %684 = vmatprep.mubr.bf16.mxu0 %v10971_v34  ;;  %v780_v24 = vsel %vm766_vm4, %v7598_v39, %v7707_v48  ;;  %v769_v39 = vsel %vm766_vm4, %v7468_v17, %v7512_v37 }
 0x169   : > { %1113 = vrot.lane.b32.xlu0 %v7418_v8, %s7112_s7 }
 0x16a   : > { %1857 = vrot.lane.b32.xlu1 %v7034_v2, %s7107_s30  ;;  %6828 = vmatmul.mubr.msk.bf16.vlgmr.msra.gmra.mxu1 %vm476_vm3, %v7625_v27  ;;  %v7730_v2 = vld [vmem:[#allocation2 + $0x24] ss:$48 sps:$4 sm:$0xff]  }
 0x16b   : > { %665 = vmatpush1.bf16.msra.mxu0 %v434_v44  ;;  %v7723_v29 = vpop.permute.xlu0 %734  ;;  %862 = vmatprep.mubr.bf16.mxu1 %v10971_v34  ;;  %v7726_v36 = vpop.permute.xlu1 %756 }
 0x16c   : > { %666 = vmatprep.subr.bf16.mxu0 %v425_v11 }
 0x16d   : > { %1117 = vrot.lane.b32.xlu0 %v7324_v51, %s7112_s7 }
 0x16e   : > { %1861 = vrot.lane.b32.xlu1 %v7036_v32, %s7107_s30 }
 0x16f   : > { %667 = vmatpush1.bf16.msra.mxu0 %v424_v47  ;;  %v7736_v33 = vpop.permute.xlu0 %738  ;;  %v7738_v50 = vpop.permute.xlu1 %760  ;;  %v783_v47 = vsel %vm766_vm4, %v7723_v29, %v7635_v4 }
 0x171   : > { %1893 = vrot.lane.b32.xlu0 %v7730_v2, %s7108_s4 }
 0x172   : > { %1474 = vrot.lane.b32.xlu1 %v7393_v3, %s7113_s10  ;;  %6829 = vmatmul.mubr.msk.bf16.vlgmr.msra.gmra.mxu0 %vm476_vm3, %v7625_v27 }
 0x173   : > { %v7748_v32 = vpop.permute.xlu0 %742  ;;  %905 = vmatprep.mubr.bf16.mxu0 %v10971_v34  ;;  %v7751_v13 = vpop.permute.xlu1 %764 }
 0x175   : > { %1897 = vrot.lane.b32.xlu0 %v7742_v12, %s7108_s4 }
 0x176   : > { %1478 = vrot.lane.b32.xlu1 %v7402_v5, %s7113_s10  ;;  %v778_v5 = vsel %vm766_vm4, %v7587_v60, %v7691_v55  ;;  %v782_v55 = vsel %vm766_vm4, %v7615_v19, %v7723_v29 }
 0x177   : > { %v747_v31 = vpop.permute.xlu0 %746  ;;  %v7757_v9 = vpop.permute.xlu1 %1055 }
 0x178   : > { %v788_v3 = vsel %vm766_vm4, %v747_v31, %v749_v38  ;;  %v787_v27 = vsel %vm766_vm4, %v745_v58, %v747_v31  ;;  %v10976_v31 = vld [vmem:[#allocation16_spill] sm:$0xff] }
 0x179   : > { %1091 = vrot.lane.b32.xlu0 %v7329_v52, %s7112_s7  ;;  %840 = vmatprep.subr.bf16.mxu1 %v788_v3  ;;  %v10977_v3 = vld [vmem:[#allocation18_spill] sm:$0xff] }
 0x17a   : > { %1450 = vrot.lane.b32.xlu1 %v7334_v53, %s7113_s10  ;;  %841 = vmatpush1.bf16.msra.mxu1 %v787_v27  ;;  %v768_v53 = vsel %vm766_vm4, %v7502_v35, %v7468_v17  ;;  %v774_v27 = vsel %vm766_vm4, %v10977_v3, %v10976_v31 }
 0x17b   : > { %842 = vmatprep.subr.bf16.mxu1 %v778_v5  ;;  %v751_v14 = vpop.permute.xlu0 %750  ;;  %v7768_v26 = vpop.permute.xlu1 %1059 }
 0x17c   : > { %v790_v7 = vsel %vm766_vm4, %v751_v14, %v7709_v25  ;;  %v789_v58 = vsel %vm766_vm4, %v749_v38, %v751_v14 }
 0x17d   : > { %1095 = vrot.lane.b32.xlu0 %v7300_v40, %s7112_s7  ;;  %883 = vmatprep.subr.bf16.mxu0 %v790_v7 }
 0x17e   : > { %1454 = vrot.lane.b32.xlu1 %v7344_v56, %s7113_s10  ;;  %843 = vmatpush1.bf16.msra.mxu1 %v777_v21  ;;  %v767_v56 = vsel %vm766_vm4, %v7460_v15, %v7502_v35  ;;  %v770_v15 = vsel %vm766_vm4, %v7512_v37, %v7480_v30  ;;  %v10972_v37 = vld [vmem:[#allocation15_spill] sm:$0xff] }
 0x17f   : > { %884 = vmatpush1.bf16.msra.mxu0 %v789_v58  ;;  %844 = vmatprep.subr.bf16.mxu1 %v768_v53  ;;  %v755_v43 = vpop.permute.xlu0 %754  ;;  %v7786_v60 = vpop.permute.xlu1 %1063 }
 0x180   : > { %885 = vmatprep.subr.bf16.mxu0 %v780_v24  ;;  %v792_v38 = vsel %vm766_vm4, %v755_v43, %v7726_v36 }
 0x181   : > { %1859 = vrot.lane.b32.xlu0 %v7730_v2, %s7107_s30 }
 0x182   : > { %1448 = vrot.lane.b32.xlu1 %v7305_v41, %s7113_s10  ;;  %845 = vmatpush1.bf16.msra.mxu1 %v767_v56  ;;  %v791_v41 = vsel %vm766_vm4, %v7709_v25, %v755_v43  ;;  %v10973_v25 = vld [vmem:[#allocation17_spill] sm:$0xff]  ;;  %v10981_v43 = vld [vmem:[#allocation8_spill] sm:$0xff] }
 0x183   : > { %886 = vmatpush1.bf16.msra.mxu0 %v779_v28  ;;  %926 = vmatprep.subr.bf16.mxu1 %v792_v38  ;;  %v759_v35 = vpop.permute.xlu0 %758  ;;  %v7808_v20 = vpop.permute.xlu1 %1067  ;;  %v772_v44 = vsel %vm766_vm4, %v10973_v25, %v10972_v37  ;;  %v10982_v28 = vld [vmem:[#allocation7_spill] sm:$0xff]  ;;  %v10983_v38 = vld [vmem:[#allocation9_spill] sm:$0xff] }
 0x184   : > { %887 = vmatprep.subr.bf16.mxu0 %v770_v15  ;;  %v793_v17 = vsel %vm766_vm4, %v7726_v36, %v759_v35  ;;  %v771_v36 = vsel %vm766_vm4, %v7480_v30, %v10973_v25  ;;  %v10978_v30 = vld [vmem:[#allocation11_spill] sm:$0xff] }
 0x185   : > { %1472 = vrot.lane.b32.xlu0 %v7339_v54, %s7113_s10  ;;  %6831 = vmatmul.mubr.msk.bf16.vlgmr.msra.gmra.mxu1 %vm476_vm3, %v7796_v42  ;;  %v794_v54 = vsel %vm766_vm4, %v759_v35, %v7738_v50  ;;  %v10984_v35 = vld [vmem:[#allocation10_spill] sm:$0xff] }
 0x186   : > { %1430 = vrot.lane.b32.xlu1 %v7194_v18, %s7113_s10  ;;  %927 = vmatpush1.bf16.msra.mxu1 %v791_v41  ;;  %v781_v18 = vsel %vm766_vm4, %v7707_v48, %v7615_v19  ;;  %v10974_v19 = vld [vmem:[#allocation14_spill] sm:$0xff]  ;;  %v10975_v48 = vld [vmem:[#allocation13_spill] sm:$0xff] }
 0x187   : > { %888 = vmatpush1.bf16.msra.mxu0 %v769_v39  ;;  %928 = vmatprep.subr.bf16.mxu1 %v782_v55  ;;  %v763_v10 = vpop.permute.xlu0 %762  ;;  %v7826_v16 = vpop.permute.xlu1 %1071 }
 0x188   : > { %969 = vmatprep.subr.bf16.mxu0 %v794_v54  ;;  %948 = vmatprep.mubr.bf16.mxu1 %v10971_v34  ;;  %v796_v5 = vsel %vm766_vm4, %v763_v10, %v7751_v13  ;;  %v795_v29 = vsel %vm766_vm4, %v7738_v50, %v763_v10  ;;  %v786_v13 = vsel %vm766_vm4, %v7653_v22, %v7748_v32  ;;  %v10980_v32 = vld [vmem:[#allocation21_spill] sm:$0xff] }
 0x189   : > { %1476 = vrot.lane.b32.xlu0 %v7349_v57, %s7113_s10  ;;  %v785_v50 = vsel %vm766_vm4, %v7736_v33, %v7653_v22  ;;  %v776_v53 = vsel %vm766_vm4, %v7651_v63, %v10980_v32  ;;  %v775_v22 = vsel %vm766_vm4, %v10976_v31, %v7651_v63  ;;  %v7926_v63 = vld [vmem:[#allocation2] ss:$48 sps:$4 sm:$0xff]  }
 0x18a   : > { %1434 = vrot.lane.b32.xlu1 %v7212_v23, %s7113_s10  ;;  %6832 = vmatmul.mubr.msk.bf16.vlgmr.msra.gmra.mxu0 %vm476_vm3, %v7796_v42  ;;  %v784_v23 = vsel %vm766_vm4, %v7635_v4, %v7736_v33  ;;  %v773_v4 = vsel %vm766_vm4, %v10972_v37, %v10977_v3  ;;  %v7980_v31 = vld [vmem:[#allocation2 + $0x20] ss:$48 sps:$4 sm:$0xff]  }
 0x18b   : > { %929 = vmatpush1.bf16.msra.mxu1 %v781_v18  ;;  %970 = vmatpush1.bf16.msra.mxu0 %v793_v17  ;;  %v7846_v57 = vpop.permute.xlu0 %1053  ;;  %v7848_v11 = vpop.permute.xlu1 %1075 }
 0x18c   : > { %930 = vmatprep.subr.bf16.mxu1 %v772_v44  ;;  %971 = vmatprep.subr.bf16.mxu0 %v784_v23 }
 0x18d   : > { %1470 = vrot.lane.b32.xlu0 %v10974_v19, %s7113_s10  ;;  %991 = vmatprep.mubr.bf16.mxu0 %v10971_v34  ;;  %v7962_v19 = vld [vmem:[#allocation2 + $0x18] ss:$48 sps:$4 sm:$0xff]  }
 0x18e   : > { %1480 = vrot.lane.b32.xlu1 %v10975_v48, %s7113_s10 }
 0x18f   : > { %931 = vmatpush1.bf16.msra.mxu1 %v771_v36  ;;  %972 = vmatpush1.bf16.msra.mxu0 %v783_v47  ;;  %v7866_v14 = vpop.permute.xlu0 %1057  ;;  %v7868_v7 = vpop.permute.xlu1 %1101 }
 0x190   : > { %973 = vmatprep.subr.bf16.mxu0 %v774_v27  ;;  %1012 = vmatprep.subr.bf16.mxu1 %v796_v5 }
 0x191   : > { %1452 = vrot.lane.b32.xlu0 %v10978_v30, %s7113_s10 }
 0x192   : > { %1484 = vrot.lane.b32.xlu1 %v7369_v62, %s7113_s10  ;;  %6833 = vmatmul.mubr.msk.bf16.vlgmr.msra.gmra.mxu1 %vm476_vm3, %v7796_v42  ;;  %v10979_v62 = vld [vmem:[#allocation12_spill] sm:$0xff] }
 0x193   : > { %974 = vmatpush1.bf16.msra.mxu0 %v773_v4  ;;  %1013 = vmatpush1.bf16.msra.mxu1 %v795_v29  ;;  %v7884_v58 = vpop.permute.xlu0 %1061  ;;  %v1878_v21 = vpop.permute.xlu1 %1877 }
 0x194   : > { %1014 = vmatprep.subr.bf16.mxu1 %v786_v13  ;;  %1034 = vmatprep.mubr.bf16.mxu1 %v10971_v34 }
 0x195   : > { %1456 = vrot.lane.b32.xlu0 %v7315_v46, %s7113_s10 }
 0x196   : > { %1458 = vrot.lane.b32.xlu1 %v10979_v62, %s7113_s10  ;;  %6834 = vmatmul.mubr.msk.bf16.vlgmr.msra.gmra.mxu0 %vm476_vm3, %v7796_v42 }
 0x197   : > { %1015 = vmatpush1.bf16.msra.mxu1 %v785_v50  ;;  %v7899_v24 = vpop.permute.xlu0 %1065  ;;  %1215 = vmatprep.mubr.bf16.mxu0 %v10971_v34  ;;  %v7902_v46 = vpop.permute.xlu1 %1881 }
 0x198   : > { %1016 = vmatprep.subr.bf16.mxu1 %v776_v53 }
 0x199   : > { %1428 = vrot.lane.b32.xlu0 %v10981_v43, %s7113_s10 }
 0x19a   : > { %1462 = vrot.lane.b32.xlu1 %v7364_v61, %s7113_s10 }
 0x19b   : > { %1017 = vmatpush1.bf16.msra.mxu1 %v775_v22  ;;  %v7911_v33 = vpop.permute.xlu0 %1069  ;;  %v7913_v56 = vpop.permute.xlu1 %1079 }
 0x19d   : > { %1432 = vrot.lane.b32.xlu0 %v10982_v28, %s7113_s10 }
 0x19e   : > { %1436 = vrot.lane.b32.xlu1 %v10983_v38, %s7113_s10  ;;  %6835 = vmatmul.mubr.msk.bf16.vlgmr.msra.gmra.mxu1 %vm476_vm3, %v7796_v42  ;;  %v1123_v38 = vsel %vm1119_vm5, %v7768_v26, %v7884_v58 }
 0x19f   : > { %v7921_v15 = vpop.permute.xlu0 %1073  ;;  %1258 = vmatprep.mubr.bf16.mxu1 %v10971_v34  ;;  %v7924_v61 = vpop.permute.xlu1 %1845 }
 0x1a1   : > { %1426 = vrot.lane.b32.xlu0 %v7926_v63, %s7113_s10 }
 0x1a2   : > { %1440 = vrot.lane.b32.xlu1 %v10984_v35, %s7113_s10 }
 0x1a3   : > { %v1100_v41 = vpop.permute.xlu0 %1099  ;;  %v1104_v39 = vpop.permute.xlu1 %1103 }
 0x1a4   : > { %v1141_v42 = vsel %vm1119_vm5, %v1100_v41, %v7868_v7  ;;  %v1142_v3 = vsel %vm1119_vm5, %v7868_v7, %v1104_v39 }
 0x1a5   : > { %1482 = vrot.lane.b32.xlu0 %v7409_v6, %s7113_s10  ;;  %1193 = vmatprep.subr.bf16.mxu0 %v1141_v42  ;;  %v8058_v42 = vld [vmem:[#allocation2 + $0x24] ss:$48 sps:$4 sm:$0xff]  }
 0x1a6   : > { %1488 = vrot.lane.b32.xlu1 %v7381_v1, %s7113_s10 }
 0x1a7   : > { %v1098_v55 = vpop.permute.xlu0 %1097  ;;  %v1108_v54 = vpop.permute.xlu1 %1107 }
 0x1a8   : > { %v1140_v10 = vsel %vm1119_vm5, %v1098_v55, %v1100_v41 }
 0x1a9   : > { %1486 = vrot.lane.b32.xlu0 %v7418_v8, %s7113_s10  ;;  %1194 = vmatpush1.bf16.msra.mxu0 %v1140_v10 }
 0x1ab   : > { %v1880_v18 = vpop.permute.xlu0 %1879  ;;  %v7941_v17 = vpop.permute.xlu1 %1883 }
 0x1ac   : > { %v7944_v37 = vsel %vm328_vm1, %v1878_v21, %v1880_v18  ;;  %v8002_v5 = vsel %vm328_vm1, %v1880_v18, %v7902_v46  ;;  %v8021_v50 = vsel %vm328_vm1, %v7902_v46, %v7941_v17 }
 0x1ad   : > { %1460 = vrot.lane.b32.xlu0 %v7320_v49, %s7113_s10  ;;  %1963 = vrot.lane.b32.xlu1 %v7944_v37, %s7114_s14  ;;  %v1121_v49 = vsel %vm1119_vm5, %v7757_v9, %v7866_v14 }
 0x1af   : > { %v1078_v1 = vpop.permute.xlu0 %1077  ;;  %v7950_v6 = vpop.permute.xlu1 %1887 }
 0x1b0   : > { %v1131_v8 = vsel %vm1119_vm5, %v1078_v1, %v7913_v56  ;;  %v1130_v25 = vsel %vm1119_vm5, %v7848_v11, %v1078_v1  ;;  %v7974_v11 = vld [vmem:[%s10914_s1 + $0x10] sm:$0xff]  }
 0x1b1   : > { %1464 = vrot.lane.b32.xlu0 %v7329_v52, %s7113_s10  ;;  %1961 = vrot.lane.b32.xlu1 %v1878_v21, %s7114_s14  ;;  %v1120_v52 = vsel %vm1119_vm5, %v7846_v57, %v7757_v9  ;;  %v7061_v21 = vld [vmem:[#allocation2 + $0x8] ss:$48 sps:$4 sm:$0xff]  }
 0x1b2   : > { %1195 = vmatprep.subr.bf16.mxu0 %v1131_v8  ;;  %v7063_v8 = vld [vmem:[#allocation2 + $0x4] ss:$48 sps:$4 sm:$0xff]  }
 0x1b3   : > { %1196 = vmatpush1.bf16.msra.mxu0 %v1130_v25  ;;  %v1844_v44 = vpop.permute.xlu0 %1843  ;;  %v1082_v23 = vpop.permute.xlu1 %1081 }
 0x1b4   : > { %1197 = vmatprep.subr.bf16.mxu0 %v1121_v49  ;;  %v8025_v32 = vsel %vm295_vm0, %v1844_v44, %v7924_v61  ;;  %v1132_v28 = vsel %vm1119_vm5, %v7913_v56, %v1082_v23  ;;  %v1122_v56 = vsel %vm1119_vm5, %v7866_v14, %v7768_v26  ;;  %v1124_v26 = vsel %vm1119_vm5, %v7884_v58, %v7786_v60  ;;  %v7064_v49 = vld [vmem:[#allocation2 + $0xc] ss:$48 sps:$4 sm:$0xff]  }
 0x1b5   : > { %1438 = vrot.lane.b32.xlu0 %v7962_v19, %s7113_s10  ;;  %1468 = vrot.lane.b32.xlu1 %v7300_v40, %s7113_s10 }
 0x1b7   : > { %1198 = vmatpush1.bf16.msra.mxu0 %v1120_v52  ;;  %v1848_v48 = vpop.permute.xlu0 %1847  ;;  %v1086_v36 = vpop.permute.xlu1 %1085 }
 0x1b8   : > { %v7978_v47 = vsel %vm295_vm0, %v7924_v61, %v1848_v48 }
 0x1b9   : > { %1442 = vrot.lane.b32.xlu0 %v7980_v31, %s7113_s10  ;;  %1943 = vrot.lane.b32.xlu1 %v7978_v47, %s7114_s14 }
 0x1ba   : > { %6839 = vmatmul.mubr.msk.bf16.vlgmr.msra.gmra.mxu0 %vm476_vm3, %v7974_v11 }
 0x1bb   : > { %v1106_v40 = vpop.permute.xlu0 %1105  ;;  %1301 = vmatprep.mubr.bf16.mxu0 %v10971_v34  ;;  %v7989_v9 = vpop.permute.xlu1 %1849 }
 0x1bc   : > { %v1143_v57 = vsel %vm1119_vm5, %v1104_v39, %v1106_v40  ;;  %v1144_v7 = vsel %vm1119_vm5, %v1106_v40, %v1108_v54  ;;  %v8052_v35 = vsel %vm295_vm0, %v1848_v48, %v7989_v9 }
 0x1bd   : > { %1490 = vrot.lane.b32.xlu0 %v7324_v51, %s7113_s10  ;;  %2282 = vrot.lane.b32.xlu1 %v7742_v12, %s7107_s30  ;;  %v8010_v51 = vld [vmem:[#allocation2 + $0x28] ss:$48 sps:$4 sm:$0xff]  }
 0x1be   : > { %1236 = vmatprep.subr.bf16.mxu1 %v1143_v57 }
 0x1bf   : > { %1237 = vmatpush1.bf16.msra.mxu1 %v1142_v3  ;;  %v7998_v27 = vpop.permute.xlu0 %1109 }
 0x1c0   : > { %v8004_v30 = vpop.permute.xlu1 %1853  ;;  %v1145_v4 = vsel %vm1119_vm5, %v1108_v54, %v7998_v27  ;;  %v1125_v54 = vsel %vm1119_vm5, %v7786_v60, %v7899_v24 }
 0x1c1   : > { %1965 = vrot.lane.b32.xlu0 %v8002_v5, %s7114_s14  ;;  %1446 = vrot.lane.b32.xlu1 %v8010_v51, %s7113_s10 }
 0x1c2   : > { %1279 = vmatprep.subr.bf16.mxu0 %v1145_v4 }
 0x1c3   : > { %1280 = vmatpush1.bf16.msra.mxu0 %v1144_v7  ;;  %v1886_v29 = vpop.permute.xlu0 %1885 }
 0x1c4   : > { %v1112_v13 = vpop.permute.xlu1 %1111  ;;  %v8035_v43 = vsel %vm328_vm1, %v1886_v29, %v7950_v6  ;;  %v8092_v60 = vsel %vm328_vm1, %v7941_v17, %v1886_v29 }
 0x1c5   : > { %1466 = vrot.lane.b32.xlu0 %v7375_v0, %s7113_s10  ;;  %1921 = vrot.lane.b32.xlu1 %v7061_v21, %s7114_s14  ;;  %10985 = vst [vmem:[#allocation15_spill] sm:$0xff] %v8092_v60  ;;  %v1146_v52 = vsel %vm1119_vm5, %v7998_v27, %v1112_v13 }
 0x1c7   : > { %v1890_v62 = vpop.permute.xlu0 %1889 }
 0x1c8   : > { %v8027_v53 = vpop.permute.xlu1 %1115  ;;  %v8104_v17 = vsel %vm328_vm1, %v7950_v6, %v1890_v62 }
 0x1c9   : > { %1941 = vrot.lane.b32.xlu0 %v8025_v32, %s7114_s14  ;;  %1967 = vrot.lane.b32.xlu1 %v8021_v50, %s7114_s14 }
 0x1cb   : > { %v1084_v0 = vpop.permute.xlu0 %1083 }
 0x1cc   : > { %v8037_v22 = vpop.permute.xlu1 %1891  ;;  %v1133_v46 = vsel %vm1119_vm5, %v1082_v23, %v1084_v0  ;;  %v1134_v55 = vsel %vm1119_vm5, %v1084_v0, %v1086_v36 }
 0x1cd   : > { %1939 = vrot.lane.b32.xlu0 %v1844_v44, %s7114_s14  ;;  %1971 = vrot.lane.b32.xlu1 %v8035_v43, %s7114_s14 }
 0x1ce   : > { %1238 = vmatprep.subr.bf16.mxu1 %v1133_v46  ;;  %v7066_v46 = vld [vmem:[#allocation2 + $0x10] ss:$48 sps:$4 sm:$0xff]  }
 0x1cf   : > { %1239 = vmatpush1.bf16.msra.mxu1 %v1132_v28  ;;  %v8048_v61 = vpop.permute.xlu0 %1087  ;;  %v1127_v28 = vsel %vm1119_vm5, %v7808_v20, %v7911_v33 }
 0x1d0   : > { %v8054_v41 = vpop.permute.xlu1 %1895  ;;  %1240 = vmatprep.subr.bf16.mxu1 %v1123_v38  ;;  %v1135_v39 = vsel %vm1119_vm5, %v1086_v36, %v8048_v61  ;;  %v8108_v36 = vsel %vm328_vm1, %v1890_v62, %v8037_v22 }
 0x1d1   : > { %1444 = vrot.lane.b32.xlu0 %v8058_v42, %s7113_s10  ;;  %1945 = vrot.lane.b32.xlu1 %v8052_v35, %s7114_s14 }
 0x1d2   : > { %1281 = vmatprep.subr.bf16.mxu0 %v1135_v39 }
 0x1d3   : > { %1241 = vmatpush1.bf16.msra.mxu1 %v1122_v56  ;;  %1282 = vmatpush1.bf16.msra.mxu0 %v1134_v55  ;;  %v1852_v10 = vpop.permute.xlu0 %1851  ;;  %v1126_v55 = vsel %vm1119_vm5, %v7899_v24, %v7808_v20  ;;  %v1128_v20 = vsel %vm1119_vm5, %v7911_v33, %v7826_v16 }
 0x1d4   : > { %v1090_v18 = vpop.permute.xlu1 %1089  ;;  %1283 = vmatprep.subr.bf16.mxu0 %v1125_v54  ;;  %v8073_v1 = vsel %vm295_vm0, %v1852_v10, %v8004_v30  ;;  %v8122_v27 = vsel %vm295_vm0, %v7989_v9, %v1852_v10  ;;  %v1129_v54 = vsel %vm1119_vm5, %v7826_v16, %v7921_v15  ;;  %v7067_v16 = vld [vmem:[#allocation2 + $0x1c] ss:$48 sps:$4 sm:$0xff]  }
 0x1d5   : > { %1919 = vrot.lane.b32.xlu0 %v7063_v8, %s7114_s14  ;;  %1949 = vrot.lane.b32.xlu1 %v8073_v1, %s7114_s14 }
 0x1d6   : > { %6840 = vmatmul.mubr.msk.bf16.vlgmr.msra.gmra.mxu1 %vm476_vm3, %v7974_v11 }
 0x1d7   : > { %1284 = vmatpush1.bf16.msra.mxu0 %v1124_v26  ;;  %v1856_v14 = vpop.permute.xlu0 %1855  ;;  %1344 = vmatprep.mubr.bf16.mxu1 %v10971_v34 }
 0x1d8   : > { %v1094_v25 = vpop.permute.xlu1 %1093 }
 0x1d9   : > { %1917 = vrot.lane.b32.xlu0 %v7926_v63, %s7114_s14  ;;  %1923 = vrot.lane.b32.xlu1 %v7064_v49, %s7114_s14  ;;  %v7065_v63 = vld [vmem:[#allocation2 + $0x14] ss:$48 sps:$4 sm:$0xff]  }
 0x1da   : > { %6841 = vmatmul.mubr.msk.bf16.vlgmr.msra.gmra.mxu0 %vm476_vm3, %v7974_v11 }
 0x1db   : > { %v1114_v44 = vpop.permute.xlu0 %1113  ;;  %1387 = vmatprep.mubr.bf16.mxu0 %v10971_v34 }
 0x1dc   : > { %v8094_v58 = vpop.permute.xlu1 %1857  ;;  %v1147_v23 = vsel %vm1119_vm5, %v1112_v13, %v1114_v44  ;;  %v1148_v6 = vsel %vm1119_vm5, %v1114_v44, %v8027_v53  ;;  %v8136_v13 = vsel %vm295_vm0, %v8004_v30, %v1856_v14  ;;  %v1136_v30 = vsel %vm1119_vm5, %v8048_v61, %v1090_v18 }
 0x1dd   : > { %1969 = vrot.lane.b32.xlu0 %v8092_v60, %s7114_s14  ;;  %1927 = vrot.lane.b32.xlu1 %v7065_v63, %s7114_s14  ;;  %v8140_v9 = vsel %vm295_vm0, %v1856_v14, %v8094_v58 }
 0x1de   : > { %1322 = vmatprep.subr.bf16.mxu1 %v1147_v23 }
 0x1df   : > { %1323 = vmatpush1.bf16.msra.mxu1 %v1146_v52  ;;  %v1118_v48 = vpop.permute.xlu0 %1117 }
 0x1e0   : > { %v8110_v40 = vpop.permute.xlu1 %1861  ;;  %v1149_v57 = vsel %vm1119_vm5, %v8027_v53, %v1118_v48 }
 0x1e1   : > { %1973 = vrot.lane.b32.xlu0 %v8104_v17, %s7114_s14  ;;  %1975 = vrot.lane.b32.xlu1 %v8108_v36, %s7114_s14 }
 0x1e2   : > { %1365 = vmatprep.subr.bf16.mxu0 %v1149_v57 }
 0x1e3   : > { %1366 = vmatpush1.bf16.msra.mxu0 %v1148_v6  ;;  %v1894_v3 = vpop.permute.xlu0 %1893 }
 0x1e4   : > { %v1475_v4 = vpop.permute.xlu1 %1474  ;;  %v8126_v7 = vsel %vm328_vm1, %v1894_v3, %v8054_v41 }
 0x1e5   : > { %1947 = vrot.lane.b32.xlu0 %v8122_v27, %s7114_s14  ;;  %1979 = vrot.lane.b32.xlu1 %v8126_v7, %s7114_s14 }
 0x1e7   : > { %v8132_v29 = vpop.permute.xlu0 %1897 }
 0x1e8   : > { %v8142_v21 = vpop.permute.xlu1 %1478 }
 0x1e9   : > { %1951 = vrot.lane.b32.xlu0 %v8136_v13, %s7114_s14  ;;  %1953 = vrot.lane.b32.xlu1 %v8140_v9, %s7114_s14 }
 0x1eb   : > { %v1092_v62 = vpop.permute.xlu0 %1091 }
 0x1ec   : > { %v8148_v53 = vpop.permute.xlu1 %1450  ;;  %v1137_v0 = vsel %vm1119_vm5, %v1090_v18, %v1092_v62  ;;  %v1138_v61 = vsel %vm1119_vm5, %v1092_v62, %v1094_v25  ;;  %v8169_v18 = vsel %vm328_vm1, %v8037_v22, %v1894_v3  ;;  %v8188_v22 = vsel %vm328_vm1, %v8054_v41, %v8132_v29 }
 0x1ed   : > { %1925 = vrot.lane.b32.xlu0 %v7066_v46, %s7114_s14  ;;  %1324 = vmatprep.subr.bf16.mxu1 %v1137_v0 }
 0x1ee   : > { %1325 = vmatpush1.bf16.msra.mxu1 %v1136_v30 }
 0x1ef   : > { %1326 = vmatprep.subr.bf16.mxu1 %v1127_v28  ;;  %v1096_v38 = vpop.permute.xlu0 %1095 }
 0x1f0   : > { %v1455_v39 = vpop.permute.xlu1 %1454  ;;  %v1139_v56 = vsel %vm1119_vm5, %v1094_v25, %v1096_v38  ;;  %v8245_v38 = vld [vmem:[%s10914_s1 + $0x18] sm:$0xff]  }
 0x1f1   : > { %1929 = vrot.lane.b32.xlu0 %v7962_v19, %s7114_s14  ;;  %1367 = vmatprep.subr.bf16.mxu0 %v1139_v56  ;;  %v10986_v56 = vld [vmem:[#allocation19_spill] sm:$0xff] }
 0x1f2   : > { %1327 = vmatpush1.bf16.msra.mxu1 %v1126_v55  ;;  %1368 = vmatpush1.bf16.msra.mxu0 %v1138_v61 }
 0x1f3   : > { %1369 = vmatprep.subr.bf16.mxu0 %v1129_v54  ;;  %v1860_v10 = vpop.permute.xlu0 %1859  ;;  %v10987_v54 = vld [vmem:[#allocation20_spill] sm:$0xff] }
 0x1f4   : > { %v1449_v19 = vpop.permute.xlu1 %1448  ;;  %v8173_v8 = vsel %vm295_vm0, %v1860_v10, %v8110_v40  ;;  %v8199_v14 = vsel %vm295_vm0, %v8094_v58, %v1860_v10 }
 0x1f5   : > { %1977 = vrot.lane.b32.xlu0 %v8169_v18, %s7114_s14  ;;  %1957 = vrot.lane.b32.xlu1 %v8173_v8, %s7114_s14  ;;  %v1503_v52 = vsel %vm1492_vm6, %v1449_v19, %v8148_v53 }
 0x1f6   : > { %1370 = vmatpush1.bf16.msra.mxu0 %v1128_v20  ;;  %6842 = vmatmul.mubr.msk.bf16.vlgmr.msra.gmra.mxu1 %vm476_vm3, %v7974_v11 }
 0x1f7   : > { %v1473_v24 = vpop.permute.xlu0 %1472  ;;  %1588 = vmatprep.mubr.bf16.mxu1 %v10971_v34 }
 0x1f8   : > { %v1431_v15 = vpop.permute.xlu1 %1430  ;;  %v1514_v26 = vsel %vm1492_vm6, %v1473_v24, %v1475_v4 }
 0x1f9   : > { %1981 = vrot.lane.b32.xlu0 %v8188_v22, %s7114_s14  ;;  %1931 = vrot.lane.b32.xlu1 %v7067_v16, %s7114_s14 }
 0x1fa   : > { %1566 = vmatprep.subr.bf16.mxu1 %v1514_v26  ;;  %6843 = vmatmul.mubr.msk.bf16.vlgmr.msra.gmra.mxu0 %vm476_vm3, %v7974_v11 }
 0x1fb   : > { %v1477_v33 = vpop.permute.xlu0 %1476  ;;  %1631 = vmatprep.mubr.bf16.mxu0 %v10971_v34 }
 0x1fc   : > { %v8201_v41 = vpop.permute.xlu1 %1434  ;;  %v1516_v25 = vsel %vm1492_vm6, %v1477_v33, %v8142_v21  ;;  %v1515_v49 = vsel %vm1492_vm6, %v1475_v4, %v1477_v33 }
 0x1fd   : > { %1935 = vrot.lane.b32.xlu1 %v8058_v42, %s7114_s14  ;;  %1955 = vrot.lane.b32.xlu0 %v8199_v14, %s7114_s14 }
 0x1fe   : > { %1609 = vmatprep.subr.bf16.mxu0 %v1516_v25  ;;  %v8275_v25 = vld [vmem:[#allocation2 + $0xc] ss:$48 sps:$4 sm:$0xff]  }
 0x1ff   : > { %1610 = vmatpush1.bf16.msra.mxu0 %v1515_v49  ;;  %v1471_v11 = vpop.permute.xlu0 %1470 }
 0x200   : > { %v1481_v44 = vpop.permute.xlu1 %1480  ;;  %v1513_v58 = vsel %vm1492_vm6, %v1471_v11, %v1473_v24 }
 0x201   : > { %2339 = vrot.lane.b32.xlu1 %v8002_v5, %s7115_s21  ;;  %1959 = vrot.lane.b32.xlu0 %v8110_v40, %s7114_s14  ;;  %v1517_v10 = vsel %vm1492_vm6, %v8142_v21, %v1481_v44 }
 0x202   : > { %1567 = vmatpush1.bf16.msra.mxu1 %v1513_v58 }
 0x203   : > { %v1453_v23 = vpop.permute.xlu0 %1452 }
 0x204   : > { %v1485_v63 = vpop.permute.xlu1 %1484  ;;  %v1504_v42 = vsel %vm1492_vm6, %v8148_v53, %v1453_v23  ;;  %v1505_v3 = vsel %vm1492_vm6, %v1453_v23, %v1455_v39 }
 0x205   : > { %2343 = vrot.lane.b32.xlu1 %v8092_v60, %s7115_s21  ;;  %1933 = vrot.lane.b32.xlu0 %v7980_v31, %s7114_s14 }
 0x206   : > { %1568 = vmatprep.subr.bf16.mxu1 %v1504_v42 }
 0x207   : > { %1569 = vmatpush1.bf16.msra.mxu1 %v1503_v52  ;;  %v1457_v48 = vpop.permute.xlu0 %1456 }
 0x208   : > { %v1459_v57 = vpop.permute.xlu1 %1458  ;;  %v1506_v6 = vsel %vm1492_vm6, %v1455_v39, %v1457_v48 }
 0x209   : > { %2337 = vrot.lane.b32.xlu1 %v7944_v37, %s7115_s21  ;;  %1937 = vrot.lane.b32.xlu0 %v8010_v51, %s7114_s14  ;;  %v1507_v49 = vsel %vm1492_vm6, %v1457_v48, %v1459_v57 }
 0x20a   : > { %1611 = vmatprep.subr.bf16.mxu0 %v1506_v6 }
 0x20b   : > { %1612 = vmatpush1.bf16.msra.mxu0 %v1505_v3  ;;  %v1429_v31 = vpop.permute.xlu0 %1428 }
 0x20c   : > { %v1463_v4 = vpop.permute.xlu1 %1462  ;;  %v1494_v62 = vsel %vm1492_vm6, %v1429_v31, %v1431_v15 }
 0x20d   : > { %2319 = vrot.lane.b32.xlu1 %v8052_v35, %s7115_s21  ;;  %2341 = vrot.lane.b32.xlu0 %v8021_v50, %s7115_s21 }
 0x20e   : > { %1570 = vmatprep.subr.bf16.mxu1 %v1494_v62 }
 0x20f   : > { %v1433_v53 = vpop.permute.xlu0 %1432 }
 0x210   : > { %v1437_v0 = vpop.permute.xlu1 %1436  ;;  %v1496_v51 = vsel %vm1492_vm6, %v1433_v53, %v8201_v41  ;;  %v1495_v46 = vsel %vm1492_vm6, %v1431_v15, %v1433_v53  ;;  %v8265_v15 = vld [vmem:[#allocation2 + $0x4] ss:$48 sps:$4 sm:$0xff]  }
 0x211   : > { %2323 = vrot.lane.b32.xlu1 %v8073_v1, %s7115_s21  ;;  %2345 = vrot.lane.b32.xlu0 %v8035_v43, %s7115_s21  ;;  %v1497_v48 = vsel %vm1492_vm6, %v8201_v41, %v1437_v0 }
 0x212   : > { %1613 = vmatprep.subr.bf16.mxu0 %v1496_v51 }
 0x213   : > { %1614 = vmatpush1.bf16.msra.mxu0 %v1495_v46  ;;  %v1427_v30 = vpop.permute.xlu0 %1426 }
 0x214   : > { %v1493_v28 = vsel %vm1492_vm6, %v1427_v30, %v1429_v31  ;;  %v1441_v39 = vpop.permute.xlu1 %1440 }
 0x215   : > { %2295 = vrot.lane.b32.xlu1 %v10986_v56, %s7115_s21  ;;  %2317 = vrot.lane.b32.xlu0 %v7978_v47, %s7115_s21  ;;  %v8327_v56 = vld [vmem:[#allocation2 + $0x18] ss:$48 sps:$4 sm:$0xff]  }
 0x216   : > { %1571 = vmatpush1.bf16.msra.mxu1 %v1493_v28  ;;  %6848 = vmatmul.mubr.msk.bf16.vlgmr.msra.gmra.mxu0 %vm476_vm3, %v8245_v38 }
 0x217   : > { %v1483_v55 = vpop.permute.xlu0 %1482  ;;  %1717 = vmatprep.mubr.bf16.mxu0 %v10971_v34 }
 0x218   : > { %v1518_v61 = vsel %vm1492_vm6, %v1481_v44, %v1483_v55  ;;  %v1489_v19 = vpop.permute.xlu1 %1488  ;;  %v1519_v26 = vsel %vm1492_vm6, %v1483_v55, %v1485_v63 }
 0x219   : > { %2299 = vrot.lane.b32.xlu1 %v10987_v54, %s7115_s21  ;;  %2321 = vrot.lane.b32.xlu0 %v8122_v27, %s7115_s21  ;;  %v8335_v54 = vld [vmem:[#allocation2 + $0x20] ss:$48 sps:$4 sm:$0xff]  }
 0x21a   : > { %1652 = vmatprep.subr.bf16.mxu1 %v1518_v61  ;;  %6847 = vmatmul.mubr.msk.bf16.vlgmr.msra.gmra.mxu1 %vm476_vm3, %v8245_v38 }
 0x21b   : > { %1653 = vmatpush1.bf16.msra.mxu1 %v1517_v10  ;;  %v1487_v20 = vpop.permute.xlu0 %1486  ;;  %1674 = vmatprep.mubr.bf16.mxu1 %v10971_v34 }
 0x21c   : > { %v1520_v24 = vsel %vm1492_vm6, %v1485_v63, %v1487_v20  ;;  %v1521_v62 = vsel %vm1492_vm6, %v1487_v20, %v1489_v19 }
 0x21d   : > { %2293 = vrot.lane.b32.xlu1 %v8265_v15, %s7115_s21  ;;  %2315 = vrot.lane.b32.xlu0 %v8025_v32, %s7115_s21 }
 0x21e   : > { %1695 = vmatprep.subr.bf16.mxu0 %v1520_v24 }
 0x21f   : > { %1696 = vmatpush1.bf16.msra.mxu0 %v1519_v26  ;;  %v1964_v21 = vpop.permute.xlu1 %1963  ;;  %v1461_v16 = vpop.permute.xlu0 %1460 }
 0x220   : > { %v1508_v33 = vsel %vm1492_vm6, %v1459_v57, %v1461_v16  ;;  %v1509_v23 = vsel %vm1492_vm6, %v1461_v16, %v1463_v4 }
 0x221   : > { %2349 = vrot.lane.b32.xlu1 %v8108_v36, %s7115_s21  ;;  %2297 = vrot.lane.b32.xlu0 %v8275_v25, %s7115_s21 }
 0x222   : > { %1654 = vmatprep.subr.bf16.mxu1 %v1508_v33 }
 0x223   : > { %1655 = vmatpush1.bf16.msra.mxu1 %v1507_v49  ;;  %v1962_v11 = vpop.permute.xlu1 %1961  ;;  %v1465_v44 = vpop.permute.xlu0 %1464 }
 0x224   : > { %v1510_v58 = vsel %vm1492_vm6, %v1463_v4, %v1465_v44 }
 0x225   : > { %2353 = vrot.lane.b32.xlu1 %v8126_v7, %s7115_s21  ;;  %2301 = vrot.lane.b32.xlu0 %v7593_v59, %s7115_s21 }
 0x226   : > { %1697 = vmatprep.subr.bf16.mxu0 %v1510_v58 }
 0x227   : > { %1698 = vmatpush1.bf16.msra.mxu0 %v1509_v23  ;;  %v1469_v63 = vpop.permute.xlu1 %1468  ;;  %v1439_v42 = vpop.permute.xlu0 %1438 }
 0x228   : > { %v1498_v52 = vsel %vm1492_vm6, %v1437_v0, %v1439_v42  ;;  %v1499_v3 = vsel %vm1492_vm6, %v1439_v42, %v1441_v39 }
 0x229   : > { %2327 = vrot.lane.b32.xlu1 %v8140_v9, %s7115_s21  ;;  %2347 = vrot.lane.b32.xlu0 %v8104_v17, %s7115_s21 }
 0x22a   : > { %1656 = vmatprep.subr.bf16.mxu1 %v1498_v52 }
 0x22b   : > { %1657 = vmatpush1.bf16.msra.mxu1 %v1497_v48  ;;  %v8293_v59 = vpop.permute.xlu1 %1943  ;;  %v1443_v57 = vpop.permute.xlu0 %1442 }
 0x22c   : > { %v1500_v6 = vsel %vm1492_vm6, %v1441_v39, %v1443_v57 }
 0x22d   : > { %2331 = vrot.lane.b32.xlu1 %v8173_v8, %s7115_s21  ;;  %2351 = vrot.lane.b32.xlu0 %v8169_v18, %s7115_s21 }
 0x22e   : > { %1699 = vmatprep.subr.bf16.mxu0 %v1500_v6  ;;  %6849 = vmatmul.mubr.msk.bf16.vlgmr.msra.gmra.mxu1 %vm476_vm3, %v8245_v38  ;;  %v8386_v6 = vld [vmem:[#allocation2 + $0x28] ss:$48 sps:$4 sm:$0xff]  }
 0x22f   : > { %1700 = vmatpush1.bf16.msra.mxu0 %v1499_v3  ;;  %v8303_v41 = vpop.permute.xlu1 %2282  ;;  %v1491_v31 = vpop.permute.xlu0 %1490  ;;  %1760 = vmatprep.mubr.bf16.mxu1 %v10971_v34  ;;  %10989 = vst [vmem:[#allocation14_spill] sm:$0xff] %v8386_v6 }
 0x230   : > { %10988 = vst [vmem:[#allocation17_spill] sm:$0xff] %v8303_v41  ;;  %v1522_v4 = vsel %vm1492_vm6, %v1489_v19, %v1491_v31  ;;  %v8343_v24 = vsel %vm295_vm0, %v8110_v40, %v8303_v41 }
 0x231   : > { %2305 = vrot.lane.b32.xlu1 %v7605_v45, %s7115_s21  ;;  %2325 = vrot.lane.b32.xlu0 %v8136_v13, %s7115_s21  ;;  %v2004_v45 = vsel %vm1983_vm7, %v1962_v11, %v1964_v21 }
 0x232   : > { %1738 = vmatprep.subr.bf16.mxu1 %v1522_v4  ;;  %6850 = vmatmul.mubr.msk.bf16.vlgmr.msra.gmra.mxu0 %vm476_vm3, %v8245_v38 }
 0x233   : > { %1739 = vmatpush1.bf16.msra.mxu1 %v1521_v62  ;;  %v1447_v53 = vpop.permute.xlu1 %1446  ;;  %v1966_v0 = vpop.permute.xlu0 %1965  ;;  %2079 = vmatprep.mubr.bf16.mxu0 %v10971_v34 }
 0x234   : > { %v2005_v51 = vsel %vm1983_vm7, %v1964_v21, %v1966_v0 }
 0x235   : > { %2309 = vrot.lane.b32.xlu1 %v7730_v2, %s7115_s21  ;;  %2329 = vrot.lane.b32.xlu0 %v8199_v14, %s7115_s21 }
 0x236   : > { %2057 = vmatprep.subr.bf16.mxu0 %v2005_v51 }
 0x237   : > { %2058 = vmatpush1.bf16.msra.mxu0 %v2004_v45  ;;  %v8321_v46 = vpop.permute.xlu1 %1921  ;;  %v1467_v30 = vpop.permute.xlu0 %1466 }
 0x238   : > { %v1512_v28 = vsel %vm1492_vm6, %v1467_v30, %v1469_v63  ;;  %v1511_v39 = vsel %vm1492_vm6, %v1465_v44, %v1467_v30  ;;  %v8372_v63 = vld [vmem:[%s10914_s1 + $0x20] sm:$0xff]  }
 0x239   : > { %2357 = vrot.lane.b32.xlu1 %v8132_v29, %s7115_s21  ;;  %2303 = vrot.lane.b32.xlu0 %v8327_v56, %s7115_s21 }
 0x23a   : > { %1740 = vmatprep.subr.bf16.mxu1 %v1512_v28 }
 0x23b   : > { %1741 = vmatpush1.bf16.msra.mxu1 %v1511_v39  ;;  %v1968_v2 = vpop.permute.xlu1 %1967  ;;  %v1942_v55 = vpop.permute.xlu0 %1941 }
 0x23c   : > { %v1995_v61 = vsel %vm1983_vm7, %v1942_v55, %v8293_v59 }
 0x23d   : > { %2714 = vrot.lane.b32.xlu1 %v8021_v50, %s7116_s24  ;;  %2307 = vrot.lane.b32.xlu0 %v8335_v54, %s7115_s21 }
 0x23e   : > { %2059 = vmatprep.subr.bf16.mxu0 %v1995_v61 }
 0x23f   : > { %v1972_v10 = vpop.permute.xlu1 %1971  ;;  %v1940_v19 = vpop.permute.xlu0 %1939 }
 0x240   : > { %v1994_v20 = vsel %vm1983_vm7, %v1940_v19, %v1942_v55  ;;  %v8417_v19 = vld [vmem:[#allocation2 + $0x10] ss:$48 sps:$4 sm:$0xff]  }
 0x241   : > { %2333 = vrot.lane.b32.xlu1 %v8343_v24, %s7115_s21  ;;  %2355 = vrot.lane.b32.xlu0 %v8188_v22, %s7115_s21 }
 0x242   : > { %2060 = vmatpush1.bf16.msra.mxu0 %v1994_v20 }
 0x243   : > { %v1946_v26 = vpop.permute.xlu1 %1945  ;;  %v1445_v21 = vpop.permute.xlu0 %1444 }
 0x244   : > { %v1502_v16 = vsel %vm1492_vm6, %v1445_v21, %v1447_v53  ;;  %v1501_v33 = vsel %vm1492_vm6, %v1443_v57, %v1445_v21  ;;  %v8394_v53 = vld [vmem:[#allocation2 + $0x8] ss:$48 sps:$4 sm:$0xff]  }
 0x245   : > { %2690 = vrot.lane.b32.xlu1 %v7978_v47, %s7116_s24  ;;  %2712 = vrot.lane.b32.xlu0 %v8002_v5, %s7116_s24 }
 0x246   : > { %1742 = vmatprep.subr.bf16.mxu1 %v1502_v16 }
 0x247   : > { %1743 = vmatpush1.bf16.msra.mxu1 %v1501_v33  ;;  %v1950_v40 = vpop.permute.xlu1 %1949  ;;  %v1920_v49 = vpop.permute.xlu0 %1919 }
 0x248   : > { %v1985_v11 = vsel %vm1983_vm7, %v1920_v49, %v8321_v46  ;;  %v8435_v33 = vpop.f32.mrf.mxu0 }
 0x249   : > { %2688 = vrot.lane.b32.xlu1 %v8025_v32, %s7116_s24  ;;  %2710 = vrot.lane.b32.xlu0 %v7944_v37, %s7116_s24 }
 0x24a   : > { %2061 = vmatprep.subr.bf16.mxu0 %v1985_v11  ;;  %6851 = vmatmul.mubr.msk.bf16.vlgmr.msra.gmra.mxu1 %vm476_vm3, %v8245_v38 }
 0x24b   : > { %v1924_v44 = vpop.permute.xlu1 %1923  ;;  %v1918_v58 = vpop.permute.xlu0 %1917  ;;  %2122 = vmatprep.mubr.bf16.mxu1 %v10971_v34 }
 0x24c   : > { %v1984_v23 = vsel %vm1983_vm7, %v1918_v58, %v1920_v49 }
 0x24d   : > { %2313 = vrot.lane.b32.xlu1 %v7742_v12, %s7115_s21  ;;  %2335 = vrot.lane.b32.xlu0 %v8303_v41, %s7115_s21  ;;  %v2006_v12 = vsel %vm1983_vm7, %v1966_v0, %v1968_v2  ;;  %v1996_v0 = vsel %vm1983_vm7, %v8293_v59, %v1946_v26  ;;  %v1986_v59 = vsel %vm1983_vm7, %v8321_v46, %v1924_v44 }
 0x24e   : > { %2062 = vmatpush1.bf16.msra.mxu0 %v1984_v23 }
 0x24f   : > { %v1970_v42 = vpop.permute.xlu0 %1969  ;;  %v1928_v52 = vpop.permute.xlu1 %1927 }
 0x250   : > { %v2007_v38 = vsel %vm1983_vm7, %v1968_v2, %v1970_v42  ;;  %v2008_v3 = vsel %vm1983_vm7, %v1970_v42, %v1972_v10  ;;  %v8448_v42 = vpop.f32.mrf.mxu1 }
 0x251   : > { %2670 = vrot.lane.b32.xlu1 %v8275_v25, %s7116_s24  ;;  %2692 = vrot.lane.b32.xlu0 %v8052_v35, %s7116_s24 }
 0x252   : > { %2100 = vmatprep.subr.bf16.mxu1 %v2007_v38  ;;  %6866 = vmatmul.mubr.msk.bf16.vlgmr.msra.gmra.mxu0 %vm476_vm3, %v8372_v63 }
 0x253   : > { %2101 = vmatpush1.bf16.msra.mxu1 %v2006_v12  ;;  %v1974_v48 = vpop.permute.xlu0 %1973  ;;  %2165 = vmatprep.mubr.bf16.mxu0 %v10971_v34  ;;  %v1976_v31 = vpop.permute.xlu1 %1975 }
 0x254   : > { %v2009_v57 = vsel %vm1983_vm7, %v1972_v10, %v1974_v48  ;;  %v2010_v16 = vsel %vm1983_vm7, %v1974_v48, %v1976_v31 }
 0x255   : > { %2716 = vrot.lane.b32.xlu1 %v8092_v60, %s7116_s24  ;;  %2311 = vrot.lane.b32.xlu0 %v8386_v6, %s7115_s21 }
 0x256   : > { %2143 = vmatprep.subr.bf16.mxu0 %v2009_v57  ;;  %v8453_v57 = vpop.f32.mrf.mxu1 }
 0x257   : > { %2144 = vmatpush1.bf16.msra.mxu0 %v2008_v3  ;;  %v1948_v4 = vpop.permute.xlu0 %1947  ;;  %v1980_v30 = vpop.permute.xlu1 %1979  ;;  %v8457_v3 = vld [vmem:[#allocation2 + $0x14] ss:$48 sps:$4 sm:$0xff]  }
 0x258   : > { %v1997_v62 = vsel %vm1983_vm7, %v1946_v26, %v1948_v4  ;;  %v1998_v28 = vsel %vm1983_vm7, %v1948_v4, %v1950_v40  ;;  %v8462_v4 = vpop.f32.mrf.mxu1 }
 0x259   : > { %2720 = vrot.lane.b32.xlu1 %v8104_v17, %s7116_s24  ;;  %2668 = vrot.lane.b32.xlu0 %v8394_v53, %s7116_s24 }
 0x25a   : > { %2102 = vmatprep.subr.bf16.mxu1 %v1997_v62 }
 0x25b   : > { %2103 = vmatpush1.bf16.msra.mxu1 %v1996_v0  ;;  %v1952_v51 = vpop.permute.xlu0 %1951  ;;  %v1954_v55 = vpop.permute.xlu1 %1953 }
 0x25c   : > { %v1999_v45 = vsel %vm1983_vm7, %v1950_v40, %v1952_v51 }
 0x25d   : > { %2694 = vrot.lane.b32.xlu1 %v8122_v27, %s7116_s24  ;;  %2666 = vrot.lane.b32.xlu0 %v8265_v15, %s7116_s24 }
 0x25e   : > { %2145 = vmatprep.subr.bf16.mxu0 %v1999_v45 }
 0x25f   : > { %2146 = vmatpush1.bf16.msra.mxu0 %v1998_v28  ;;  %v1926_v39 = vpop.permute.xlu0 %1925  ;;  %v8467_v28 = vpop.f32.mrf.mxu1 }
 0x260   : > { %v1987_v2 = vsel %vm1983_vm7, %v1924_v44, %v1926_v39  ;;  %v1988_v20 = vsel %vm1983_vm7, %v1926_v39, %v1928_v52  ;;  %v8439_v44 = vpop.f32.mrf.mxu0  ;;  %10991 = vst [vmem:[#allocation16_spill] sm:$0xff] %v8467_v28 }
 0x261   : > { %2698 = vrot.lane.b32.xlu1 %v8136_v13, %s7116_s24  ;;  %2718 = vrot.lane.b32.xlu0 %v8035_v43, %s7116_s24 }
 0x262   : > { %2104 = vmatprep.subr.bf16.mxu1 %v1987_v2  ;;  %v8446_v23 = vpop.f32.mrf.mxu0  ;;  %v8473_v2 = vld [vmem:[#allocation2 + $0x1c] ss:$48 sps:$4 sm:$0xff]  }
 0x263   : > { %2105 = vmatpush1.bf16.msra.mxu1 %v1986_v59  ;;  %v8413_v61 = vpop.permute.xlu0 %1929 }
 0x264   : > { %v1989_v10 = vsel %vm1983_vm7, %v1928_v52, %v8413_v61  ;;  %v8451_v48 = vpop.f32.mrf.mxu0 }
 0x265   : > { %2672 = vrot.lane.b32.xlu1 %v8417_v19, %s7116_s24  ;;  %2722 = vrot.lane.b32.xlu0 %v8108_v36, %s7116_s24  ;;  %10990 = vst [vmem:[#allocation13_spill] sm:$0xff] %v8451_v48 }
 0x266   : > { %2147 = vmatprep.subr.bf16.mxu0 %v1989_v10  ;;  %6867 = vmatmul.mubr.msk.bf16.vlgmr.msra.gmra.mxu1 %vm476_vm3, %v8372_v63  ;;  %v8464_v62 = vpop.f32.mrf.mxu0 }
 0x267   : > { %2148 = vmatpush1.bf16.msra.mxu0 %v1988_v20  ;;  %v1958_v46 = vpop.permute.xlu1 %1957  ;;  %v1978_v26 = vpop.permute.xlu0 %1977  ;;  %2208 = vmatprep.mubr.bf16.mxu1 %v10971_v34 }
 0x268   : > { %v2011_v21 = vsel %vm1983_vm7, %v1976_v31, %v1978_v26  ;;  %v2012_v58 = vsel %vm1983_vm7, %v1978_v26, %v1980_v30  ;;  %v2000_v31 = vsel %vm1983_vm7, %v1952_v51, %v1954_v55  ;;  %v8469_v39 = vpop.f32.mrf.mxu0 }
 0x269   : > { %2676 = vrot.lane.b32.xlu1 %v8327_v56, %s7116_s24  ;;  %2696 = vrot.lane.b32.xlu0 %v8073_v1, %s7116_s24 }
 0x26a   : > { %2186 = vmatprep.subr.bf16.mxu1 %v2011_v21  ;;  %6868 = vmatmul.mubr.msk.bf16.vlgmr.msra.gmra.mxu0 %vm476_vm3, %v8372_v63  ;;  %v8478_v59 = vpop.f32.mrf.mxu0 }
 0x26b   : > { %2187 = vmatpush1.bf16.msra.mxu1 %v2010_v16  ;;  %v1932_v40 = vpop.permute.xlu1 %1931  ;;  %v1982_v49 = vpop.permute.xlu0 %1981  ;;  %2251 = vmatprep.mubr.bf16.mxu0 %v10971_v34 }
 0x26c   : > { %v2013_v11 = vsel %vm1983_vm7, %v1980_v30, %v1982_v49  ;;  %v8483_v21 = vpop.f32.mrf.mxu0 }
 0x26d   : > { %2724 = vrot.lane.b32.xlu1 %v8169_v18, %s7116_s24  ;;  %2700 = vrot.lane.b32.xlu0 %v8140_v9, %s7116_s24  ;;  %10992 = vst [vmem:[#allocation18_spill] sm:$0xff] %v8483_v21 }
 0x26e   : > { %2229 = vmatprep.subr.bf16.mxu0 %v2013_v11  ;;  %v8495_v11 = vpop.f32.mrf.mxu0 }
 0x26f   : > { %2230 = vmatpush1.bf16.msra.mxu0 %v2012_v58  ;;  %v1936_v38 = vpop.permute.xlu1 %1935  ;;  %v1956_v52 = vpop.permute.xlu0 %1955 }
 0x270   : > { %v2001_v12 = vsel %vm1983_vm7, %v1954_v55, %v1956_v52  ;;  %v2002_v51 = vsel %vm1983_vm7, %v1956_v52, %v1958_v46  ;;  %v8480_v55 = vpop.f32.mrf.mxu1 }
 0x271   : > { %2728 = vrot.lane.b32.xlu1 %v8188_v22, %s7116_s24  ;;  %2674 = vrot.lane.b32.xlu0 %v8457_v3, %s7116_s24 }
 0x272   : > { %2188 = vmatprep.subr.bf16.mxu1 %v2001_v12  ;;  %v8485_v16 = vpop.f32.mrf.mxu1 }
 0x273   : > { %2189 = vmatpush1.bf16.msra.mxu1 %v2000_v31  ;;  %v2340_v0 = vpop.permute.xlu1 %2339  ;;  %v1960_v45 = vpop.permute.xlu0 %1959 }
 0x274   : > { %v2003_v30 = vsel %vm1983_vm7, %v1958_v46, %v1960_v45  ;;  %v1990_v46 = vsel %vm1983_vm7, %v8413_v61, %v1932_v40  ;;  %v8493_v49 = vpop.f32.mrf.mxu1  ;;  %v8500_v45 = vpop.f32.mrf.mxu0 }
 0x275   : > { %2702 = vrot.lane.b32.xlu1 %v8199_v14, %s7116_s24  ;;  %2678 = vrot.lane.b32.xlu0 %v8473_v2, %s7116_s24 }
 0x276   : > { %2231 = vmatprep.subr.bf16.mxu0 %v2003_v30  ;;  %v8498_v31 = vpop.f32.mrf.mxu1 }
 0x277   : > { %2232 = vmatpush1.bf16.msra.mxu0 %v2002_v51  ;;  %v2344_v10 = vpop.permute.xlu1 %2343  ;;  %v1934_v20 = vpop.permute.xlu0 %1933  ;;  %10993 = vst [vmem:[#allocation11_spill] sm:$0xff] %v8498_v31 }
 0x278   : > { %v1991_v26 = vsel %vm1983_vm7, %v1932_v40, %v1934_v20  ;;  %v1992_v61 = vsel %vm1983_vm7, %v1934_v20, %v1936_v38  ;;  %v8509_v40 = vpop.f32.mrf.mxu0  ;;  %v864_v30 = vpop.f32.mrf.mxu1 }
 0x279   : > { %2706 = vrot.lane.b32.xlu1 %v8343_v24, %s7116_s24  ;;  %2726 = vrot.lane.b32.xlu0 %v8126_v7, %s7116_s24 }
 0x27a   : > { %2190 = vmatprep.subr.bf16.mxu1 %v1991_v26 }
 0x27b   : > { %2191 = vmatpush1.bf16.msra.mxu1 %v1990_v46  ;;  %v2338_v58 = vpop.permute.xlu1 %2337  ;;  %v1938_v52 = vpop.permute.xlu0 %1937  ;;  %v8513_v46 = vadd.f32 %v864_v30, %v8435_v33 }
 0x27c   : > { %v1993_v12 = vsel %vm1983_vm7, %v1936_v38, %v1938_v52  ;;  %v866_v38 = vpop.f32.mrf.mxu1 }
 0x27d   : > { %2680 = vrot.lane.b32.xlu1 %v8335_v54, %s7116_s24  ;;  %2730 = vrot.lane.b32.xlu0 %v8132_v29, %s7116_s24  ;;  %v8523_v20 = vadd.f32 %v866_v38, %v8439_v44 }
 0x27e   : > { %2233 = vmatprep.subr.bf16.mxu0 %v1993_v12  ;;  %6869 = vmatmul.mubr.msk.bf16.vlgmr.msra.gmra.mxu1 %vm476_vm3, %v8372_v63  ;;  %v8516_v12 = vpop.f32.mrf.mxu0  ;;  %v868_v33 = vpop.f32.mrf.mxu1 }
 0x27f   : > { %2234 = vmatpush1.bf16.msra.mxu0 %v1992_v61  ;;  %v2320_v51 = vpop.permute.xlu1 %2319  ;;  %v2342_v26 = vpop.permute.xlu0 %2341  ;;  %2455 = vmatprep.mubr.bf16.mxu1 %v10971_v34  ;;  %10994 = vst [vmem:[#allocation12_spill] sm:$0xff] %v8516_v12  ;;  %v2380_v61 = vsel %vm2359_vm8, %v2338_v58, %v2340_v0  ;;  %v8534_v48 = vadd.f32 %v868_v33, %v8446_v23 }
 0x280   : > { %v2381_v52 = vsel %vm2359_vm8, %v2340_v0, %v2342_v26  ;;  %v907_v30 = vpop.f32.mrf.mxu0  ;;  %v8541_v58 = vpop.f32.mrf.mxu1  ;;  %v2382_v23 = vsel %vm2359_vm8, %v2342_v26, %v2344_v10 }
 0x281   : > { %2684 = vrot.lane.b32.xlu1 %v8386_v6, %s7116_s24  ;;  %2704 = vrot.lane.b32.xlu0 %v8173_v8, %s7116_s24  ;;  %v8537_v44 = vadd.f32 %v907_v30, %v8448_v42  ;;  %10995 = vst [vmem:[#allocation21_spill] sm:$0xff] %v8541_v58 }
 0x282   : > { %2433 = vmatprep.subr.bf16.mxu1 %v2381_v52  ;;  %6870 = vmatmul.mubr.msk.bf16.vlgmr.msra.gmra.mxu0 %vm476_vm3, %v8372_v63  ;;  %v909_v63 = vpop.f32.mrf.mxu0  ;;  %v950_v38 = vpop.f32.mrf.mxu1 }
 0x283   : > { %2434 = vmatpush1.bf16.msra.mxu1 %v2380_v61  ;;  %v8528_v31 = vpop.permute.xlu1 %2323  ;;  %v8530_v28 = vpop.permute.xlu0 %2345  ;;  %2498 = vmatprep.mubr.bf16.mxu0 %v10971_v34  ;;  %v8548_v52 = vadd.f32 %v909_v63, %v8453_v57  ;;  %v8555_v58 = vadd.f32 %v950_v38, %v8464_v62 }
 0x284   : > { %v2383_v0 = vsel %vm2359_vm8, %v2344_v10, %v8530_v28  ;;  %v911_v42 = vpop.f32.mrf.mxu0  ;;  %v952_v57 = vpop.f32.mrf.mxu1  ;;  %v8562_v10 = vld [vmem:[#allocation2 + $0x24] ss:$48 sps:$4 sm:$0xff]  }
 0x285   : > { %3085 = vrot.lane.b32.xlu1 %v8002_v5, %s7117_s27  ;;  %2708 = vrot.lane.b32.xlu0 %v8303_v41, %s7116_s24  ;;  %v8552_v30 = vadd.f32 %v911_v42, %v8462_v4  ;;  %v8567_v26 = vadd.f32 %v952_v57, %v8469_v39 }
 0x286   : > { %2476 = vmatprep.subr.bf16.mxu0 %v2383_v0  ;;  %v8558_v21 = vpop.f32.mrf.mxu0  ;;  %v954_v4 = vpop.f32.mrf.mxu1 }
 0x287   : > { %2477 = vmatpush1.bf16.msra.mxu0 %v2382_v23  ;;  %v2296_v61 = vpop.permute.xlu1 %2295  ;;  %v2318_v33 = vpop.permute.xlu0 %2317  ;;  %10996 = vst [vmem:[#allocation8_spill] sm:$0xff] %v8558_v21  ;;  %v8570_v23 = vadd.f32 %v954_v4, %v8478_v59 }
 0x288   : > { %v2371_v12 = vsel %vm2359_vm8, %v2318_v33, %v2320_v51  ;;  %v993_v62 = vpop.f32.mrf.mxu0  ;;  %v8578_v6 = vpop.f32.mrf.mxu1 }
 0x289   : > { %3089 = vrot.lane.b32.xlu1 %v8092_v60, %s7117_s27  ;;  %2682 = vrot.lane.b32.xlu0 %v8562_v10, %s7116_s24  ;;  %v8573_v42 = vadd.f32 %v993_v62, %v8480_v55  ;;  %10997 = vst [vmem:[#allocation7_spill] sm:$0xff] %v8578_v6 }
 0x28a   : > { %2435 = vmatprep.subr.bf16.mxu1 %v2371_v12  ;;  %v995_v39 = vpop.f32.mrf.mxu0  ;;  %v8582_v12 = vld [vmem:[#allocation2 + $0x2c] ss:$48 sps:$4 sm:$0xff]   ;;  %v1036_v57 = vpop.f32.mrf.mxu1 }
 0x28b   : > { %v2300_v0 = vpop.permute.xlu1 %2299  ;;  %v2322_v63 = vpop.permute.xlu0 %2321  ;;  %v8587_v59 = vadd.f32 %v995_v39, %v8485_v16 }
 0x28c   : > { %v2373_v38 = vsel %vm2359_vm8, %v2322_v63, %v8528_v31  ;;  %v2372_v21 = vsel %vm2359_vm8, %v2320_v51, %v2322_v63  ;;  %v997_v55 = vpop.f32.mrf.mxu0  ;;  %v8593_v63 = vadd.f32 %v1036_v57, %v8495_v11  ;;  %v1038_v41 = vpop.f32.mrf.mxu1 }
 0x28d   : > { %3083 = vrot.lane.b32.xlu1 %v7944_v37, %s7117_s27  ;;  %2686 = vrot.lane.b32.xlu0 %v8582_v12, %s7116_s24  ;;  %v8590_v62 = vadd.f32 %v997_v55, %v8493_v49 }
 0x28e   : > { %2478 = vmatprep.subr.bf16.mxu0 %v2373_v38  ;;  %v8596_v60 = vpop.f32.mrf.mxu0  ;;  %v1040_v16 = vpop.f32.mrf.mxu1 }
 0x28f   : > { %2479 = vmatpush1.bf16.msra.mxu0 %v2372_v21  ;;  %v2294_v4 = vpop.permute.xlu1 %2293  ;;  %v2316_v51 = vpop.permute.xlu0 %2315  ;;  %10998 = vst [vmem:[#allocation9_spill] sm:$0xff] %v8596_v60  ;;  %v8603_v21 = vadd.f32 %v1038_v41, %v8500_v45  ;;  %v8606_v39 = vadd.f32 %v1040_v16, %v8509_v40 }
 0x290   : > { %v2370_v6 = vsel %vm2359_vm8, %v2316_v51, %v2318_v33  ;;  %v1217_v49 = vpop.f32.mrf.mxu0  ;;  %v2360_v55 = vsel %vm2359_vm8, %v2294_v4, %v2296_v61  ;;  %v8613_v51 = vpop.f32.mrf.mxu1 }
 0x291   : > { %3065 = vrot.lane.b32.xlu1 %v8052_v35, %s7117_s27  ;;  %3087 = vrot.lane.b32.xlu0 %v8021_v50, %s7117_s27  ;;  %v8609_v33 = vadd.f32 %v1217_v49, %v8513_v46  ;;  %10999 = vst [vmem:[#allocation10_spill] sm:$0xff] %v8613_v51 }
 0x292   : > { %2436 = vmatpush1.bf16.msra.mxu1 %v2370_v6  ;;  %v1219_v60 = vpop.f32.mrf.mxu0  ;;  %v8625_v6 = vld [vmem:[%s10914_s1 + $0x28] sm:$0xff]  }
 0x293   : > { %v2350_v38 = vpop.permute.xlu1 %2349  ;;  %v2298_v11 = vpop.permute.xlu0 %2297  ;;  %v8620_v41 = vadd.f32 %v1219_v60, %v8523_v20 }
 0x294   : > { %v2361_v57 = vsel %vm2359_vm8, %v2296_v61, %v2298_v11  ;;  %v1221_v45 = vpop.f32.mrf.mxu0 }
 0x295   : > { %3069 = vrot.lane.b32.xlu1 %v8073_v1, %s7117_s27  ;;  %3091 = vrot.lane.b32.xlu0 %v8035_v43, %s7117_s27  ;;  %v8630_v4 = vadd.f32 %v1221_v45, %v8534_v48  ;;  %v2362_v48 = vsel %vm2359_vm8, %v2298_v11, %v2300_v0 }
 0x296   : > { %2437 = vmatprep.subr.bf16.mxu1 %v2361_v57  ;;  %v1260_v40 = vpop.f32.mrf.mxu1  ;;  %v8636_v20 = vpop.f32.mrf.mxu0 }
 0x297   : > { %2438 = vmatpush1.bf16.msra.mxu1 %v2360_v55  ;;  %v8627_v46 = vpop.permute.xlu1 %2353  ;;  %v2302_v61 = vpop.permute.xlu0 %2301  ;;  %v8633_v16 = vadd.f32 %v1260_v40, %v8537_v44  ;;  %11000 = vst [vmem:[#allocation19_spill] sm:$0xff] %v8636_v20 }
 0x298   : > { %v2363_v60 = vsel %vm2359_vm8, %v2300_v0, %v2302_v61  ;;  %v1262_v49 = vpop.f32.mrf.mxu1 }
 0x299   : > { %3041 = vrot.lane.b32.xlu1 %v8394_v53, %s7117_s27  ;;  %3063 = vrot.lane.b32.xlu0 %v7978_v47, %s7117_s27  ;;  %v8643_v55 = vadd.f32 %v1262_v49, %v8548_v52 }
 0x29a   : > { %6874 = vmatmul.mubr.msk.bf16.vlgmr.msra.gmra.mxu1 %vm476_vm3, %v8625_v6  ;;  %2480 = vmatprep.subr.bf16.mxu0 %v2363_v60  ;;  %v1264_v44 = vpop.f32.mrf.mxu1  ;;  %v1303_v57 = vpop.f32.mrf.mxu0 }
 0x29b   : > { %2481 = vmatpush1.bf16.msra.mxu0 %v2362_v48  ;;  %v2328_v45 = vpop.permute.xlu1 %2327  ;;  %v2348_v40 = vpop.permute.xlu0 %2347  ;;  %2541 = vmatprep.mubr.bf16.mxu1 %v10971_v34  ;;  %v8650_v20 = vadd.f32 %v1264_v44, %v8552_v30  ;;  %v8653_v51 = vadd.f32 %v1303_v57, %v8555_v58 }
 0x29c   : > { %v2385_v52 = vsel %vm2359_vm8, %v2348_v40, %v2350_v38  ;;  %v2384_v60 = vsel %vm2359_vm8, %v8530_v28, %v2348_v40  ;;  %v1305_v49 = vpop.f32.mrf.mxu0 }
 0x29d   : > { %3045 = vrot.lane.b32.xlu1 %v8417_v19, %s7117_s27  ;;  %3067 = vrot.lane.b32.xlu0 %v8122_v27, %s7117_s27  ;;  %v8663_v0 = vadd.f32 %v1305_v49, %v8567_v26 }
 0x29e   : > { %6875 = vmatmul.mubr.msk.bf16.vlgmr.msra.gmra.mxu0 %vm476_vm3, %v8625_v6  ;;  %2519 = vmatprep.subr.bf16.mxu1 %v2385_v52  ;;  %v1307_v58 = vpop.f32.mrf.mxu0 }
 0x29f   : > { %2520 = vmatpush1.bf16.msra.mxu1 %v2384_v60  ;;  %v8667_v30 = vpop.permute.xlu1 %2331  ;;  %v2352_v11 = vpop.permute.xlu0 %2351  ;;  %2584 = vmatprep.mubr.bf16.mxu0 %v10971_v34  ;;  %v8671_v28 = vadd.f32 %v1307_v58, %v8570_v23 }
 0x2a0   : > { %v2387_v48 = vsel %vm2359_vm8, %v2352_v11, %v8627_v46  ;;  %v2386_v26 = vsel %vm2359_vm8, %v2350_v38, %v2352_v11 }
 0x2a1   : > { %3039 = vrot.lane.b32.xlu1 %v8265_v15, %s7117_s27  ;;  %3061 = vrot.lane.b32.xlu0 %v8025_v32, %s7117_s27 }
 0x2a2   : > { %2562 = vmatprep.subr.bf16.mxu0 %v2387_v48 }
 0x2a3   : > { %2563 = vmatpush1.bf16.msra.mxu0 %v2386_v26  ;;  %v2306_v44 = vpop.permute.xlu1 %2305  ;;  %v2326_v57 = vpop.permute.xlu0 %2325 }
 0x2a4   : > { %v2375_v40 = vsel %vm2359_vm8, %v2326_v57, %v2328_v45  ;;  %v2374_v23 = vsel %vm2359_vm8, %v8528_v31, %v2326_v57 }
 0x2a5   : > { %3095 = vrot.lane.b32.xlu1 %v8108_v36, %s7117_s27  ;;  %3043 = vrot.lane.b32.xlu0 %v8275_v25, %s7117_s27 }
 0x2a6   : > { %2521 = vmatprep.subr.bf16.mxu1 %v2375_v40 }
 0x2a7   : > { %2522 = vmatpush1.bf16.msra.mxu1 %v2374_v23  ;;  %v8687_v15 = vpop.permute.xlu1 %2309  ;;  %v2330_v38 = vpop.permute.xlu0 %2329 }
 0x2a8   : > { %v2377_v52 = vsel %vm2359_vm8, %v2330_v38, %v8667_v30  ;;  %v2376_v60 = vsel %vm2359_vm8, %v2328_v45, %v2330_v38 }
 0x2a9   : > { %3099 = vrot.lane.b32.xlu1 %v8126_v7, %s7117_s27  ;;  %3047 = vrot.lane.b32.xlu0 %v8457_v3, %s7117_s27 }
 0x2aa   : > { %2564 = vmatprep.subr.bf16.mxu0 %v2377_v52 }
 0x2ab   : > { %2565 = vmatpush1.bf16.msra.mxu0 %v2376_v60  ;;  %v2358_v31 = vpop.permute.xlu1 %2357  ;;  %v2304_v49 = vpop.permute.xlu0 %2303 }
 0x2ac   : > { %v2365_v58 = vsel %vm2359_vm8, %v2304_v49, %v2306_v44  ;;  %v2364_v11 = vsel %vm2359_vm8, %v2302_v61, %v2304_v49  ;;  %v8713_v61 = vpop.f32.mrf.mxu1  ;;  %v8725_v60 = vpop.f32.mrf.mxu0 }
 0x2ad   : > { %3073 = vrot.lane.b32.xlu1 %v8140_v9, %s7117_s27  ;;  %3093 = vrot.lane.b32.xlu0 %v8104_v17, %s7117_s27  ;;  %11001 = vst [vmem:[#allocation20_spill] sm:$0xff] %v8713_v61 }
 0x2ae   : > { %2523 = vmatprep.subr.bf16.mxu1 %v2365_v58 }
 0x2af   : > { %2524 = vmatpush1.bf16.msra.mxu1 %v2364_v11  ;;  %v8702_v45 = vpop.permute.xlu1 %2714  ;;  %v2308_v48 = vpop.permute.xlu0 %2307 }
 0x2b0   : > { %v2367_v26 = vsel %vm2359_vm8, %v2308_v48, %v8687_v15  ;;  %v2366_v57 = vsel %vm2359_vm8, %v2306_v44, %v2308_v48 }
 0x2b1   : > { %3077 = vrot.lane.b32.xlu1 %v8173_v8, %s7117_s27  ;;  %3097 = vrot.lane.b32.xlu0 %v8169_v18, %s7117_s27 }
 0x2b2   : > { %6876 = vmatmul.mubr.msk.bf16.vlgmr.msra.gmra.mxu1 %vm476_vm3, %v8625_v6  ;;  %2566 = vmatprep.subr.bf16.mxu0 %v2367_v26 }
 0x2b3   : > { %2567 = vmatpush1.bf16.msra.mxu0 %v2366_v57  ;;  %v2334_v40 = vpop.permute.xlu1 %2333  ;;  %v2356_v23 = vpop.permute.xlu0 %2355  ;;  %2627 = vmatprep.mubr.bf16.mxu1 %v10971_v34 }
 0x2b4   : > { %v2389_v38 = vsel %vm2359_vm8, %v2356_v23, %v2358_v31  ;;  %v2388_v44 = vsel %vm2359_vm8, %v8627_v46, %v2356_v23 }
 0x2b5   : > { %3051 = vrot.lane.b32.xlu1 %v8473_v2, %s7117_s27  ;;  %3071 = vrot.lane.b32.xlu0 %v8136_v13, %s7117_s27 }
 0x2b6   : > { %6877 = vmatmul.mubr.msk.bf16.vlgmr.msra.gmra.mxu0 %vm476_vm3, %v8625_v6  ;;  %2605 = vmatprep.subr.bf16.mxu1 %v2389_v38  ;;  %v1346_v52 = vpop.f32.mrf.mxu1 }
 0x2b7   : > { %2606 = vmatpush1.bf16.msra.mxu1 %v2388_v44  ;;  %v2691_v49 = vpop.permute.xlu1 %2690  ;;  %v2713_v31 = vpop.permute.xlu0 %2712  ;;  %2828 = vmatprep.mubr.bf16.mxu0 %v10971_v34  ;;  %v8729_v46 = vadd.f32 %v1346_v52, %v8573_v42 }
 0x2b8   : > { %v2754_v58 = vsel %vm2732_vm9, %v2713_v31, %v8702_v45  ;;  %v1348_v11 = vpop.f32.mrf.mxu1 }
 0x2b9   : > { %3055 = vrot.lane.b32.xlu1 %v8562_v10, %s7117_s27  ;;  %3075 = vrot.lane.b32.xlu0 %v8199_v14, %s7117_s27  ;;  %v8738_v48 = vadd.f32 %v1348_v11, %v8587_v59 }
 0x2ba   : > { %2806 = vmatprep.subr.bf16.mxu0 %v2754_v58  ;;  %v1350_v26 = vpop.f32.mrf.mxu1  ;;  %v1389_v57 = vpop.f32.mrf.mxu0 }
 0x2bb   : > { %v2689_v23 = vpop.permute.xlu1 %2688  ;;  %v2711_v38 = vpop.permute.xlu0 %2710  ;;  %v8741_v42 = vadd.f32 %v1350_v26, %v8590_v62  ;;  %v8744_v44 = vadd.f32 %v1389_v57, %v8593_v63 }
 0x2bc   : > { %v2753_v52 = vsel %vm2732_vm9, %v2711_v38, %v2713_v31  ;;  %v1391_v61 = vpop.f32.mrf.mxu0 }
 0x2bd   : > { %3103 = vrot.lane.b32.xlu1 %v8132_v29, %s7117_s27  ;;  %3049 = vrot.lane.b32.xlu0 %v8327_v56, %s7117_s27  ;;  %v8752_v59 = vadd.f32 %v1391_v61, %v8603_v21  ;;  %v2378_v21 = vsel %vm2359_vm8, %v8667_v30, %v2334_v40 }
 0x2be   : > { %2807 = vmatpush1.bf16.msra.mxu0 %v2753_v52  ;;  %v1393_v58 = vpop.f32.mrf.mxu0 }
 0x2bf   : > { %v2314_v11 = vpop.permute.xlu1 %2313  ;;  %v2336_v62 = vpop.permute.xlu0 %2335  ;;  %v8755_v26 = vadd.f32 %v1393_v58, %v8606_v39 }
 0x2c0   : > { %v2379_v63 = vsel %vm2359_vm8, %v2334_v40, %v2336_v62 }
 0x2c1   : > { %3460 = vrot.lane.b32.xlu1 %v8021_v50, %s7118_s9  ;;  %3053 = vrot.lane.b32.xlu0 %v8335_v54, %s7117_s27  ;;  %v2743_v50 = vsel %vm2732_vm9, %v2689_v23, %v2691_v49  ;;  %v11002_v23 = vld [vmem:[#allocation17_spill] sm:$0xff] }
 0x2c2   : > { %2607 = vmatprep.subr.bf16.mxu1 %v2379_v63  ;;  %v8812_v63 = vpop.f32.mrf.mxu1 }
 0x2c3   : > { %2608 = vmatpush1.bf16.msra.mxu1 %v2378_v21  ;;  %v8764_v61 = vpop.permute.xlu1 %2670  ;;  %v8766_v31 = vpop.permute.xlu0 %2692 }
 0x2c4   : > { %v2744_v39 = vsel %vm2732_vm9, %v2691_v49, %v8766_v31 }
 0x2c5   : > { %3079 = vrot.lane.b32.xlu1 %v8343_v24, %s7117_s27  ;;  %3101 = vrot.lane.b32.xlu0 %v8188_v22, %s7117_s27 }
 0x2c6   : > { %2808 = vmatprep.subr.bf16.mxu0 %v2744_v39 }
 0x2c7   : > { %2809 = vmatpush1.bf16.msra.mxu0 %v2743_v50  ;;  %v2717_v54 = vpop.permute.xlu1 %2716  ;;  %v2312_v30 = vpop.permute.xlu0 %2311 }
 0x2c8   : > { %v2369_v40 = vsel %vm2359_vm8, %v2312_v30, %v2314_v11  ;;  %v2368_v57 = vsel %vm2359_vm8, %v8687_v15, %v2312_v30  ;;  %v2755_v62 = vsel %vm2732_vm9, %v8702_v45, %v2717_v54 }
 0x2c9   : > { %3436 = vrot.lane.b32.xlu1 %v7978_v47, %s7118_s9  ;;  %3458 = vrot.lane.b32.xlu0 %v8002_v5, %s7118_s9 }
 0x2ca   : > { %2609 = vmatprep.subr.bf16.mxu1 %v2369_v40  ;;  %v11003_v40 = vld [vmem:[#allocation15_spill] sm:$0xff] }
 0x2cb   : > { %2610 = vmatpush1.bf16.msra.mxu1 %v2368_v57  ;;  %v2721_v38 = vpop.permute.xlu1 %2720  ;;  %v2669_v52 = vpop.permute.xlu0 %2668  ;;  %v11004_v57 = vld [vmem:[#allocation14_spill] sm:$0xff] }
 0x2cc   : > { %v2734_v49 = vsel %vm2732_vm9, %v2669_v52, %v8764_v61 }
 0x2cd   : > { %3434 = vrot.lane.b32.xlu1 %v8025_v32, %s7118_s9  ;;  %3456 = vrot.lane.b32.xlu0 %v7944_v37, %s7118_s9  ;;  %v8799_v37 = vld [vmem:[%s10914_s1 + $0x30] sm:$0xff]   ;;  %v8801_v32 = vpop.f32.mrf.mxu0 }
 0x2ce   : > { %6878 = vmatmul.mubr.msk.bf16.vlgmr.msra.gmra.mxu1 %vm476_vm3, %v8625_v6  ;;  %2810 = vmatprep.subr.bf16.mxu0 %v2734_v49 }
 0x2cf   : > { %v2695_v47 = vpop.permute.xlu1 %2694  ;;  %v2667_v15 = vpop.permute.xlu0 %2666  ;;  %2871 = vmatprep.mubr.bf16.mxu1 %v10971_v34 }
 0x2d0   : > { %v2733_v5 = vsel %vm2732_vm9, %v2667_v15, %v2669_v52 }
 0x2d1   : > { %3059 = vrot.lane.b32.xlu1 %v8582_v12, %s7117_s27  ;;  %3081 = vrot.lane.b32.xlu0 %v11002_v23, %s7117_s27 }
 0x2d2   : > { %2811 = vmatpush1.bf16.msra.mxu0 %v2733_v5 }
 0x2d3   : > { %v2699_v6 = vpop.permute.xlu1 %2698  ;;  %v2719_v58 = vpop.permute.xlu0 %2718 }
 0x2d4   : > { %v2756_v11 = vsel %vm2732_vm9, %v2717_v54, %v2719_v58  ;;  %v2757_v45 = vsel %vm2732_vm9, %v2719_v58, %v2721_v38 }
 0x2d5   : > { %6882 = vmatmul.mubr.msk.bf16.vlgmr.msra.gmra.mxu0 %vm476_vm3, %v8799_v37  ;;  %3416 = vrot.lane.b32.xlu1 %v8275_v25, %s7118_s9 }
 0x2d6   : > { %3438 = vrot.lane.b32.xlu0 %v8052_v35, %s7118_s9  ;;  %2849 = vmatprep.subr.bf16.mxu1 %v2756_v11  ;;  %v1633_v21 = vpop.f32.mrf.mxu0 }
 0x2d7   : > { %2850 = vmatpush1.bf16.msra.mxu1 %v2755_v62  ;;  %v2673_v39 = vpop.permute.xlu1 %2672  ;;  %v8814_v50 = vpop.permute.xlu0 %2722  ;;  %2914 = vmatprep.mubr.bf16.mxu0 %v10971_v34  ;;  %v8818_v30 = vadd.f32 %v1633_v21, %v8633_v16 }
 0x2d8   : > { %v2758_v25 = vsel %vm2732_vm9, %v2721_v38, %v8814_v50  ;;  %v1635_v35 = vpop.f32.mrf.mxu0 }
 0x2d9   : > { %3462 = vrot.lane.b32.xlu1 %v11003_v40, %s7118_s9  ;;  %2892 = vmatprep.subr.bf16.mxu0 %v2758_v25  ;;  %v8826_v54 = vadd.f32 %v1635_v35, %v8643_v55  ;;  %v2745_v55 = vsel %vm2732_vm9, %v8766_v31, %v2695_v47 }
 0x2da   : > { %3057 = vrot.lane.b32.xlu0 %v11004_v57, %s7117_s27  ;;  %2893 = vmatpush1.bf16.msra.mxu0 %v2757_v45  ;;  %v1590_v52 = vpop.f32.mrf.mxu1  ;;  %v1637_v16 = vpop.f32.mrf.mxu0 }
 0x2db   : > { %v2677_v49 = vpop.permute.xlu1 %2676  ;;  %v2697_v15 = vpop.permute.xlu0 %2696  ;;  %v8831_v5 = vadd.f32 %v1590_v52, %v8609_v33  ;;  %v8834_v11 = vadd.f32 %v1637_v16, %v8650_v20 }
 0x2dc   : > { %v2746_v62 = vsel %vm2732_vm9, %v2695_v47, %v2697_v15  ;;  %v1592_v38 = vpop.f32.mrf.mxu1  ;;  %v8884_v52 = vpop.f32.mrf.mxu0 }
 0x2dd   : > { %3466 = vrot.lane.b32.xlu1 %v8104_v17, %s7118_s9  ;;  %2851 = vmatprep.subr.bf16.mxu1 %v2746_v62  ;;  %v8842_v58 = vadd.f32 %v1592_v38, %v8620_v41  ;;  %v2747_v17 = vsel %vm2732_vm9, %v2697_v15, %v2699_v6  ;;  %v7079_v41 = vld [vmem:[#allocation2 + $0x4] ss:$48 sps:$4 sm:$0xff]  }
 0x2de   : > { %3414 = vrot.lane.b32.xlu0 %v8394_v53, %s7118_s9  ;;  %2852 = vmatpush1.bf16.msra.mxu1 %v2745_v55  ;;  %v1594_v33 = vpop.f32.mrf.mxu1 }
 0x2df   : > { %v2725_v20 = vpop.permute.xlu1 %2724  ;;  %v2701_v21 = vpop.permute.xlu0 %2700  ;;  %v8847_v25 = vadd.f32 %v1594_v33, %v8630_v4  ;;  %v2735_v4 = vsel %vm2732_vm9, %v8764_v61, %v2673_v39 }
 0x2e0   : > { %v2748_v35 = vsel %vm2732_vm9, %v2699_v6, %v2701_v21 }
 0x2e1   : > { %3440 = vrot.lane.b32.xlu1 %v8122_v27, %s7118_s9  ;;  %2894 = vmatprep.subr.bf16.mxu0 %v2748_v35 }
 0x2e2   : > { %3412 = vrot.lane.b32.xlu0 %v7079_v41, %s7118_s9  ;;  %2895 = vmatpush1.bf16.msra.mxu0 %v2747_v17 }
 0x2e3   : > { %v2729_v53 = vpop.permute.xlu1 %2728  ;;  %v2675_v31 = vpop.permute.xlu0 %2674 }
 0x2e4   : > { %v2736_v47 = vsel %vm2732_vm9, %v2673_v39, %v2675_v31 }
 0x2e5   : > { %3444 = vrot.lane.b32.xlu1 %v8136_v13, %s7118_s9  ;;  %2853 = vmatprep.subr.bf16.mxu1 %v2736_v47  ;;  %v2737_v13 = vsel %vm2732_vm9, %v2675_v31, %v2677_v49 }
 0x2e6   : > { %3464 = vrot.lane.b32.xlu0 %v8035_v43, %s7118_s9  ;;  %2854 = vmatpush1.bf16.msra.mxu1 %v2735_v4  ;;  %v8872_v43 = vpop.f32.mrf.mxu1 }
 0x2e7   : > { %v2703_v27 = vpop.permute.xlu1 %2702  ;;  %v8861_v6 = vpop.permute.xlu0 %2678 }
 0x2e8   : > { %v2738_v40 = vsel %vm2732_vm9, %v2677_v49, %v8861_v6 }
 0x2e9   : > { %3418 = vrot.lane.b32.xlu1 %v8417_v19, %s7118_s9  ;;  %6883 = vmatmul.mubr.msk.bf16.vlgmr.msra.gmra.mxu1 %vm476_vm3, %v8799_v37 }
 0x2ea   : > { %3468 = vrot.lane.b32.xlu0 %v8108_v36, %s7118_s9  ;;  %2896 = vmatprep.subr.bf16.mxu0 %v2738_v40  ;;  %v2759_v36 = vsel %vm2732_vm9, %v8814_v50, %v2725_v20 }
 0x2eb   : > { %2897 = vmatpush1.bf16.msra.mxu0 %v2737_v13  ;;  %v2707_v61 = vpop.permute.xlu1 %2706  ;;  %v2727_v39 = vpop.permute.xlu0 %2726  ;;  %2957 = vmatprep.mubr.bf16.mxu1 %v10971_v34 }
 0x2ec   : > { %v2760_v45 = vsel %vm2732_vm9, %v2725_v20, %v2727_v39  ;;  %v2761_v50 = vsel %vm2732_vm9, %v2727_v39, %v2729_v53 }
 0x2ed   : > { %3422 = vrot.lane.b32.xlu1 %v8327_v56, %s7118_s9  ;;  %2935 = vmatprep.subr.bf16.mxu1 %v2760_v45 }
 0x2ee   : > { %3442 = vrot.lane.b32.xlu0 %v8073_v1, %s7118_s9  ;;  %6884 = vmatmul.mubr.msk.bf16.vlgmr.msra.gmra.mxu0 %vm476_vm3, %v8799_v37  ;;  %v1676_v19 = vpop.f32.mrf.mxu1 }
 0x2ef   : > { %2936 = vmatpush1.bf16.msra.mxu1 %v2759_v36  ;;  %v2681_v16 = vpop.permute.xlu1 %2680  ;;  %v2731_v49 = vpop.permute.xlu0 %2730  ;;  %3000 = vmatprep.mubr.bf16.mxu0 %v10971_v34  ;;  %v8888_v56 = vadd.f32 %v1676_v19, %v8653_v51 }
 0x2f0   : > { %v2762_v15 = vsel %vm2732_vm9, %v2729_v53, %v2731_v49  ;;  %v1678_v1 = vpop.f32.mrf.mxu1 }
 0x2f1   : > { %3470 = vrot.lane.b32.xlu1 %v8169_v18, %s7118_s9  ;;  %2978 = vmatprep.subr.bf16.mxu0 %v2762_v15  ;;  %v8895_v62 = vadd.f32 %v1678_v1, %v8663_v0 }
 0x2f2   : > { %3446 = vrot.lane.b32.xlu0 %v8140_v9, %s7118_s9  ;;  %2979 = vmatpush1.bf16.msra.mxu0 %v2761_v50  ;;  %v1680_v38 = vpop.f32.mrf.mxu1  ;;  %v1719_v55 = vpop.f32.mrf.mxu0  ;;  %v2749_v9 = vsel %vm2732_vm9, %v2701_v21, %v2703_v27 }
 0x2f3   : > { %v2685_v51 = vpop.permute.xlu1 %2684  ;;  %v2705_v33 = vpop.permute.xlu0 %2704  ;;  %v8900_v20 = vadd.f32 %v1680_v38, %v8671_v28  ;;  %v8903_v35 = vadd.f32 %v1719_v55, %v8729_v46 }
 0x2f4   : > { %v2750_v18 = vsel %vm2732_vm9, %v2703_v27, %v2705_v33  ;;  %v1721_v17 = vpop.f32.mrf.mxu0 }
 0x2f5   : > { %3474 = vrot.lane.b32.xlu1 %v8188_v22, %s7118_s9  ;;  %2937 = vmatprep.subr.bf16.mxu1 %v2750_v18  ;;  %v8910_v0 = vadd.f32 %v1721_v17, %v8738_v48  ;;  %v2751_v22 = vsel %vm2732_vm9, %v2705_v33, %v2707_v61 }
 0x2f6   : > { %3420 = vrot.lane.b32.xlu0 %v8457_v3, %s7118_s9  ;;  %2938 = vmatpush1.bf16.msra.mxu1 %v2749_v9  ;;  %v1723_v28 = vpop.f32.mrf.mxu0 }
 0x2f7   : > { %v3086_v41 = vpop.permute.xlu1 %3085  ;;  %v2709_v46 = vpop.permute.xlu0 %2708  ;;  %v8915_v53 = vadd.f32 %v1723_v28, %v8741_v42  ;;  %v2739_v42 = vsel %vm2732_vm9, %v8861_v6, %v2681_v16  ;;  %v7080_v6 = vld [vmem:[#allocation2 + $0x20] ss:$48 sps:$4 sm:$0xff]  }
 0x2f8   : > { %v2752_v31 = vsel %vm2732_vm9, %v2707_v61, %v2709_v46  ;;  %v8964_v15 = vpop.f32.mrf.mxu0 }
 0x2f9   : > { %3448 = vrot.lane.b32.xlu1 %v8199_v14, %s7118_s9  ;;  %2980 = vmatprep.subr.bf16.mxu0 %v2752_v31 }
 0x2fa   : > { %3424 = vrot.lane.b32.xlu0 %v8473_v2, %s7118_s9  ;;  %2981 = vmatpush1.bf16.msra.mxu0 %v2751_v22 }
 0x2fb   : > { %v3090_v3 = vpop.permute.xlu1 %3089  ;;  %v2683_v48 = vpop.permute.xlu0 %2682 }
 0x2fc   : > { %v2740_v21 = vsel %vm2732_vm9, %v2681_v16, %v2683_v48  ;;  %v2741_v4 = vsel %vm2732_vm9, %v2683_v48, %v2685_v51 }
 0x2fd   : > { %3452 = vrot.lane.b32.xlu1 %v8343_v24, %s7118_s9  ;;  %2939 = vmatprep.subr.bf16.mxu1 %v2740_v21 }
 0x2fe   : > { %3472 = vrot.lane.b32.xlu0 %v8126_v7, %s7118_s9  ;;  %2940 = vmatpush1.bf16.msra.mxu1 %v2739_v42 }
 0x2ff   : > { %v3084_v14 = vpop.permute.xlu1 %3083  ;;  %v2687_v47 = vpop.permute.xlu0 %2686 }
 0x300   : > { %v2742_v2 = vsel %vm2732_vm9, %v2685_v51, %v2687_v47  ;;  %v3126_v40 = vsel %vm3105_vm10, %v3084_v14, %v3086_v41 }
 0x301   : > { %6885 = vmatmul.mubr.msk.bf16.vlgmr.msra.gmra.mxu1 %vm476_vm3, %v8799_v37  ;;  %2982 = vmatprep.subr.bf16.mxu0 %v2742_v2 }
 0x302   : > { %3476 = vrot.lane.b32.xlu0 %v8132_v29, %s7118_s9  ;;  %2983 = vmatpush1.bf16.msra.mxu0 %v2741_v4  ;;  %v8944_v29 = vpop.f32.mrf.mxu1 }
 0x303   : > { %v3066_v24 = vpop.permute.xlu1 %3065  ;;  %v3088_v27 = vpop.permute.xlu0 %3087  ;;  %3426 = vrot.lane.b32.xlu1 %v7080_v6, %s7118_s9  ;;  %3201 = vmatprep.mubr.bf16.mxu1 %v10971_v34 }
 0x304   : > { %v3127_v7 = vsel %vm3105_vm10, %v3086_v41, %v3088_v27 }
 0x305   : > { %6886 = vmatmul.mubr.msk.bf16.vlgmr.msra.gmra.mxu0 %vm476_vm3, %v8799_v37  ;;  %3179 = vmatprep.subr.bf16.mxu1 %v3127_v7  ;;  %v3128_v37 = vsel %vm3105_vm10, %v3088_v27, %v3090_v3 }
 0x306   : > { %3450 = vrot.lane.b32.xlu0 %v8173_v8, %s7118_s9  ;;  %3180 = vmatpush1.bf16.msra.mxu1 %v3126_v40 }
 0x307   : > { %v8946_v13 = vpop.permute.xlu1 %3069  ;;  %v3092_v61 = vpop.permute.xlu0 %3091  ;;  %3430 = vrot.lane.b32.xlu1 %v11004_v57, %s7118_s9  ;;  %3244 = vmatprep.mubr.bf16.mxu0 %v10971_v34 }
 0x308   : > { %v3129_v39 = vsel %vm3105_vm10, %v3090_v3, %v3092_v61 }
 0x309   : > { %3222 = vmatprep.subr.bf16.mxu0 %v3129_v39 }
 0x30a   : > { %3454 = vrot.lane.b32.xlu0 %v11002_v23, %s7118_s9  ;;  %3223 = vmatpush1.bf16.msra.mxu0 %v3128_v37  ;;  %v1762_v8 = vpop.f32.mrf.mxu1 }
 0x30b   : > { %v3042_v45 = vpop.permute.xlu1 %3041  ;;  %v3064_v36 = vpop.permute.xlu0 %3063  ;;  %v8956_v19 = vadd.f32 %v1762_v8, %v8744_v44 }
 0x30c   : > { %v3117_v16 = vsel %vm3105_vm10, %v3064_v36, %v3066_v24  ;;  %v1764_v57 = vpop.f32.mrf.mxu1 }
 0x30d   : > { %3181 = vmatprep.subr.bf16.mxu1 %v3117_v16  ;;  %v8960_v49 = vadd.f32 %v1764_v57, %v8752_v59 }
 0x30e   : > { %3428 = vrot.lane.b32.xlu0 %v8562_v10, %s7118_s9  ;;  %v1766_v23 = vpop.f32.mrf.mxu1 }
 0x30f   : > { %v3046_v1 = vpop.permute.xlu1 %3045  ;;  %v3068_v50 = vpop.permute.xlu0 %3067  ;;  %v8967_v38 = vadd.f32 %v1766_v23, %v8755_v26 }
 0x310   : > { %v3119_v44 = vsel %vm3105_vm10, %v3068_v50, %v8946_v13  ;;  %v3118_v55 = vsel %vm3105_vm10, %v3066_v24, %v3068_v50  ;;  %v9003_v47 = vpop.f32.mrf.mxu1 }
 0x311   : > { %3224 = vmatprep.subr.bf16.mxu0 %v3119_v44 }
 0x312   : > { %3432 = vrot.lane.b32.xlu0 %v8582_v12, %s7118_s9  ;;  %3225 = vmatpush1.bf16.msra.mxu0 %v3118_v55  ;;  %v2081_v59 = vpop.f32.mrf.mxu0 }
 0x313   : > { %v3040_v10 = vpop.permute.xlu1 %3039  ;;  %v3062_v51 = vpop.permute.xlu0 %3061  ;;  %v8975_v33 = vadd.f32 %v2081_v59, %v8831_v5  ;;  %v8989_v5 = vld [vmem:[%s10914_s1 + $0x38] sm:$0xff]  }
 0x314   : > { %v3116_v18 = vsel %vm3105_vm10, %v3062_v51, %v3064_v36  ;;  %v2083_v26 = vpop.f32.mrf.mxu0  ;;  %v3106_v28 = vsel %vm3105_vm10, %v3040_v10, %v3042_v45 }
 0x315   : > { %3182 = vmatpush1.bf16.msra.mxu1 %v3116_v18  ;;  %v8979_v17 = vadd.f32 %v2083_v26, %v8842_v58 }
 0x316   : > { %v2085_v9 = vpop.f32.mrf.mxu0 }
 0x317   : > { %v3096_v41 = vpop.permute.xlu1 %3095  ;;  %v3044_v46 = vpop.permute.xlu0 %3043  ;;  %v8983_v12 = vadd.f32 %v2085_v9, %v8847_v25 }
 0x318   : > { %v3107_v31 = vsel %vm3105_vm10, %v3042_v45, %v3044_v46  ;;  %v3108_v25 = vsel %vm3105_vm10, %v3044_v46, %v3046_v1  ;;  %v9016_v8 = vpop.f32.mrf.mxu0 }
 0x319   : > { %3183 = vmatprep.subr.bf16.mxu1 %v3107_v31 }
 0x31a   : > { %3184 = vmatpush1.bf16.msra.mxu1 %v3106_v28 }
 0x31b   : > { %v8991_v22 = vpop.permute.xlu1 %3099  ;;  %v3048_v58 = vpop.permute.xlu0 %3047 }
 0x31c   : > { %v3109_v3 = vsel %vm3105_vm10, %v3046_v1, %v3048_v58 }
 0x31d   : > { %6890 = vmatmul.mubr.msk.bf16.vlgmr.msra.gmra.mxu1 %vm476_vm3, %v8989_v5  ;;  %3226 = vmatprep.subr.bf16.mxu0 %v3109_v3 }
 0x31e   : > { %3227 = vmatpush1.bf16.msra.mxu0 %v3108_v25  ;;  %3287 = vmatprep.mubr.bf16.mxu1 %v10971_v34 }
 0x31f   : > { %v3074_v48 = vpop.permute.xlu1 %3073  ;;  %v3094_v21 = vpop.permute.xlu0 %3093 }
 0x320   : > { %v3131_v42 = vsel %vm3105_vm10, %v3094_v21, %v3096_v41  ;;  %v3130_v14 = vsel %vm3105_vm10, %v3092_v61, %v3094_v21 }
 0x321   : > { %6891 = vmatmul.mubr.msk.bf16.vlgmr.msra.gmra.mxu0 %vm476_vm3, %v8989_v5  ;;  %3265 = vmatprep.subr.bf16.mxu1 %v3131_v42 }
 0x322   : > { %3266 = vmatpush1.bf16.msra.mxu1 %v3130_v14  ;;  %3330 = vmatprep.mubr.bf16.mxu0 %v10971_v34 }
 0x323   : > { %v9005_v2 = vpop.permute.xlu1 %3077  ;;  %v3098_v4 = vpop.permute.xlu0 %3097 }
 0x324   : > { %v3133_v24 = vsel %vm3105_vm10, %v3098_v4, %v8991_v22  ;;  %v3132_v27 = vsel %vm3105_vm10, %v3096_v41, %v3098_v4 }
 0x325   : > { %3308 = vmatprep.subr.bf16.mxu0 %v3133_v24 }
 0x326   : > { %3309 = vmatpush1.bf16.msra.mxu0 %v3132_v27  ;;  %v2124_v6 = vpop.f32.mrf.mxu1 }
 0x327   : > { %v3052_v7 = vpop.permute.xlu1 %3051  ;;  %v3072_v40 = vpop.permute.xlu0 %3071  ;;  %v9011_v61 = vadd.f32 %v2124_v6, %v8818_v30 }
 0x328   : > { %v3121_v39 = vsel %vm3105_vm10, %v3072_v40, %v3074_v48  ;;  %v3120_v37 = vsel %vm3105_vm10, %v8946_v13, %v3072_v40  ;;  %v2126_v45 = vpop.f32.mrf.mxu1 }
 0x329   : > { %3267 = vmatprep.subr.bf16.mxu1 %v3121_v39  ;;  %v9019_v36 = vadd.f32 %v2126_v45, %v8826_v54 }
 0x32a   : > { %3268 = vmatpush1.bf16.msra.mxu1 %v3120_v37  ;;  %v2128_v16 = vpop.f32.mrf.mxu1  ;;  %v2167_v57 = vpop.f32.mrf.mxu0 }
 0x32b   : > { %v9021_v23 = vpop.permute.xlu1 %3055  ;;  %v3076_v1 = vpop.permute.xlu0 %3075  ;;  %v9024_v30 = vadd.f32 %v2128_v16, %v8834_v11  ;;  %v9027_v50 = vadd.f32 %v2167_v57, %v8888_v56 }
 0x32c   : > { %v3123_v13 = vsel %vm3105_vm10, %v3076_v1, %v9005_v2  ;;  %v3122_v44 = vsel %vm3105_vm10, %v3074_v48, %v3076_v1  ;;  %v2169_v55 = vpop.f32.mrf.mxu0  ;;  %v9056_v48 = vpop.f32.mrf.mxu1 }
 0x32d   : > { %3310 = vmatprep.subr.bf16.mxu0 %v3123_v13  ;;  %v9033_v54 = vadd.f32 %v2169_v55, %v8895_v62 }
 0x32e   : > { %3311 = vmatpush1.bf16.msra.mxu0 %v3122_v44  ;;  %v2171_v59 = vpop.f32.mrf.mxu0 }
 0x32f   : > { %v3104_v10 = vpop.permute.xlu1 %3103  ;;  %v3050_v51 = vpop.permute.xlu0 %3049  ;;  %v9036_v11 = vadd.f32 %v2171_v59, %v8900_v20 }
 0x330   : > { %v3111_v56 = vsel %vm3105_vm10, %v3050_v51, %v3052_v7  ;;  %v3110_v18 = vsel %vm3105_vm10, %v3048_v58, %v3050_v51  ;;  %v9062_v24 = vpop.f32.mrf.mxu0 }
 0x331   : > { %3269 = vmatprep.subr.bf16.mxu1 %v3111_v56 }
 0x332   : > { %3270 = vmatpush1.bf16.msra.mxu1 %v3110_v18 }
 0x333   : > { %v9040_v26 = vpop.permute.xlu1 %3460  ;;  %v3054_v9 = vpop.permute.xlu0 %3053 }
 0x334   : > { %v3113_v62 = vsel %vm3105_vm10, %v3054_v9, %v9021_v23  ;;  %v3112_v28 = vsel %vm3105_vm10, %v3052_v7, %v3054_v9 }
 0x335   : > { %6892 = vmatmul.mubr.msk.bf16.vlgmr.msra.gmra.mxu1 %vm476_vm3, %v8989_v5  ;;  %3312 = vmatprep.subr.bf16.mxu0 %v3113_v62 }
 0x336   : > { %3313 = vmatpush1.bf16.msra.mxu0 %v3112_v28  ;;  %3373 = vmatprep.mubr.bf16.mxu1 %v10971_v34 }
 0x337   : > { %v3080_v20 = vpop.permute.xlu1 %3079  ;;  %v3102_v41 = vpop.permute.xlu0 %3101 }
 0x338   : > { %v3135_v46 = vsel %vm3105_vm10, %v3102_v41, %v3104_v10  ;;  %v3134_v31 = vsel %vm3105_vm10, %v8991_v22, %v3102_v41  ;;  %v3124_v1 = vsel %vm3105_vm10, %v9005_v2, %v3080_v20 }
 0x339   : > { %6893 = vmatmul.mubr.msk.bf16.vlgmr.msra.gmra.mxu0 %vm476_vm3, %v8989_v5  ;;  %3351 = vmatprep.subr.bf16.mxu1 %v3135_v46 }
 0x33a   : > { %3352 = vmatpush1.bf16.msra.mxu1 %v3134_v31  ;;  %3574 = vmatprep.mubr.bf16.mxu0 %v10971_v34 }
 0x33b   : > { %v3437_v58 = vpop.permute.xlu1 %3436  ;;  %v3459_v3 = vpop.permute.xlu0 %3458 }
 0x33c   : > { %v3500_v25 = vsel %vm3478_vm11, %v3459_v3, %v9040_v26 }
 0x33d   : > { %3552 = vmatprep.subr.bf16.mxu0 %v3500_v25 }
 0x33e   : > { %v2210_v21 = vpop.f32.mrf.mxu1 }
 0x33f   : > { %v3435_v42 = vpop.permute.xlu1 %3434  ;;  %v3457_v14 = vpop.permute.xlu0 %3456  ;;  %v9059_v22 = vadd.f32 %v2210_v21, %v8903_v35 }
 0x340   : > { %v3499_v4 = vsel %vm3478_vm11, %v3457_v14, %v3459_v3  ;;  %v2212_v27 = vpop.f32.mrf.mxu1  ;;  %v3489_v59 = vsel %vm3478_vm11, %v3435_v42, %v3437_v58 }
 0x341   : > { %3553 = vmatpush1.bf16.msra.mxu0 %v3499_v4  ;;  %v9065_v6 = vadd.f32 %v2212_v27, %v8910_v0 }
 0x342   : > { %v2214_v7 = vpop.f32.mrf.mxu1  ;;  %v2253_v40 = vpop.f32.mrf.mxu0 }
 0x343   : > { %v3060_v39 = vpop.permute.xlu1 %3059  ;;  %v3082_v37 = vpop.permute.xlu0 %3081  ;;  %v9068_v45 = vadd.f32 %v2214_v7, %v8915_v53  ;;  %v9071_v16 = vadd.f32 %v2253_v40, %v8956_v19 }
 0x344   : > { %v3125_v35 = vsel %vm3105_vm10, %v3080_v20, %v3082_v37  ;;  %v2255_v57 = vpop.f32.mrf.mxu0  ;;  %v9113_v27 = vpop.f32.mrf.mxu1 }
 0x345   : > { %3353 = vmatprep.subr.bf16.mxu1 %v3125_v35  ;;  %v9077_v0 = vadd.f32 %v2255_v57, %v8960_v49 }
 0x346   : > { %3354 = vmatpush1.bf16.msra.mxu1 %v3124_v1  ;;  %v2257_v13 = vpop.f32.mrf.mxu0 }
 0x347   : > { %v9079_v44 = vpop.permute.xlu1 %3416  ;;  %v9082_v53 = vadd.f32 %v2257_v13, %v8967_v38 }
 0x348   : > { %v3439_v55 = vpop.permute.xlu0 %3438  ;;  %v9106_v31 = vpop.f32.mrf.mxu0 }
 0x349   : > { %v3490_v19 = vsel %vm3478_vm11, %v3437_v58, %v3439_v55 }
 0x34a   : > { %3554 = vmatprep.subr.bf16.mxu0 %v3490_v19 }
 0x34b   : > { %3555 = vmatpush1.bf16.msra.mxu0 %v3489_v59  ;;  %v3463_v10 = vpop.permute.xlu1 %3462 }
 0x34c   : > { %v3058_v51 = vpop.permute.xlu0 %3057  ;;  %v3501_v46 = vsel %vm3478_vm11, %v9040_v26, %v3463_v10 }
 0x34d   : > { %v3115_v2 = vsel %vm3105_vm10, %v3058_v51, %v3060_v39  ;;  %v3114_v49 = vsel %vm3105_vm10, %v9021_v23, %v3058_v51  ;;  %v9098_v23 = vld [vmem:[%s10914_s1 + $0x40] sm:$0xff]  }
 0x34e   : > { %3355 = vmatprep.subr.bf16.mxu1 %v3115_v2 }
 0x34f   : > { %3356 = vmatpush1.bf16.msra.mxu1 %v3114_v49  ;;  %v3467_v56 = vpop.permute.xlu1 %3466 }
 0x350   : > { %v3415_v18 = vpop.permute.xlu0 %3414 }
 0x351   : > { %v3480_v38 = vsel %vm3478_vm11, %v3415_v18, %v9079_v44 }
 0x352   : > { %6894 = vmatmul.mubr.msk.bf16.vlgmr.msra.gmra.mxu1 %vm476_vm3, %v8989_v5  ;;  %3556 = vmatprep.subr.bf16.mxu0 %v3480_v38 }
 0x353   : > { %v3441_v9 = vpop.permute.xlu1 %3440  ;;  %3617 = vmatprep.mubr.bf16.mxu1 %v10971_v34 }
 0x354   : > { %v3413_v62 = vpop.permute.xlu0 %3412  ;;  %v3491_v57 = vsel %vm3478_vm11, %v3439_v55, %v3441_v9 }
 0x355   : > { %v3479_v28 = vsel %vm3478_vm11, %v3413_v62, %v3415_v18 }
 0x356   : > { %3557 = vmatpush1.bf16.msra.mxu0 %v3479_v28 }
 0x357   : > { %v3445_v20 = vpop.permute.xlu1 %3444 }
 0x358   : > { %v3465_v41 = vpop.permute.xlu0 %3464 }
 0x359   : > { %6898 = vmatmul.mubr.msk.bf16.vlgmr.msra.gmra.mxu0 %vm476_vm3, %v9098_v23  ;;  %v3502_v5 = vsel %vm3478_vm11, %v3463_v10, %v3465_v41  ;;  %v3503_v42 = vsel %vm3478_vm11, %v3465_v41, %v3467_v56 }
 0x35a   : > { %3595 = vmatprep.subr.bf16.mxu1 %v3502_v5  ;;  %3660 = vmatprep.mubr.bf16.mxu0 %v10971_v34 }
 0x35b   : > { %3596 = vmatpush1.bf16.msra.mxu1 %v3501_v46  ;;  %v3419_v58 = vpop.permute.xlu1 %3418 }
 0x35c   : > { %v3469_v3 = vpop.permute.xlu0 %3468  ;;  %v3481_v55 = vsel %vm3478_vm11, %v9079_v44, %v3419_v58 }
 0x35d   : > { %v3504_v25 = vsel %vm3478_vm11, %v3467_v56, %v3469_v3 }
 0x35e   : > { %v2500_v21 = vpop.f32.mrf.mxu0  ;;  %3638 = vmatprep.subr.bf16.mxu0 %v3504_v25 }
 0x35f   : > { %v9111_v14 = vadd.f32 %v2500_v21, %v9011_v61  ;;  %3639 = vmatpush1.bf16.msra.mxu0 %v3503_v42  ;;  %v3423_v40 = vpop.permute.xlu1 %3422  ;;  %v9123_v61 = vpop.f32.mrf.mxu1 }
 0x360   : > { %v2502_v4 = vpop.f32.mrf.mxu0  ;;  %v3443_v7 = vpop.permute.xlu0 %3442 }
 0x361   : > { %v9116_v26 = vadd.f32 %v2502_v4, %v9019_v36  ;;  %v3492_v37 = vsel %vm3478_vm11, %v3441_v9, %v3443_v7  ;;  %v3493_v36 = vsel %vm3478_vm11, %v3443_v7, %v3445_v20  ;;  %v9127_v19 = vpop.f32.mrf.mxu1 }
 0x362   : > { %v2504_v39 = vpop.f32.mrf.mxu0  ;;  %3597 = vmatprep.subr.bf16.mxu1 %v3492_v37 }
 0x363   : > { %v9120_v35 = vadd.f32 %v2504_v39, %v9024_v30  ;;  %3598 = vmatpush1.bf16.msra.mxu1 %v3491_v57  ;;  %v3471_v59 = vpop.permute.xlu1 %3470  ;;  %v9132_v51 = vpop.f32.mrf.mxu1 }
 0x364   : > { %v3447_v1 = vpop.permute.xlu0 %3446  ;;  %v9142_v28 = vpop.f32.mrf.mxu0  ;;  %v3505_v41 = vsel %vm3478_vm11, %v3469_v3, %v3471_v59 }
 0x365   : > { %v3494_v13 = vsel %vm3478_vm11, %v3445_v20, %v3447_v1  ;;  %v9138_v38 = vpop.f32.mrf.mxu1 }
 0x366   : > { %3640 = vmatprep.subr.bf16.mxu0 %v3494_v13 }
 0x367   : > { %3641 = vmatpush1.bf16.msra.mxu0 %v3493_v36  ;;  %v3475_v49 = vpop.permute.xlu1 %3474 }
 0x368   : > { %v3421_v10 = vpop.permute.xlu0 %3420 }
 0x369   : > { %v3482_v30 = vsel %vm3478_vm11, %v3419_v58, %v3421_v10  ;;  %v3483_v18 = vsel %vm3478_vm11, %v3421_v10, %v3423_v40 }
 0x36a   : > { %3599 = vmatprep.subr.bf16.mxu1 %v3482_v30 }
 0x36b   : > { %3600 = vmatpush1.bf16.msra.mxu1 %v3481_v55  ;;  %v3449_v5 = vpop.permute.xlu1 %3448 }
 0x36c   : > { %v3425_v2 = vpop.permute.xlu0 %3424 }
 0x36d   : > { %v3484_v56 = vsel %vm3478_vm11, %v3423_v40, %v3425_v2 }
 0x36e   : > { %6899 = vmatmul.mubr.msk.bf16.vlgmr.msra.gmra.mxu1 %vm476_vm3, %v9098_v23  ;;  %3642 = vmatprep.subr.bf16.mxu0 %v3484_v56 }
 0x36f   : > { %3643 = vmatpush1.bf16.msra.mxu0 %v3483_v18  ;;  %3703 = vmatprep.mubr.bf16.mxu1 %v10971_v34 }
 0x370   : > { %v3473_v9 = vpop.permute.xlu0 %3472 }
 0x371   : > { %v3506_v62 = vsel %vm3478_vm11, %v3471_v59, %v3473_v9  ;;  %v3507_v3 = vsel %vm3478_vm11, %v3473_v9, %v3475_v49 }
 0x372   : > { %v2543_v44 = vpop.f32.mrf.mxu1  ;;  %6900 = vmatmul.mubr.msk.bf16.vlgmr.msra.gmra.mxu0 %vm476_vm3, %v9098_v23  ;;  %3681 = vmatprep.subr.bf16.mxu1 %v3506_v62 }
 0x373   : > { %v9145_v20 = vadd.f32 %v2543_v44, %v9027_v50  ;;  %3682 = vmatpush1.bf16.msra.mxu1 %v3505_v41  ;;  %3746 = vmatprep.mubr.bf16.mxu0 %v10971_v34 }
 0x374   : > { %v2545_v46 = vpop.f32.mrf.mxu1  ;;  %v3477_v25 = vpop.permute.xlu0 %3476 }
 0x375   : > { %v2643_v58 = vadd.f32 %v2545_v46, %v9033_v54  ;;  %v3508_v4 = vsel %vm3478_vm11, %v3475_v49, %v3477_v25  ;;  %v3453_v54 = vpop.permute.xlu1 %3452 }
 0x376   : > { %v2547_v21 = vpop.f32.mrf.mxu1  ;;  %v2586_v42 = vpop.f32.mrf.mxu0  ;;  %3724 = vmatprep.subr.bf16.mxu0 %v3508_v4  ;;  %v11005_v4 = vld [vmem:[#allocation18_spill] sm:$0xff] }
 0x377   : > { %v2652_v50 = vadd.f32 %v2547_v21, %v9036_v11  ;;  %v9155_v7 = vadd.f32 %v2586_v42, %v9059_v22  ;;  %3725 = vmatpush1.bf16.msra.mxu0 %v3507_v3  ;;  %v3495_v11 = vsel %vm3478_vm11, %v3447_v1, %v3449_v5 }
 0x378   : > { %v2588_v40 = vpop.f32.mrf.mxu0  ;;  %v3451_v37 = vpop.permute.xlu0 %3450 }
 0x379   : > { %v9159_v39 = vadd.f32 %v2588_v40, %v9065_v6  ;;  %v3496_v13 = vsel %vm3478_vm11, %v3449_v5, %v3451_v37  ;;  %v3427_v59 = vpop.permute.xlu1 %3426  ;;  %v3497_v6 = vsel %vm3478_vm11, %v3451_v37, %v3453_v54  ;;  %v2549_v9 = vpop.f32.mrf.mxu1 }
 0x37a   : > { %v2590_v57 = vpop.f32.mrf.mxu0  ;;  %3683 = vmatprep.subr.bf16.mxu1 %v3496_v13 }
 0x37b   : > { %v9163_v36 = vadd.f32 %v2590_v57, %v9068_v45  ;;  %3684 = vmatpush1.bf16.msra.mxu1 %v3495_v11  ;;  %v3485_v45 = vsel %vm3478_vm11, %v3425_v2, %v3427_v59 }
 0x37c   : > { %v3455_v22 = vpop.permute.xlu0 %3454  ;;  %v9181_v25 = vpop.f32.mrf.mxu0 }
 0x37d   : > { %v3498_v10 = vsel %vm3478_vm11, %v3453_v54, %v3455_v22  ;;  %v3431_v49 = vpop.permute.xlu1 %3430 }
 0x37e   : > { %3726 = vmatprep.subr.bf16.mxu0 %v3498_v10 }
 0x37f   : > { %3727 = vmatpush1.bf16.msra.mxu0 %v3497_v6 }
 0x380   : > { %v3429_v30 = vpop.permute.xlu0 %3428 }
 0x381   : > { %v3486_v55 = vsel %vm3478_vm11, %v3427_v59, %v3429_v30  ;;  %v3487_v1 = vsel %vm3478_vm11, %v3429_v30, %v3431_v49 }
 0x382   : > { %3685 = vmatprep.subr.bf16.mxu1 %v3486_v55  ;;  %v11008_v55 = vld [vmem:[#allocation10_spill] sm:$0xff] }
 0x383   : > { %3686 = vmatpush1.bf16.msra.mxu1 %v3485_v45 }
 0x384   : > { %v3433_v56 = vpop.permute.xlu0 %3432 }
 0x385   : > { %v3488_v18 = vsel %vm3478_vm11, %v3431_v49, %v3433_v56 }
 0x386   : > { %6901 = vmatmul.mubr.msk.bf16.vlgmr.msra.gmra.mxu1 %vm476_vm3, %v9098_v23  ;;  %3728 = vmatprep.subr.bf16.mxu0 %v3488_v18 }
 0x387   : > { %3729 = vmatpush1.bf16.msra.mxu0 %v3487_v1  ;;  %4085 = vmatprep.mubr.bf16.mxu1 %v10971_v34 }
 0x38a   : > { %6902 = vmatmul.mubr.msk.bf16.vlgmr.msra.gmra.mxu0 %vm476_vm3, %v9098_v23  ;;  %v11006_v23 = vld [vmem:[#allocation7_spill] sm:$0xff] }
 0x38b   : > { %4128 = vmatprep.mubr.bf16.mxu0 %v10971_v34  ;;  %v957_v3 = vadd.f32 %v11006_v23, %v11005_v4 }
 0x38d   : > { %v1413_v37 = vadd.f32 %v8725_v60, %v957_v3  ;;  %v11007_v60 = vld [vmem:[#allocation12_spill] sm:$0xff] }
 0x38e   : > { %v2629_v2 = vpop.f32.mrf.mxu1  ;;  %v1043_v49 = vadd.f32 %v11008_v55, %v11007_v60 }
 0x38f   : > { %v2646_v44 = vadd.f32 %v2629_v2, %v9071_v16 }
 0x390   : > { %v2631_v62 = vpop.f32.mrf.mxu1 }
 0x391   : > { %v2647_v41 = vadd.f32 %v2631_v62, %v9077_v0  ;;  %v1786_v0 = vadd.f32 %v8944_v29, %v1413_v37  ;;  %v1417_v29 = vadd.f32 %v8801_v32, %v1043_v49  ;;  %v11013_v49 = vld [vmem:[#allocation13_spill] sm:$0xff] }
 0x392   : > { %v2633_v5 = vpop.f32.mrf.mxu1 }
 0x393   : > { %v2656_v46 = vadd.f32 %v2633_v5, %v9082_v53  ;;  %v2277_v13 = vadd.f32 %v9062_v24, %v1786_v0 }
 0x394   : > { %v2635_v24 = vpop.f32.mrf.mxu1 }
 0x395   : > { %v9183_v21 = vpop.f32.mrf.mxu0  ;;  %v2653_v59 = vadd.f32 %v2549_v9, %v2277_v13 }
 0x397   : > { %v9185_v42 = vpop.f32.mrf.mxu0 }
 0x399   : > { %v9189_v40 = vpop.f32.mrf.mxu0 }
 0x39b   : > { %v9192_v16 = vpop.f32.mrf.mxu0 }
 0x3a9   : > { %v9214_v4 = vpop.f32.mrf.mxu1 }
 0x3ab   : > { %v9216_v23 = vpop.f32.mrf.mxu1 }
 0x3ad   : > { %v9218_v32 = vpop.f32.mrf.mxu1 }
 0x3ae   : > { %v2916_v54 = vpop.f32.mrf.mxu0 }
 0x3af   : > { %v9196_v53 = vadd.f32 %v2916_v54, %v9145_v20  ;;  %v1790_v20 = vadd.f32 %v9003_v47, %v1417_v29  ;;  %v9220_v47 = vpop.f32.mrf.mxu1  ;;  %v11014_v29 = vld [vmem:[#allocation21_spill] sm:$0xff] }
 0x3b0   : > { %v2918_v57 = vpop.f32.mrf.mxu0 }
 0x3b1   : > { %v9199_v11 = vadd.f32 %v2918_v57, %v2643_v58  ;;  %v2281_v1 = vadd.f32 %v9106_v31, %v1790_v20  ;;  %v871_v20 = vadd.f32 %v11014_v29, %v11013_v49 }
 0x3b2   : > { %v2920_v22 = vpop.f32.mrf.mxu0 }
 0x3b3   : > { %v9201_v10 = vadd.f32 %v2920_v22, %v2652_v50  ;;  %v2657_v9 = vadd.f32 %v2635_v24, %v2281_v1 }
 0x3b4   : > { %v2922_v6 = vpop.f32.mrf.mxu0 }
 0x3b5   : > { %v9203_v30 = vadd.f32 %v2922_v6, %v2653_v59 }
 0x3c5   : > { %v3002_v45 = vpop.f32.mrf.mxu0 }
 0x3c6   : > { %v9209_v56 = vadd.f32 %v3002_v45, %v2646_v44  ;;  %v9222_v44 = vpop.f32.mrf.mxu1 }
 0x3c7   : > { %v3004_v58 = vpop.f32.mrf.mxu0 }
 0x3c8   : > { %11009 = vst [vmem:[#allocation17_spill] sm:$0xff] %v9209_v56  ;;  %v3020_v18 = vadd.f32 %v3004_v58, %v2647_v41  ;;  %v9224_v3 = vpop.f32.mrf.mxu1  ;;  %v11016_v58 = vld [vmem:[#allocation19_spill] sm:$0xff]  ;;  %v2638_v56 = vadd.f32 %v9123_v61, %v8975_v33 }
 0x3c9   : > { %v3006_v50 = vpop.f32.mrf.mxu0  ;;  %v1409_v1 = vadd.f32 %v11016_v58, %v871_v20  ;;  %v211_v20 = vld [vmem:[#allocation2 + $0x64] sm:$0x11] }
 0x3ca   : > { %v9212_v2 = vadd.f32 %v3006_v50, %v2656_v46  ;;  %v9226_v31 = vpop.f32.mrf.mxu1 }
 0x3cb   : > { %v3008_v62 = vpop.f32.mrf.mxu0  ;;  %11011 = vst [vmem:[#allocation14_spill] sm:$0xff] %v9226_v31 }
 0x3cc   : > { %11010 = vst [vmem:[#allocation15_spill] sm:$0xff] %v9212_v2  ;;  %v3030_v5 = vadd.f32 %v3008_v62, %v2657_v9  ;;  %v9228_v41 = vpop.f32.mrf.mxu1  ;;  %v3807_v9 = vlaneseq  ;;  %v1782_v2 = vadd.f32 %v8872_v43, %v1409_v1  ;;  %v2648_v43 = vadd.f32 %v9132_v51, %v8983_v12 }
 0x3cd   : > { %11012 = vst [vmem:[#allocation18_spill] sm:$0xff] %v9228_v41  ;;  %v3797_v1 = vunpack.c.l.bf16 %v211_v20 }
 0x3ce   : > { %v3808_v29 = vshrl.u32 %v3807_v9, 7 }
 0x3dd   : > { %v3203_v46 = vpop.f32.mrf.mxu1 }
 0x3df   : > { %v3205_v37 = vpop.f32.mrf.mxu1 }
 0x3e1   : > { %v9230_v0 = vpop.f32.mrf.mxu0  ;;  %v3207_v54 = vpop.f32.mrf.mxu1 }
 0x3e3   : > { %v9232_v57 = vpop.f32.mrf.mxu0  ;;  %v3209_v13 = vpop.f32.mrf.mxu1 }
 0x3e5   : > { %v9236_v59 = vpop.f32.mrf.mxu0 }
 0x3e7   : > { %v9240_v60 = vpop.f32.mrf.mxu0 }
 0x3f5   : > { %v9234_v22 = vpop.f32.mrf.mxu1 }
 0x3f7   : > { %v9238_v6 = vpop.f32.mrf.mxu1 }
 0x3f9   : > { %v9242_v55 = vpop.f32.mrf.mxu0  ;;  %v9246_v45 = vpop.f32.mrf.mxu1 }
 0x3fb   : > { %v9248_v24 = vpop.f32.mrf.mxu0  ;;  %v9251_v50 = vpop.f32.mrf.mxu1 }
 0x3fc   : > { %11015 = vst [vmem:[#allocation7_spill] sm:$0xff] %v9248_v24  ;;  %v3011_v24 = vadd.f32 %v9183_v21, %v2638_v56  ;;  %v9274_v21 = vsub.s32 0, %v3808_v29 }
 0x3fd   : > { %v9255_v34 = vpop.f32.mrf.mxu0 }
 0x3fe   : > { %11018 = vst [vmem:[#allocation10_spill] sm:$0xff] %v9255_v34  ;;  %v2639_v34 = vadd.f32 %v9127_v19, %v8979_v17  ;;  %v3384_v33 = vadd.f32 %v3203_v46, %v3011_v24  ;;  %v3810_v51 = vrot.slane %v3797_v1, %v9274_v21  ;;  %v11025_v1 = vld [vmem:[#allocation20_spill] sm:$0xff] }
 0x3ff   : > { %v9265_v58 = vpop.f32.mrf.mxu0 }
 0x400   : > { %v3012_v9 = vadd.f32 %v9185_v42, %v2639_v34  ;;  %v11022_v34 = vld [vmem:[#allocation16_spill] sm:$0xff] }
 0x401   : > { %v11023_v42 = vld [vmem:[#allocation8_spill] sm:$0xff] }
 0x402   : > { %v3385_v19 = vadd.f32 %v3205_v37, %v3012_v9  ;;  %v212_v9 = vld [vmem:[#allocation2 + $0x6c] sm:$0x11] }
 0x412   : > { %v9253_v62 = vpop.f32.mrf.mxu1 }
 0x413   : > { %11017 = vst [vmem:[#allocation12_spill] sm:$0xff] %v9253_v62  ;;  %v2273_v62 = vadd.f32 %v9016_v8, %v1782_v2  ;;  %v3021_v8 = vadd.f32 %v9189_v40, %v2648_v43  ;;  %v914_v40 = vadd.f32 %v11023_v42, %v11022_v34  ;;  %v3389_v34 = vadd.f32 %v9238_v6, %v9199_v11 }
 0x414   : > { %v3377_v41 = vpop.f32.mrf.mxu1 }
 0x415   : > { %v9260_v49 = vadd.f32 %v3377_v41, %v3020_v18  ;;  %v2649_v56 = vadd.f32 %v9138_v38, %v2273_v62  ;;  %v3394_v12 = vadd.f32 %v3207_v54, %v3021_v8 }
 0x416   : > { %v9263_v31 = vpop.f32.mrf.mxu1 }
 0x417   : > { %11019 = vst [vmem:[#allocation13_spill] sm:$0xff] %v9260_v49  ;;  %11020 = vst [vmem:[#allocation21_spill] sm:$0xff] %v9263_v31  ;;  %v3022_v17 = vadd.f32 %v9192_v16, %v2649_v56 }
 0x418   : > { %v3381_v61 = vpop.f32.mrf.mxu1 }
 0x419   : > { %v9272_v18 = vadd.f32 %v3381_v61, %v3030_v5  ;;  %v3576_v41 = vpop.f32.mrf.mxu0  ;;  %v3798_v5 = vunpack.c.h.bf16 %v211_v20  ;;  %v3395_v24 = vadd.f32 %v3209_v13, %v3022_v17  ;;  %v1411_v13 = vadd.f32 %v11025_v1, %v914_v40 }
 0x41a   : > { %v3757_v2 = vadd.f32 %v3576_v41, %v3384_v33 }
 0x41b   : > { %11021 = vst [vmem:[#allocation19_spill] sm:$0xff] %v9272_v18  ;;  %v3578_v49 = vpop.f32.mrf.mxu0  ;;  %v3814_v43 = vrot.slane %v3798_v5, %v9274_v21 }
 0x41c   : > { %v3777_v61 = vmax.f32 %v3757_v2, 0.0  ;;  %v3758_v29 = vadd.f32 %v3578_v49, %v3385_v19  ;;  %v3014_v2 = vadd.f32 %v9216_v23, %v9116_v26  ;;  %v3388_v26 = vadd.f32 %v9234_v22, %v9196_v53 }
 0x41d   : > { %v3580_v46 = vpop.f32.mrf.mxu0  ;;  %v3398_v22 = vadd.f32 %v9246_v45, %v9201_v10 }
 0x41e   : > { %v3767_v18 = vadd.f32 %v3580_v46, %v3394_v12  ;;  %v3847_v33 = vmul.f32 %v3810_v51, %v3777_v61  ;;  %v3778_v16 = vmax.f32 %v3758_v29, 0.0  ;;  %v3799_v12 = vunpack.c.l.bf16 %v212_v9 }
 0x41f   : > { %v3582_v31 = vpop.f32.mrf.mxu0  ;;  %v3387_v5 = vadd.f32 %v9232_v57, %v3014_v2 }
 0x420   : > { %v3787_v38 = vmax.f32 %v3767_v18, 0.0  ;;  %v3768_v62 = vadd.f32 %v3582_v31, %v3395_v24  ;;  %v3848_v56 = vmul.f32 %v3814_v43, %v3778_v16  ;;  %v1784_v31 = vadd.f32 %v8884_v52, %v1411_v13  ;;  %v213_v24 = vld [vmem:[#allocation2 + $0x74] sm:$0x11] }
 0x421   : > { %v3013_v18 = vadd.f32 %v9214_v4, %v9111_v14  ;;  %v3023_v52 = vadd.f32 %v9218_v32, %v9120_v35  ;;  %v3800_v4 = vunpack.c.h.bf16 %v212_v9  ;;  %v3801_v35 = vunpack.c.l.bf16 %v213_v24 }
 0x422   : > { %v3857_v37 = vmul.f32 %v3810_v51, %v3787_v38  ;;  %v3788_v54 = vmax.f32 %v3768_v62, 0.0  ;;  %v2275_v8 = vadd.f32 %v9056_v48, %v1784_v31  ;;  %v3802_v53 = vunpack.c.h.bf16 %v213_v24  ;;  %v11027_v31 = vld [vmem:[#allocation9_spill] sm:$0xff] }
 0x423   : > { %v3386_v17 = vadd.f32 %v9230_v0, %v3013_v18  ;;  %v3396_v61 = vadd.f32 %v9236_v59, %v3023_v52  ;;  %v3822_v59 = vrot.slane %v3800_v4, %v9274_v21  ;;  %v3399_v16 = vadd.f32 %v9251_v50, %v9203_v30 }
 0x424   : > { %v9284_v41 = vpack.c.bf16 %v3857_v37, %v3847_v33  ;;  %v3858_v20 = vmul.f32 %v3814_v43, %v3788_v54  ;;  %v2651_v51 = vadd.f32 %v9142_v28, %v2275_v8  ;;  %v3818_v28 = vrot.slane %v3799_v12, %v9274_v21 }
 0x425   : > { %v3826_v37 = vrot.slane %v3801_v35, %v9274_v21  ;;  %v3830_v10 = vrot.slane %v3802_v53, %v9274_v21 }
 0x426   : > { %11024 = vst [vmem:[#allocation16_spill] sm:$0xff] %v9284_v41  ;;  %3948 = vrot.lane.b32.xlu1 %v9284_v41, %s7109_s5  ;;  %v9289_v49 = vpack.c.bf16 %v3858_v20, %v3848_v56  ;;  %v3024_v48 = vadd.f32 %v9220_v47, %v2651_v51  ;;  %v11026_v56 = vld [vmem:[#allocation11_spill] sm:$0xff] }
 0x427   : > { %v1000_v18 = vadd.f32 %v11027_v31, %v11026_v56 }
 0x428   : > { %v3397_v32 = vadd.f32 %v9240_v60, %v3024_v48 }
 0x42a   : > { %3914 = vrot.lane.b32.xlu1 %v9289_v49, %s7108_s4 }
 0x42e   : > { %v3619_v19 = vpop.f32.mrf.mxu1 }
 0x42f   : > { %v3759_v46 = vadd.f32 %v3619_v19, %v3386_v17 }
 0x430   : > { %v3621_v14 = vpop.f32.mrf.mxu1 }
 0x431   : > { %v3760_v23 = vadd.f32 %v3621_v14, %v3387_v5  ;;  %v3779_v0 = vmax.f32 %v3759_v46, 0.0  ;;  %v1415_v5 = vadd.f32 %v8812_v63, %v1000_v18  ;;  %v3017_v63 = vadd.f32 %v9222_v44, %v9155_v7  ;;  %v11029_v7 = vld [vmem:[#allocation14_spill] sm:$0xff] }
 0x432   : > { %v3623_v29 = vpop.f32.mrf.mxu1  ;;  %v3662_v38 = vpop.f32.mrf.mxu0  ;;  %v3027_v44 = vadd.f32 %v11029_v7, %v9163_v36 }
 0x433   : > { %v3769_v57 = vadd.f32 %v3623_v29, %v3396_v61  ;;  %v3761_v62 = vadd.f32 %v3662_v38, %v3388_v26  ;;  %v3780_v47 = vmax.f32 %v3760_v23, 0.0  ;;  %v3849_v60 = vmul.f32 %v3818_v28, %v3779_v0  ;;  %v214_v61 = vld [vmem:[#allocation2 + $0x7c] sm:$0x11]  ;;  %v11030_v38 = vld [vmem:[#allocation7_spill] sm:$0xff] }
 0x434   : > { %v3625_v42 = vpop.f32.mrf.mxu1  ;;  %v3664_v40 = vpop.f32.mrf.mxu0  ;;  %v1788_v48 = vadd.f32 %v8964_v15, %v1415_v5  ;;  %v3018_v23 = vadd.f32 %v9224_v3, %v9159_v39  ;;  %v3390_v0 = vadd.f32 %v9242_v55, %v3017_v63  ;;  %v3804_v3 = vunpack.c.h.bf16 %v214_v61  ;;  %v11031_v55 = vld [vmem:[#allocation18_spill] sm:$0xff] }
 0x435   : > { %v3789_v43 = vmax.f32 %v3769_v57, 0.0  ;;  %v3770_v33 = vadd.f32 %v3625_v42, %v3397_v32  ;;  %v3762_v54 = vadd.f32 %v3664_v40, %v3389_v34  ;;  %v3781_v6 = vmax.f32 %v3761_v62, 0.0  ;;  %v11032_v62 = vld [vmem:[#allocation10_spill] sm:$0xff] }
 0x436   : > { %v3666_v20 = vpop.f32.mrf.mxu0  ;;  %v3850_v9 = vmul.f32 %v3822_v59, %v3780_v47  ;;  %v2279_v26 = vadd.f32 %v9113_v27, %v1788_v48  ;;  %v3391_v35 = vadd.f32 %v11030_v38, %v3018_v23  ;;  %v215_v27 = vld [vmem:[#allocation2 + $0x84] sm:$0x11]  ;;  %v3400_v34 = vadd.f32 %v11032_v62, %v3027_v44 }
 0x437   : > { %v3859_v11 = vmul.f32 %v3818_v28, %v3789_v43  ;;  %v3790_v1 = vmax.f32 %v3770_v33, 0.0  ;;  %v3771_v13 = vadd.f32 %v3666_v20, %v3398_v22  ;;  %v3782_v8 = vmax.f32 %v3762_v54, 0.0  ;;  %v11033_v47 = vld [vmem:[#allocation17_spill] sm:$0xff] }
 0x438   : > { %v3668_v45 = vpop.f32.mrf.mxu0  ;;  %v3851_v19 = vmul.f32 %v3826_v37, %v3781_v6  ;;  %v3803_v28 = vunpack.c.l.bf16 %v214_v61  ;;  %v2655_v29 = vadd.f32 %v9181_v25, %v2279_v26  ;;  %v3805_v43 = vunpack.c.l.bf16 %v215_v27  ;;  %v11038_v61 = vld [vmem:[#allocation19_spill] sm:$0xff] }
 0x439   : > { %v9321_v2 = vpack.c.bf16 %v3859_v11, %v3849_v60  ;;  %v3860_v30 = vmul.f32 %v3822_v59, %v3790_v1  ;;  %v3791_v50 = vmax.f32 %v3771_v13, 0.0  ;;  %v3772_v17 = vadd.f32 %v3668_v45, %v3399_v16  ;;  %v11034_v59 = vld [vmem:[#allocation12_spill] sm:$0xff]  ;;  %v11035_v1 = vld [vmem:[#allocation15_spill] sm:$0xff]  ;;  %v11036_v13 = vld [vmem:[#allocation21_spill] sm:$0xff] }
 0x43a   : > { %v3852_v46 = vmul.f32 %v3830_v10, %v3782_v8  ;;  %v3028_v57 = vadd.f32 %v11031_v55, %v2655_v29  ;;  %v3392_v42 = vadd.f32 %v11034_v59, %v11033_v47  ;;  %v3834_v36 = vrot.slane %v3803_v28, %v9274_v21 }
 0x43b   : > { %v9323_v12 = vpack.c.bf16 %v3860_v30, %v3850_v9  ;;  %v3861_v51 = vmul.f32 %v3826_v37, %v3791_v50  ;;  %v3792_v52 = vmax.f32 %v3772_v17, 0.0  ;;  %3916 = vrot.lane.b32.xlu0 %v9321_v2, %s7108_s4  ;;  %v3806_v33 = vunpack.c.h.bf16 %v215_v27 }
 0x43c   : > { %v3401_v16 = vadd.f32 %v9265_v58, %v3028_v57  ;;  %v3838_v20 = vrot.slane %v3804_v3, %v9274_v21  ;;  %v3402_v56 = vadd.f32 %v11036_v13, %v11035_v1  ;;  %v3842_v8 = vrot.slane %v3805_v43, %v9274_v21 }
 0x43d   : > { %11028 = vst [vmem:[#allocation8_spill] sm:$0xff] %v9323_v12  ;;  %v9328_v24 = vpack.c.bf16 %v3861_v51, %v3851_v19  ;;  %v3862_v14 = vmul.f32 %v3830_v10, %v3792_v52  ;;  %3918 = vrot.lane.b32.xlu1 %v9323_v12, %s7108_s4  ;;  %v11037_v10 = vld [vmem:[#allocation13_spill] sm:$0xff]  ;;  %v3846_v45 = vrot.slane %v3806_v33, %v9274_v21 }
 0x43f   : > { %v9332_v4 = vpack.c.bf16 %v3862_v14, %v3852_v46  ;;  %3912 = vrot.lane.b32.xlu0 %v9284_v41, %s7108_s4 }
 0x441   : > { %3888 = vrot.lane.b32.xlu1 %v9289_v49, %s7107_s30 }
 0x443   : > { %3890 = vrot.lane.b32.xlu0 %v9321_v2, %s7107_s30 }
 0x445   : > { %3892 = vrot.lane.b32.xlu1 %v9323_v12, %s7107_s30 }
 0x446   : > { %v3705_v15 = vpop.f32.mrf.mxu1 }
 0x447   : > { %v3763_v32 = vadd.f32 %v3705_v15, %v3390_v0  ;;  %3886 = vrot.lane.b32.xlu0 %v9284_v41, %s7107_s30 }
 0x448   : > { %v3707_v39 = vpop.f32.mrf.mxu1 }
 0x449   : > { %v3764_v25 = vadd.f32 %v3707_v39, %v3391_v35  ;;  %v3783_v40 = vmax.f32 %v3763_v32, 0.0 }
 0x44a   : > { %v3709_v53 = vpop.f32.mrf.mxu1  ;;  %v3748_v22 = vpop.f32.mrf.mxu0 }
 0x44b   : > { %v3773_v60 = vadd.f32 %v3709_v53, %v3400_v34  ;;  %v3765_v37 = vadd.f32 %v3748_v22, %v3392_v42  ;;  %3920 = vrot.lane.b32.xlu0 %v9328_v24, %s7108_s4  ;;  %v3784_v54 = vmax.f32 %v3764_v25, 0.0  ;;  %v3853_v9 = vmul.f32 %v3834_v36, %v3783_v40 }
 0x44c   : > { %v3711_v11 = vpop.f32.mrf.mxu1  ;;  %v3750_v6 = vpop.f32.mrf.mxu0 }
 0x44d   : > { %v3793_v31 = vmax.f32 %v3773_v60, 0.0  ;;  %v3774_v18 = vadd.f32 %v3711_v11, %v3401_v16  ;;  %v3766_v58 = vadd.f32 %v3750_v6, %v11037_v10  ;;  %v3785_v17 = vmax.f32 %v3765_v37, 0.0 }
 0x44e   : > { %v3752_v30 = vpop.f32.mrf.mxu0  ;;  %v3854_v52 = vmul.f32 %v3838_v20, %v3784_v54 }
 0x44f   : > { %v3863_v50 = vmul.f32 %v3834_v36, %v3793_v31  ;;  %v3794_v19 = vmax.f32 %v3774_v18, 0.0  ;;  %v3775_v51 = vadd.f32 %v3752_v30, %v3402_v56  ;;  %3894 = vrot.lane.b32.xlu0 %v9328_v24, %s7107_s30  ;;  %v3786_v5 = vmax.f32 %v3766_v58, 0.0 }
 0x450   : > { %v3754_v46 = vpop.f32.mrf.mxu0  ;;  %v3855_v0 = vmul.f32 %v3842_v8, %v3785_v17 }
 0x451   : > { %v9371_v14 = vpack.c.bf16 %v3863_v50, %v3853_v9  ;;  %v3864_v48 = vmul.f32 %v3838_v20, %v3794_v19  ;;  %v3795_v63 = vmax.f32 %v3775_v51, 0.0  ;;  %v3776_v26 = vadd.f32 %v3754_v46, %v11038_v61 }
 0x452   : > { %v3856_v23 = vmul.f32 %v3846_v45, %v3786_v5 }
 0x453   : > { %v9374_v21 = vpack.c.bf16 %v3864_v48, %v3854_v52  ;;  %v3865_v15 = vmul.f32 %v3842_v8, %v3795_v63  ;;  %v3796_v28 = vmax.f32 %v3776_v26, 0.0  ;;  %3924 = vrot.lane.b32.xlu1 %v9371_v14, %s7108_s4  ;;  %3898 = vrot.lane.b32.xlu0 %v9371_v14, %s7107_s30 }
 0x455   : > { %v9380_v29 = vpack.c.bf16 %v3865_v15, %v3855_v0  ;;  %v3866_v7 = vmul.f32 %v3846_v45, %v3796_v28 }
 0x457   : > { %v9382_v44 = vpack.c.bf16 %v3866_v7, %v3856_v23  ;;  %3922 = vrot.lane.b32.xlu1 %v9332_v4, %s7108_s4  ;;  %3926 = vrot.lane.b32.xlu0 %v9374_v21, %s7108_s4 }
 0x459   : > { %11039 = vst [vmem:[#allocation20_spill] sm:$0xff] %v9382_v44 }
 0x45b   : > { %3896 = vrot.lane.b32.xlu1 %v9332_v4, %s7107_s30  ;;  %3950 = vrot.lane.b32.xlu0 %v9289_v49, %s7109_s5 }
 0x45f   : > { %3900 = vrot.lane.b32.xlu1 %v9374_v21, %s7107_s30  ;;  %3902 = vrot.lane.b32.xlu0 %v9380_v29, %s7107_s30 }
 0x463   : > { %3952 = vrot.lane.b32.xlu1 %v9321_v2, %s7109_s5  ;;  %3954 = vrot.lane.b32.xlu0 %v9323_v12, %s7109_s5 }
 0x467   : > { %3928 = vrot.lane.b32.xlu1 %v9380_v29, %s7108_s4  ;;  %3958 = vrot.lane.b32.xlu0 %v9332_v4, %s7109_s5 }
 0x46b   : > { %3956 = vrot.lane.b32.xlu1 %v9328_v24, %s7109_s5  ;;  %3962 = vrot.lane.b32.xlu0 %v9374_v21, %s7109_s5 }
 0x46f   : > { %3960 = vrot.lane.b32.xlu1 %v9371_v14, %s7109_s5  ;;  %4232 = vrot.lane.b32.xlu0 %v9289_v49, %s7110_s6 }
 0x473   : > { %3964 = vrot.lane.b32.xlu1 %v9380_v29, %s7109_s5  ;;  %4236 = vrot.lane.b32.xlu0 %v9323_v12, %s7110_s6 }
 0x477   : > { %4234 = vrot.lane.b32.xlu1 %v9321_v2, %s7110_s6  ;;  %4230 = vrot.lane.b32.xlu0 %v9284_v41, %s7110_s6 }
 0x47b   : > { %4238 = vrot.lane.b32.xlu1 %v9328_v24, %s7110_s6  ;;  %4242 = vrot.lane.b32.xlu0 %v9371_v14, %s7110_s6 }
 0x47f   : > { %4240 = vrot.lane.b32.xlu1 %v9332_v4, %s7110_s6  ;;  %4246 = vrot.lane.b32.xlu0 %v9380_v29, %s7110_s6 }
 0x483   : > { %4244 = vrot.lane.b32.xlu1 %v9374_v21, %s7110_s6  ;;  %5110 = vrot.lane.b32.xlu0 %v9382_v44, %s7108_s4  ;;  %s6702_s4 = scalar_lea.vmem (%p7161_p4), %s10916_s3, %s6970_s18 }
 0x498   : > { %v9432_v38 = vpop.permute.xlu1 %3948 }
 0x49c   : > { %v9434_v35 = vpop.permute.xlu1 %3914 }
 0x4ad   : > { %v3917_v32 = vpop.permute.xlu0 %3916 }
 0x4ae   : > { %v9438_v27 = vsel %vm328_vm1, %v9434_v35, %v3917_v32 }
 0x4af   : > { %v3919_v39 = vpop.permute.xlu1 %3918  ;;  %3986 = vrot.lane.b32.xlu0 %v9438_v27, %s7109_s5 }
 0x4b0   : > { %v9443_v3 = vsel %vm328_vm1, %v3917_v32, %v3919_v39 }
 0x4b1   : > { %3988 = vrot.lane.b32.xlu1 %v9443_v3, %s7109_s5  ;;  %v3913_v55 = vpop.permute.xlu0 %3912 }
 0x4b2   : > { %v9449_v57 = vsel %vm328_vm1, %v3913_v55, %v9434_v35 }
 0x4b3   : > { %v9451_v62 = vpop.permute.xlu1 %3888  ;;  %3984 = vrot.lane.b32.xlu0 %v9449_v57, %s7109_s5 }
 0x4b5   : > { %v3891_v34 = vpop.permute.xlu0 %3890 }
 0x4b6   : > { %v9457_v47 = vsel %vm295_vm0, %v9451_v62, %v3891_v34 }
 0x4b7   : > { %v3893_v59 = vpop.permute.xlu1 %3892  ;;  %3968 = vrot.lane.b32.xlu1 %v9457_v47, %s7109_s5 }
 0x4b8   : > { %v9462_v42 = vsel %vm295_vm0, %v3891_v34, %v3893_v59 }
 0x4b9   : > { %3970 = vrot.lane.b32.xlu0 %v9462_v42, %s7109_s5  ;;  %v3887_v25 = vpop.permute.xlu0 %3886 }
 0x4ba   : > { %v9468_v40 = vsel %vm295_vm0, %v3887_v25, %v9451_v62 }
 0x4bb   : > { %3966 = vrot.lane.b32.xlu1 %v9468_v40, %s7109_s5 }
 0x4bd   : > { %4268 = vrot.lane.b32.xlu0 %v9438_v27, %s7110_s6  ;;  %v3921_v53 = vpop.permute.xlu0 %3920 }
 0x4be   : > { %v9489_v43 = vsel %vm328_vm1, %v3919_v39, %v3921_v53 }
 0x4bf   : > { %4270 = vrot.lane.b32.xlu1 %v9443_v3, %s7110_s6 }
 0x4c1   : > { %4266 = vrot.lane.b32.xlu0 %v9449_v57, %s7110_s6  ;;  %v3895_v33 = vpop.permute.xlu0 %3894 }
 0x4c2   : > { %v9505_v54 = vsel %vm295_vm0, %v3893_v59, %v3895_v33 }
 0x4c3   : > { %4250 = vrot.lane.b32.xlu1 %v9457_v47, %s7110_s6 }
 0x4c5   : > { %v3925_v36 = vpop.permute.xlu1 %3924  ;;  %4252 = vrot.lane.b32.xlu0 %v9462_v42, %s7110_s6  ;;  %v3899_v37 = vpop.permute.xlu0 %3898 }
 0x4c7   : > { %4248 = vrot.lane.b32.xlu1 %v9468_v40, %s7110_s6 }
 0x4c9   : > { %4555 = vrot.lane.b32.xlu0 %v9443_v3, %s7112_s7  ;;  %v3923_v22 = vpop.permute.xlu1 %3922  ;;  %v3927_v11 = vpop.permute.xlu0 %3926 }
 0x4ca   : > { %v9510_v20 = vsel %vm328_vm1, %v3923_v22, %v3925_v36  ;;  %v9528_v13 = vsel %vm328_vm1, %v3921_v53, %v3923_v22  ;;  %v9533_v56 = vsel %vm328_vm1, %v3925_v36, %v3927_v11 }
 0x4cb   : > { %4553 = vrot.lane.b32.xlu1 %v9438_v27, %s7112_s7  ;;  %11040 = vst [vmem:[#allocation11_spill] sm:$0xff] %v9533_v56 }
 0x4cd   : > { %3990 = vrot.lane.b32.xlu0 %v9489_v43, %s7109_s5  ;;  %v3897_v16 = vpop.permute.xlu1 %3896  ;;  %v9523_v1 = vpop.permute.xlu0 %3950 }
 0x4ce   : > { %v9500_v60 = vsel %vm295_vm0, %v3895_v33, %v3897_v16  ;;  %v9517_v6 = vsel %vm295_vm0, %v3897_v16, %v3899_v37 }
 0x4cf   : > { %4551 = vrot.lane.b32.xlu1 %v9449_v57, %s7112_s7 }
 0x4d1   : > { %4272 = vrot.lane.b32.xlu0 %v9489_v43, %s7110_s6  ;;  %v3901_v31 = vpop.permute.xlu1 %3900  ;;  %v9537_v18 = vpop.permute.xlu0 %3902 }
 0x4d2   : > { %v9542_v9 = vsel %vm295_vm0, %v3899_v37, %v3901_v31  ;;  %v9582_v19 = vsel %vm295_vm0, %v3901_v31, %v9537_v18  ;;  %v9685_v31 = vld [vmem:[%s10915_s2 + $0x8] sm:$0xff]  }
 0x4d3   : > { %4535 = vrot.lane.b32.xlu1 %v9457_v47, %s7112_s7  ;;  %11041 = vst [vmem:[#allocation9_spill] sm:$0xff] %v9542_v9 }
 0x4d5   : > { %3974 = vrot.lane.b32.xlu0 %v9500_v60, %s7109_s5  ;;  %v9546_v8 = vpop.permute.xlu1 %3952  ;;  %v9550_v10 = vpop.permute.xlu0 %3954 }
 0x4d6   : > { %v4003_v16 = vsel %vm415_vm2, %v9523_v1, %v9546_v8 }
 0x4d7   : > { %3972 = vrot.lane.b32.xlu1 %v9505_v54, %s7109_s5 }
 0x4d9   : > { %3994 = vrot.lane.b32.xlu0 %v9510_v20, %s7109_s5  ;;  %v9556_v58 = vpop.permute.xlu1 %3928  ;;  %v9560_v45 = vpop.permute.xlu0 %3958 }
 0x4da   : > { %11042 = vst [vmem:[#allocation14_spill] sm:$0xff] %v9556_v58  ;;  %v9570_v30 = vsel %vm328_vm1, %v3927_v11, %v9556_v58  ;;  %v4002_v11 = vsel %vm415_vm2, %v9432_v38, %v9523_v1  ;;  %v11047_v1 = vmov 0  }
 0x4db   : > { %4254 = vrot.lane.b32.xlu1 %v9505_v54, %s7110_s6  ;;  %11043 = vst [vmem:[#allocation7_spill] sm:$0xff] %v9570_v30 }
 0x4dd   : > { %3976 = vrot.lane.b32.xlu0 %v9517_v6, %s7109_s5  ;;  %v9572_v50 = vpop.permute.xlu0 %3962  ;;  %v9576_v17 = vpop.permute.xlu1 %3956 }
 0x4df   : > { %4557 = vrot.lane.b32.xlu1 %v9489_v43, %s7112_s7 }
 0x4e1   : > { %4256 = vrot.lane.b32.xlu0 %v9500_v60, %s7110_s6  ;;  %v9586_v51 = vpop.permute.xlu0 %4232  ;;  %v9590_v52 = vpop.permute.xlu1 %3960 }
 0x4e3   : > { %3992 = vrot.lane.b32.xlu1 %v9528_v13, %s7109_s5 }
 0x4e5   : > { %4278 = vrot.lane.b32.xlu0 %v9533_v56, %s7110_s6  ;;  %v9596_v5 = vpop.permute.xlu0 %4236  ;;  %v9600_v46 = vpop.permute.xlu1 %3964 }
 0x4e7   : > { %3996 = vrot.lane.b32.xlu1 %v9533_v56, %s7109_s5 }
 0x4e9   : > { %4260 = vrot.lane.b32.xlu0 %v9542_v9, %s7110_s6  ;;  %v9606_v48 = vpop.permute.xlu0 %4230  ;;  %v9610_v63 = vpop.permute.xlu1 %4234 }
 0x4eb   : > { %3978 = vrot.lane.b32.xlu1 %v9542_v9, %s7109_s5 }
 0x4ed   : > { %4559 = vrot.lane.b32.xlu0 %v9528_v13, %s7112_s7  ;;  %v9616_v61 = vpop.permute.xlu0 %4242  ;;  %v9620_v26 = vpop.permute.xlu1 %4238 }
 0x4ef   : > { %4274 = vrot.lane.b32.xlu1 %v9528_v13, %s7110_s6 }
 0x4f1   : > { %4282 = vrot.lane.b32.xlu0 %v9556_v58, %s7110_s6  ;;  %v9626_v23 = vpop.permute.xlu0 %4246  ;;  %v9630_v0 = vpop.permute.xlu1 %4240 }
 0x4f2   : > { %11044 = vst [vmem:[#allocation18_spill] sm:$0xff] %v9626_v23 }
 0x4f3   : > { %4276 = vrot.lane.b32.xlu1 %v9510_v20, %s7110_s6 }
 0x4f5   : > { %4264 = vrot.lane.b32.xlu0 %v9537_v18, %s7110_s6  ;;  %v9636_v15 = vpop.permute.xlu0 %5110  ;;  %v9640_v28 = vpop.permute.xlu1 %4244 }
 0x4f6   : > { %11045 = vst [vmem:[#allocation10_spill] sm:$0xff] %v9636_v15  ;;  %11046 = vst [vmem:[#allocation17_spill] sm:$0xff] %v9640_v28 }
 0x4f7   : > { %4258 = vrot.lane.b32.xlu1 %v9517_v6, %s7110_s6 }
 0x4f9   : > { %3998 = vrot.lane.b32.xlu0 %v9570_v30, %s7109_s5 }
 0x4fb   : > { %4000 = vrot.lane.b32.xlu1 %v9556_v58, %s7109_s5 }
 0x4fd   : > { %3980 = vrot.lane.b32.xlu0 %v9582_v19, %s7109_s5 }
 0x4ff   : > { %3982 = vrot.lane.b32.xlu1 %v9537_v18, %s7109_s5 }
 0x501   : > { %4537 = vrot.lane.b32.xlu0 %v9462_v42, %s7112_s7 }
 0x503   : > { %4280 = vrot.lane.b32.xlu1 %v9570_v30, %s7110_s6 }
 0x505   : > { %4541 = vrot.lane.b32.xlu0 %v9500_v60, %s7112_s7 }
 0x507   : > { %4262 = vrot.lane.b32.xlu1 %v9582_v19, %s7110_s6 }
 0x509   : > { %4517 = vrot.lane.b32.xlu0 %v9289_v49, %s7112_s7 }
 0x50b   : > { %4539 = vrot.lane.b32.xlu1 %v9505_v54, %s7112_s7 }
 0x50d   : > { %4521 = vrot.lane.b32.xlu0 %v9323_v12, %s7112_s7 }
 0x50f   : > { %4533 = vrot.lane.b32.xlu1 %v9468_v40, %s7112_s7 }
 0x511   : > { %4515 = vrot.lane.b32.xlu0 %v9284_v41, %s7112_s7 }
 0x513   : > { %4519 = vrot.lane.b32.xlu1 %v9321_v2, %s7112_s7 }
 0x515   : > { %4563 = vrot.lane.b32.xlu0 %v9533_v56, %s7112_s7 }
 0x517   : > { %4523 = vrot.lane.b32.xlu1 %v9328_v24, %s7112_s7 }
 0x519   : > { %4567 = vrot.lane.b32.xlu0 %v9556_v58, %s7112_s7 }
 0x51b   : > { %4561 = vrot.lane.b32.xlu1 %v9510_v20, %s7112_s7 }
 0x51d   : > { %4545 = vrot.lane.b32.xlu0 %v9542_v9, %s7112_s7 }
 0x51f   : > { %4565 = vrot.lane.b32.xlu1 %v9570_v30, %s7112_s7 }
 0x521   : > { %4549 = vrot.lane.b32.xlu0 %v9537_v18, %s7112_s7  ;;  %v3987_v7 = vpop.permute.xlu0 %3986 }
 0x523   : > { %v9646_v32 = vpop.permute.xlu1 %3988  ;;  %4543 = vrot.lane.b32.xlu1 %v9517_v6, %s7112_s7 }
 0x524   : > { %v4019_v39 = vsel %vm415_vm2, %v3987_v7, %v9646_v32 }
 0x525   : > { %4527 = vrot.lane.b32.xlu0 %v9371_v14, %s7112_s7  ;;  %4063 = vmatprep.subr.bf16.mxu1 %v4019_v39  ;;  %v3985_v55 = vpop.permute.xlu0 %3984 }
 0x526   : > { %v4018_v34 = vsel %vm415_vm2, %v3985_v55, %v3987_v7 }
 0x527   : > { %4547 = vrot.lane.b32.xlu1 %v9582_v19, %s7112_s7  ;;  %4064 = vmatpush1.bf16.msra.mxu1 %v4018_v34 }
 0x529   : > { %v3969_v59 = vpop.permute.xlu1 %3968  ;;  %4531 = vrot.lane.b32.xlu0 %v9380_v29, %s7112_s7 }
 0x52b   : > { %4525 = vrot.lane.b32.xlu1 %v9332_v4, %s7112_s7  ;;  %v9661_v25 = vpop.permute.xlu0 %3970 }
 0x52c   : > { %v4011_v36 = vsel %vm415_vm2, %v3969_v59, %v9661_v25 }
 0x52d   : > { %v3967_v53 = vpop.permute.xlu1 %3966  ;;  %4856 = vrot.lane.b32.xlu0 %v9443_v3, %s7113_s10  ;;  %4065 = vmatprep.subr.bf16.mxu1 %v4011_v36 }
 0x52e   : > { %v4010_v22 = vsel %vm415_vm2, %v3967_v53, %v3969_v59 }
 0x52f   : > { %4529 = vrot.lane.b32.xlu1 %v9374_v21, %s7112_s7  ;;  %4066 = vmatpush1.bf16.msra.mxu1 %v4010_v22  ;;  %v9670_v33 = vpop.permute.xlu0 %4268 }
 0x530   : > { %4067 = vmatprep.subr.bf16.mxu1 %v4003_v16 }
 0x531   : > { %v9675_v37 = vpop.permute.xlu1 %4270  ;;  %4860 = vrot.lane.b32.xlu0 %v9528_v13, %s7113_s10 }
 0x533   : > { %4854 = vrot.lane.b32.xlu1 %v9438_v27, %s7113_s10  ;;  %4068 = vmatpush1.bf16.msra.mxu1 %v4002_v11  ;;  %v9689_v7 = vpop.permute.xlu0 %4266 }
 0x535   : > { %v9691_v39 = vpop.permute.xlu1 %4250  ;;  %4836 = vrot.lane.b32.xlu0 %v9457_v47, %s7113_s10 }
 0x536   : > { %6906 = vmatmul.mubr.msk.bf16.vlgmr.msra.gmra.mxu1 %vm476_vm3, %v9685_v31 }
 0x537   : > { %4858 = vrot.lane.b32.xlu1 %v9489_v43, %s7113_s10  ;;  %v9699_v38 = vpop.permute.xlu0 %4252  ;;  %4171 = vmatprep.mubr.bf16.mxu1 %v11047_v1 }
 0x539   : > { %v9702_v55 = vpop.permute.xlu1 %4248  ;;  %4840 = vrot.lane.b32.xlu0 %v9505_v54, %s7113_s10 }
 0x53b   : > { %4852 = vrot.lane.b32.xlu1 %v9449_v57, %s7113_s10  ;;  %v9708_v34 = vpop.permute.xlu0 %4555 }
 0x53d   : > { %v9710_v59 = vpop.permute.xlu1 %4553  ;;  %4834 = vrot.lane.b32.xlu0 %v9468_v40, %s7113_s10 }
 0x53f   : > { %4838 = vrot.lane.b32.xlu1 %v9462_v42, %s7113_s10  ;;  %v3991_v36 = vpop.permute.xlu0 %3990 }
 0x541   : > { %v9716_v53 = vpop.permute.xlu1 %4551  ;;  %4818 = vrot.lane.b32.xlu0 %v9289_v49, %s7113_s10 }
 0x543   : > { %4842 = vrot.lane.b32.xlu1 %v9500_v60, %s7113_s10  ;;  %v9722_v57 = vpop.permute.xlu0 %4272 }
 0x545   : > { %v9724_v22 = vpop.permute.xlu1 %4535  ;;  %4822 = vrot.lane.b32.xlu0 %v9323_v12, %s7113_s10 }
 0x546   : > { %11048 = vst [vmem:[#allocation12_spill] sm:$0xff] %v9724_v22 }
 0x547   : > { %5414 = vrot.lane.b32.xlu1 %v9382_v44, %s7107_s30  ;;  %v3975_v40 = vpop.permute.xlu0 %3974 }
 0x549   : > { %v3973_v16 = vpop.permute.xlu1 %3972  ;;  %4816 = vrot.lane.b32.xlu0 %v9284_v41, %s7113_s10 }
 0x54b   : > { %4820 = vrot.lane.b32.xlu1 %v9321_v2, %s7113_s10  ;;  %v3995_v11 = vpop.permute.xlu0 %3994 }
 0x54d   : > { %v9734_v15 = vpop.permute.xlu1 %4254  ;;  %4864 = vrot.lane.b32.xlu0 %v9533_v56, %s7113_s10 }
 0x54f   : > { %4824 = vrot.lane.b32.xlu1 %v9328_v24, %s7113_s10  ;;  %v3977_v28 = vpop.permute.xlu0 %3976 }
 0x551   : > { %v9740_v23 = vpop.permute.xlu1 %4557  ;;  %4868 = vrot.lane.b32.xlu0 %v9556_v58, %s7113_s10  ;;  %v4013_v58 = vsel %vm415_vm2, %v3973_v16, %v3975_v40 }
 0x552   : > { %11049 = vst [vmem:[#allocation15_spill] sm:$0xff] %v9740_v23  ;;  %v4020_v23 = vsel %vm415_vm2, %v9646_v32, %v3991_v36  ;;  %v4005_v32 = vsel %vm415_vm2, %v9550_v10, %v9576_v17 }
 0x553   : > { %4862 = vrot.lane.b32.xlu1 %v9510_v20, %s7113_s10  ;;  %v9746_v44 = vpop.permute.xlu0 %4256 }
 0x555   : > { %v3993_v41 = vpop.permute.xlu1 %3992  ;;  %4846 = vrot.lane.b32.xlu0 %v9542_v9, %s7113_s10 }
 0x556   : > { %v4021_v56 = vsel %vm415_vm2, %v3991_v36, %v3993_v41  ;;  %v4007_v36 = vsel %vm415_vm2, %v9560_v45, %v9590_v52 }
 0x557   : > { %4866 = vrot.lane.b32.xlu1 %v9570_v30, %s7113_s10  ;;  %4106 = vmatprep.subr.bf16.mxu0 %v4021_v56  ;;  %v9753_v12 = vpop.permute.xlu0 %4278  ;;  %v4012_v30 = vsel %vm415_vm2, %v9661_v25, %v3973_v16 }
 0x558   : > { %4107 = vmatpush1.bf16.msra.mxu0 %v4020_v23  ;;  %v4022_v23 = vsel %vm415_vm2, %v3993_v41, %v3995_v11  ;;  %v4004_v41 = vsel %vm415_vm2, %v9546_v8, %v9550_v10  ;;  %v4006_v8 = vsel %vm415_vm2, %v9576_v17, %v9560_v45  ;;  %v4301_v10 = vsel %vm766_vm4, %v9670_v33, %v9675_v37 }
 0x559   : > { %v3997_v22 = vpop.permute.xlu1 %3996  ;;  %4850 = vrot.lane.b32.xlu0 %v9537_v18, %s7113_s10  ;;  %4108 = vmatprep.subr.bf16.mxu0 %v4013_v58  ;;  %v4293_v17 = vsel %vm766_vm4, %v9691_v39, %v9699_v38 }
 0x55a   : > { %v4023_v9 = vsel %vm415_vm2, %v3995_v11, %v3997_v22 }
 0x55b   : > { %4844 = vrot.lane.b32.xlu1 %v9517_v6, %s7113_s10  ;;  %4149 = vmatprep.subr.bf16.mxu1 %v4023_v9  ;;  %v9763_v56 = vpop.permute.xlu0 %4260 }
 0x55c   : > { %4109 = vmatpush1.bf16.msra.mxu0 %v4012_v30  ;;  %4150 = vmatpush1.bf16.msra.mxu1 %v4022_v23  ;;  %v4014_v30 = vsel %vm415_vm2, %v3975_v40, %v3977_v28  ;;  %v4300_v40 = vsel %vm766_vm4, %v9689_v7, %v9670_v33  ;;  %v4292_v33 = vsel %vm766_vm4, %v9702_v55, %v9691_v39 }
 0x55d   : > { %v3979_v58 = vpop.permute.xlu1 %3978  ;;  %4828 = vrot.lane.b32.xlu0 %v9371_v14, %s7113_s10  ;;  %4110 = vmatprep.subr.bf16.mxu0 %v4005_v32  ;;  %v4285_v32 = vsel %vm766_vm4, %v9586_v51, %v9610_v63  ;;  %v4284_v39 = vsel %vm766_vm4, %v9606_v48, %v9586_v51 }
 0x55e   : > { %v4015_v9 = vsel %vm415_vm2, %v3977_v28, %v3979_v58 }
 0x55f   : > { %4848 = vrot.lane.b32.xlu1 %v9582_v19, %s7113_s10  ;;  %4151 = vmatprep.subr.bf16.mxu1 %v4015_v9  ;;  %v9776_v25 = vpop.permute.xlu0 %4559 }
 0x560   : > { %4111 = vmatpush1.bf16.msra.mxu0 %v4004_v41  ;;  %4152 = vmatpush1.bf16.msra.mxu1 %v4014_v30 }
 0x561   : > { %v9785_v16 = vpop.permute.xlu1 %4274  ;;  %4832 = vrot.lane.b32.xlu0 %v9380_v29, %s7113_s10  ;;  %4153 = vmatprep.subr.bf16.mxu1 %v4007_v36 }
 0x563   : > { %4826 = vrot.lane.b32.xlu1 %v9332_v4, %s7113_s10  ;;  %v9791_v11 = vpop.permute.xlu0 %4282  ;;  %6907 = vmatmul.mubr.msk.bf16.vlgmr.msra.gmra.mxu0 %vm476_vm3, %v9685_v31 }
 0x564   : > { %4154 = vmatpush1.bf16.msra.mxu1 %v4006_v8  ;;  %4214 = vmatprep.mubr.bf16.mxu0 %v11047_v1  ;;  %v9841_v8 = vld [vmem:[%s10915_s2] sm:$0xff]  }
 0x565   : > { %v4277_v28 = vpop.permute.xlu1 %4276  ;;  %5161 = vrot.lane.b32.xlu0 %v9443_v3, %s7114_s14  ;;  %4345 = vmatprep.subr.bf16.mxu1 %v4301_v10 }
 0x566   : > { %v4305_v36 = vsel %vm766_vm4, %v4277_v28, %v9753_v12 }
 0x567   : > { %4830 = vrot.lane.b32.xlu1 %v9374_v21, %s7113_s10  ;;  %v9809_v45 = vpop.permute.xlu0 %4264  ;;  %6908 = vmatmul.mubr.msk.bf16.vlgmr.msra.gmra.mxu1 %vm476_vm3, %v9685_v31 }
 0x568   : > { %4346 = vmatpush1.bf16.msra.mxu1 %v4300_v40  ;;  %4367 = vmatprep.mubr.bf16.mxu1 %v11047_v1  ;;  %v4304_v40 = vsel %vm766_vm4, %v9785_v16, %v4277_v28  ;;  %v4008_v28 = vsel %vm415_vm2, %v9590_v52, %v9572_v50  ;;  %v4302_v52 = vsel %vm766_vm4, %v9675_v37, %v9722_v57 }
 0x569   : > { %v4259_v23 = vpop.permute.xlu1 %4258  ;;  %5165 = vrot.lane.b32.xlu0 %v9528_v13, %s7114_s14  ;;  %4347 = vmatprep.subr.bf16.mxu1 %v4293_v17  ;;  %v4586_v37 = vsel %vm1119_vm5, %v9710_v59, %v9708_v34 }
 0x56b   : > { %5159 = vrot.lane.b32.xlu1 %v9438_v27, %s7114_s14  ;;  %v3999_v7 = vpop.permute.xlu0 %3998 }
 0x56c   : > { %4348 = vmatpush1.bf16.msra.mxu1 %v4292_v33  ;;  %v4024_v30 = vsel %vm415_vm2, %v3997_v22, %v3999_v7 }
 0x56d   : > { %v4001_v9 = vpop.permute.xlu1 %4000  ;;  %5141 = vrot.lane.b32.xlu0 %v9457_v47, %s7114_s14  ;;  %4349 = vmatprep.subr.bf16.mxu1 %v4285_v32  ;;  %v4289_v32 = vsel %vm766_vm4, %v9630_v0, %v9616_v61 }
 0x56e   : > { %v4025_v41 = vsel %vm415_vm2, %v3999_v7, %v4001_v9  ;;  %v4303_v7 = vsel %vm766_vm4, %v9722_v57, %v9785_v16  ;;  %v4288_v16 = vsel %vm766_vm4, %v9620_v26, %v9630_v0  ;;  %v4294_v57 = vsel %vm766_vm4, %v9699_v38, %v9734_v15 }
 0x56f   : > { %5163 = vrot.lane.b32.xlu1 %v9489_v43, %s7114_s14  ;;  %4192 = vmatprep.subr.bf16.mxu0 %v4025_v41  ;;  %v3981_v55 = vpop.permute.xlu0 %3980  ;;  %v4585_v9 = vsel %vm1119_vm5, %v9716_v53, %v9710_v59  ;;  %v4287_v41 = vsel %vm766_vm4, %v9596_v5, %v9620_v26  ;;  %v11051_v59 = vld [vmem:[#allocation8_spill] sm:$0xff] }
 0x570   : > { %4193 = vmatpush1.bf16.msra.mxu0 %v4024_v30  ;;  %4350 = vmatpush1.bf16.msra.mxu1 %v4284_v39  ;;  %v4016_v22 = vsel %vm415_vm2, %v3979_v58, %v3981_v55  ;;  %v4297_v58 = vsel %vm766_vm4, %v4259_v23, %v9763_v56  ;;  %v11050_v39 = vld [vmem:[#allocation12_spill] sm:$0xff]  ;;  %v11052_v30 = vld [vmem:[#allocation7_spill] sm:$0xff] }
 0x571   : > { %v3983_v10 = vpop.permute.xlu1 %3982  ;;  %5145 = vrot.lane.b32.xlu0 %v9505_v54, %s7114_s14  ;;  %4431 = vmatprep.subr.bf16.mxu1 %v4305_v36 }
 0x572   : > { %v4017_v51 = vsel %vm415_vm2, %v3981_v55, %v3983_v10  ;;  %v4286_v55 = vsel %vm766_vm4, %v9610_v63, %v9596_v5 }
 0x573   : > { %5157 = vrot.lane.b32.xlu1 %v9434_v35, %s7114_s14  ;;  %4194 = vmatprep.subr.bf16.mxu0 %v4017_v51  ;;  %v9848_v48 = vpop.permute.xlu0 %4537  ;;  %v4009_v35 = vsel %vm415_vm2, %v9572_v50, %v9600_v46  ;;  %v11053_v51 = vld [vmem:[#allocation16_spill] sm:$0xff] }
 0x574   : > { %4195 = vmatpush1.bf16.msra.mxu0 %v4016_v22  ;;  %6911 = vmatmul.mubr.msk.bf16.vlgmr.msra.gmra.mxu1 %vm476_vm3, %v9841_v8 }
 0x575   : > { %4432 = vmatpush1.bf16.msra.mxu1 %v4304_v40  ;;  %v9855_v17 = vpop.permute.xlu1 %4280  ;;  %5139 = vrot.lane.b32.xlu0 %v9451_v62, %s7114_s14  ;;  %v4296_v62 = vsel %vm766_vm4, %v9746_v44, %v4259_v23 }
 0x576   : > { %4196 = vmatprep.subr.bf16.mxu0 %v4009_v35  ;;  %4433 = vmatprep.subr.bf16.mxu1 %v4297_v58  ;;  %v4307_v36 = vsel %vm766_vm4, %v9855_v17, %v9791_v11  ;;  %v4306_v22 = vsel %vm766_vm4, %v9753_v12, %v9855_v17  ;;  %v9953_v11 = vld [vmem:[%s10915_s2 + $0x10] sm:$0xff]  }
 0x577   : > { %5143 = vrot.lane.b32.xlu1 %v9462_v42, %s7114_s14  ;;  %v9866_v33 = vpop.permute.xlu0 %4541  ;;  %4453 = vmatprep.mubr.bf16.mxu1 %v11047_v1  ;;  %v11054_v58 = vld [vmem:[#allocation11_spill] sm:$0xff] }
 0x578   : > { %4197 = vmatpush1.bf16.msra.mxu0 %v4008_v28 }
 0x579   : > { %4434 = vmatpush1.bf16.msra.mxu1 %v4296_v62  ;;  %v4263_v46 = vpop.permute.xlu1 %4262  ;;  %5125 = vrot.lane.b32.xlu0 %v9321_v2, %s7114_s14  ;;  %v11055_v62 = vld [vmem:[#allocation18_spill] sm:$0xff] }
 0x57a   : > { %4388 = vmatprep.subr.bf16.mxu0 %v4303_v7  ;;  %4435 = vmatprep.subr.bf16.mxu1 %v4289_v32  ;;  %v4299_v35 = vsel %vm766_vm4, %v4263_v46, %v9809_v45  ;;  %v4298_v12 = vsel %vm766_vm4, %v9763_v56, %v4263_v46  ;;  %v11056_v45 = vld [vmem:[#allocation17_spill] sm:$0xff]  ;;  %v11057_v32 = vld [vmem:[#allocation10_spill] sm:$0xff] }
 0x57b   : > { %5147 = vrot.lane.b32.xlu1 %v9500_v60, %s7114_s14  ;;  %v4518_v50 = vpop.permute.xlu0 %4517  ;;  %6909 = vmatmul.mubr.msk.bf16.vlgmr.msra.gmra.mxu0 %vm476_vm3, %v9685_v31  ;;  %v4295_v31 = vsel %vm766_vm4, %v9734_v15, %v9746_v44  ;;  %v4578_v15 = vsel %vm1119_vm5, %v11050_v39, %v9848_v48  ;;  %v4291_v7 = vsel %vm766_vm4, %v11056_v45, %v11055_v62 }
 0x57c   : > { %4389 = vmatpush1.bf16.msra.mxu0 %v4302_v52  ;;  %4410 = vmatprep.mubr.bf16.mxu0 %v11047_v1 }
 0x57d   : > { %4436 = vmatpush1.bf16.msra.mxu1 %v4288_v16  ;;  %v9893_v23 = vpop.permute.xlu1 %4539  ;;  %5129 = vrot.lane.b32.xlu0 %v9328_v24, %s7114_s14 }
 0x57e   : > { %4390 = vmatprep.subr.bf16.mxu0 %v4295_v31  ;;  %4630 = vmatprep.subr.bf16.mxu1 %v4586_v37  ;;  %v4290_v31 = vsel %vm766_vm4, %v9616_v61, %v11056_v45 }
 0x57f   : > { %5123 = vrot.lane.b32.xlu1 %v9289_v49, %s7114_s14  ;;  %v9905_v0 = vpop.permute.xlu0 %4521 }
 0x580   : > { %4391 = vmatpush1.bf16.msra.mxu0 %v4294_v57  ;;  %6913 = vmatmul.mubr.msk.bf16.vlgmr.msra.gmra.mxu1 %vm476_vm3, %v9841_v8  ;;  %v11059_v57 = vld [vmem:[#allocation15_spill] sm:$0xff] }
 0x581   : > { %4631 = vmatpush1.bf16.msra.mxu1 %v4585_v9  ;;  %v4534_v44 = vpop.permute.xlu1 %4533  ;;  %5167 = vrot.lane.b32.xlu0 %v9510_v20, %s7114_s14  ;;  %v4588_v9 = vsel %vm1119_vm5, %v11059_v57, %v9776_v25  ;;  %v4587_v61 = vsel %vm1119_vm5, %v9708_v34, %v11059_v57 }
 0x582   : > { %v4577_v38 = vsel %vm1119_vm5, %v4534_v44, %v11050_v39  ;;  %4392 = vmatprep.subr.bf16.mxu0 %v4287_v41  ;;  %4632 = vmatprep.subr.bf16.mxu1 %v4578_v15  ;;  %v11060_v44 = vld [vmem:[#allocation9_spill] sm:$0xff] }
 0x583   : > { %5127 = vrot.lane.b32.xlu1 %v11051_v59, %s7114_s14  ;;  %v4516_v53 = vpop.permute.xlu0 %4515  ;;  %4652 = vmatprep.mubr.bf16.mxu1 %v11047_v1 }
 0x584   : > { %4393 = vmatpush1.bf16.msra.mxu0 %v4286_v55  ;;  %v4569_v63 = vsel %vm1119_vm5, %v4516_v53, %v4518_v50 }
 0x585   : > { %4633 = vmatpush1.bf16.msra.mxu1 %v4577_v38  ;;  %v9931_v26 = vpop.permute.xlu1 %4519  ;;  %5171 = vrot.lane.b32.xlu0 %v11052_v30, %s7114_s14  ;;  %v4579_v38 = vsel %vm1119_vm5, %v9848_v48, %v9893_v23 }
 0x586   : > { %4474 = vmatprep.subr.bf16.mxu0 %v4307_v36  ;;  %v4570_v10 = vsel %vm1119_vm5, %v4518_v50, %v9931_v26  ;;  %v11058_v50 = vld [vmem:[#allocation14_spill] sm:$0xff]  ;;  %v4571_v36 = vsel %vm1119_vm5, %v9931_v26, %v9905_v0 }
 0x587   : > { %5121 = vrot.lane.b32.xlu1 %v11053_v51, %s7114_s14  ;;  %4634 = vmatprep.subr.bf16.mxu1 %v4570_v10  ;;  %v9942_v5 = vpop.permute.xlu0 %4563  ;;  %v9975_v52 = vsel %vm328_vm1, %v11058_v50, %v11057_v32 }
 0x588   : > { %6912 = vmatmul.mubr.msk.bf16.vlgmr.msra.gmra.mxu0 %vm476_vm3, %v9841_v8 }
 0x589   : > { %4475 = vmatpush1.bf16.msra.mxu0 %v4306_v22  ;;  %4635 = vmatpush1.bf16.msra.mxu1 %v4569_v63  ;;  %v4524_v40 = vpop.permute.xlu1 %4523 }
 0x58a   : > { %5149 = vrot.lane.b32.xlu0 %v9517_v6, %s7114_s14  ;;  %4476 = vmatprep.subr.bf16.mxu0 %v4299_v35  ;;  %v4572_v55 = vsel %vm1119_vm5, %v9905_v0, %v4524_v40 }
 0x58b   : > { %5169 = vrot.lane.b32.xlu1 %v11054_v58, %s7114_s14  ;;  %v4568_v28 = vpop.permute.xlu0 %4567  ;;  %4496 = vmatprep.mubr.bf16.mxu0 %v11047_v1 }
 0x58c   : > { %6918 = vmatmul.mubr.msk.bf16.vlgmr.msra.gmra.mxu1 %vm476_vm3, %v9953_v11 }
 0x58d   : > { %4477 = vmatpush1.bf16.msra.mxu0 %v4298_v12  ;;  %v4562_v17 = vpop.permute.xlu1 %4561  ;;  %4738 = vmatprep.mubr.bf16.mxu1 %v11047_v1 }
 0x58e   : > { %5153 = vrot.lane.b32.xlu0 %v9582_v19, %s7114_s14  ;;  %4478 = vmatprep.subr.bf16.mxu0 %v4291_v7  ;;  %v4590_v56 = vsel %vm1119_vm5, %v4562_v17, %v9942_v5  ;;  %v4589_v46 = vsel %vm1119_vm5, %v9776_v25, %v4562_v17  ;;  %v4580_v25 = vsel %vm1119_vm5, %v9893_v23, %v9866_v33 }
 0x58f   : > { %5173 = vrot.lane.b32.xlu1 %v9975_v52, %s7114_s14  ;;  %4716 = vmatprep.subr.bf16.mxu1 %v4590_v56  ;;  %v4546_v16 = vpop.permute.xlu0 %4545 }
 0x590   : > { %4717 = vmatpush1.bf16.msra.mxu1 %v4589_v46 }
 0x591   : > { %4479 = vmatpush1.bf16.msra.mxu0 %v4290_v31  ;;  %v4566_v37 = vpop.permute.xlu1 %4565 }
 0x592   : > { %5131 = vrot.lane.b32.xlu0 %v9332_v4, %s7114_s14  ;;  %4673 = vmatprep.subr.bf16.mxu0 %v4588_v9  ;;  %v4592_v23 = vsel %vm1119_vm5, %v4566_v37, %v4568_v28  ;;  %v4591_v0 = vsel %vm1119_vm5, %v9942_v5, %v4566_v37 }
 0x593   : > { %5151 = vrot.lane.b32.xlu1 %v11060_v44, %s7114_s14  ;;  %v4550_v41 = vpop.permute.xlu0 %4549 }
 0x594   : > { %6914 = vmatmul.mubr.msk.bf16.vlgmr.msra.gmra.mxu0 %vm476_vm3, %v9841_v8 }
 0x595   : > { %4674 = vmatpush1.bf16.msra.mxu0 %v4587_v61  ;;  %v4544_v39 = vpop.permute.xlu1 %4543  ;;  %4695 = vmatprep.mubr.bf16.mxu0 %v11047_v1 }
 0x596   : > { %5135 = vrot.lane.b32.xlu0 %v9374_v21, %s7114_s14  ;;  %4675 = vmatprep.subr.bf16.mxu0 %v4580_v25  ;;  %v4582_v15 = vsel %vm1119_vm5, %v4544_v39, %v4546_v16  ;;  %v4581_v8 = vsel %vm1119_vm5, %v9866_v33, %v4544_v39 }
 0x597   : > { %5155 = vrot.lane.b32.xlu1 %v9537_v18, %s7114_s14  ;;  %4718 = vmatprep.subr.bf16.mxu1 %v4582_v15  ;;  %v4528_v34 = vpop.permute.xlu0 %4527 }
 0x598   : > { %4719 = vmatpush1.bf16.msra.mxu1 %v4581_v8 }
 0x599   : > { %4676 = vmatpush1.bf16.msra.mxu0 %v4579_v38  ;;  %v4548_v53 = vpop.permute.xlu1 %4547 }
 0x59a   : > { %5463 = vrot.lane.b32.xlu0 %v9443_v3, %s7115_s21  ;;  %4677 = vmatprep.subr.bf16.mxu0 %v4572_v55  ;;  %v4584_v22 = vsel %vm1119_vm5, %v4548_v53, %v4550_v41  ;;  %v4583_v5 = vsel %vm1119_vm5, %v4546_v16, %v4548_v53 }
 0x59b   : > { %5133 = vrot.lane.b32.xlu1 %v9371_v14, %s7114_s14  ;;  %v4532_v33 = vpop.permute.xlu0 %4531 }
 0x59d   : > { %4678 = vmatpush1.bf16.msra.mxu0 %v4571_v36  ;;  %v4526_v48 = vpop.permute.xlu1 %4525 }
 0x59e   : > { %5467 = vrot.lane.b32.xlu0 %v9528_v13, %s7115_s21  ;;  %4759 = vmatprep.subr.bf16.mxu0 %v4592_v23  ;;  %v4574_v10 = vsel %vm1119_vm5, %v4526_v48, %v4528_v34  ;;  %v4573_v51 = vsel %vm1119_vm5, %v4524_v40, %v4526_v48 }
 0x59f   : > { %5137 = vrot.lane.b32.xlu1 %v9380_v29, %s7114_s14  ;;  %4720 = vmatprep.subr.bf16.mxu1 %v4574_v10  ;;  %v4857_v63 = vpop.permute.xlu0 %4856 }
 0x5a0   : > { %6919 = vmatmul.mubr.msk.bf16.vlgmr.msra.gmra.mxu0 %vm476_vm3, %v9953_v11  ;;  %4721 = vmatpush1.bf16.msra.mxu1 %v4573_v51 }
 0x5a1   : > { %4760 = vmatpush1.bf16.msra.mxu0 %v4591_v0  ;;  %v4530_v26 = vpop.permute.xlu1 %4529  ;;  %4781 = vmatprep.mubr.bf16.mxu0 %v11047_v1 }
 0x5a2   : > { %5461 = vrot.lane.b32.xlu0 %v9438_v27, %s7115_s21  ;;  %4761 = vmatprep.subr.bf16.mxu0 %v4584_v22  ;;  %v4576_v28 = vsel %vm1119_vm5, %v4530_v26, %v4532_v33  ;;  %v4575_v62 = vsel %vm1119_vm5, %v4528_v34, %v4530_v26  ;;  %v10093_v33 = vld [vmem:[%s10915_s2 + $0x18] sm:$0xff]  }
 0x5a3   : > { %5465 = vrot.lane.b32.xlu1 %v9489_v43, %s7115_s21  ;;  %v10038_v40 = vpop.permute.xlu0 %4860  ;;  %6920 = vmatmul.mubr.msk.bf16.vlgmr.msra.gmra.mxu1 %vm476_vm3, %v9953_v11 }
 0x5a4   : > { %4953 = vmatprep.mubr.bf16.mxu1 %v11047_v1 }
 0x5a5   : > { %4762 = vmatpush1.bf16.msra.mxu0 %v4583_v5  ;;  %v4855_v35 = vpop.permute.xlu1 %4854 }
 0x5a6   : > { %5447 = vrot.lane.b32.xlu0 %v9505_v54, %s7115_s21  ;;  %4763 = vmatprep.subr.bf16.mxu0 %v4576_v28  ;;  %v4887_v12 = vsel %vm1492_vm6, %v4855_v35, %v4857_v63 }
 0x5a7   : > { %5469 = vrot.lane.b32.xlu1 %v9510_v20, %s7115_s21  ;;  %4931 = vmatprep.subr.bf16.mxu1 %v4887_v12  ;;  %v4837_v17 = vpop.permute.xlu0 %4836 }
 0x5a9   : > { %4764 = vmatpush1.bf16.msra.mxu0 %v4575_v62  ;;  %v4859_v45 = vpop.permute.xlu1 %4858 }
 0x5aa   : > { %5451 = vrot.lane.b32.xlu0 %v9517_v6, %s7115_s21  ;;  %v4889_v7 = vsel %vm1492_vm6, %v4859_v45, %v10038_v40  ;;  %v4888_v50 = vsel %vm1492_vm6, %v4857_v63, %v4859_v45 }
 0x5ab   : > { %5445 = vrot.lane.b32.xlu1 %v9462_v42, %s7115_s21  ;;  %4974 = vmatprep.subr.bf16.mxu0 %v4889_v7  ;;  %v4841_v56 = vpop.permute.xlu0 %4840 }
 0x5ac   : > { %6921 = vmatmul.mubr.msk.bf16.vlgmr.msra.gmra.mxu0 %vm476_vm3, %v9953_v11 }
 0x5ad   : > { %4975 = vmatpush1.bf16.msra.mxu0 %v4888_v50  ;;  %v4853_v46 = vpop.permute.xlu1 %4852  ;;  %4996 = vmatprep.mubr.bf16.mxu0 %v11047_v1 }
 0x5ae   : > { %v4886_v16 = vsel %vm1492_vm6, %v4853_v46, %v4855_v35  ;;  %5427 = vrot.lane.b32.xlu0 %v9321_v2, %s7115_s21 }
 0x5af   : > { %5449 = vrot.lane.b32.xlu1 %v9500_v60, %s7115_s21  ;;  %4932 = vmatpush1.bf16.msra.mxu1 %v4886_v16  ;;  %v4835_v31 = vpop.permute.xlu0 %4834 }
 0x5b0   : > { %v4878_v57 = vsel %vm1492_vm6, %v4835_v31, %v4837_v17 }
 0x5b1   : > { %v4839_v37 = vpop.permute.xlu1 %4838 }
 0x5b2   : > { %5431 = vrot.lane.b32.xlu0 %v9328_v24, %s7115_s21  ;;  %v4879_v11 = vsel %vm1492_vm6, %v4837_v17, %v4839_v37  ;;  %v4880_v25 = vsel %vm1492_vm6, %v4839_v37, %v4841_v56  ;;  %v11061_v17 = vld [vmem:[#allocation20_spill] sm:$0xff] }
 0x5b3   : > { %5443 = vrot.lane.b32.xlu1 %v9457_v47, %s7115_s21  ;;  %4933 = vmatprep.subr.bf16.mxu1 %v4879_v11  ;;  %v4819_v9 = vpop.permute.xlu0 %4818 }
 0x5b4   : > { %4934 = vmatpush1.bf16.msra.mxu1 %v4878_v57 }
 0x5b5   : > { %v4843_v41 = vpop.permute.xlu1 %4842 }
 0x5b6   : > { %5425 = vrot.lane.b32.xlu0 %v9289_v49, %s7115_s21  ;;  %v4881_v61 = vsel %vm1492_vm6, %v4841_v56, %v4843_v41 }
 0x5b7   : > { %5429 = vrot.lane.b32.xlu1 %v11051_v59, %s7115_s21  ;;  %4976 = vmatprep.subr.bf16.mxu0 %v4881_v61  ;;  %v4823_v39 = vpop.permute.xlu0 %4822 }
 0x5b8   : > { %4977 = vmatpush1.bf16.msra.mxu0 %v4880_v25 }
 0x5b9   : > { %v10078_v15 = vpop.permute.xlu1 %5414 }
 0x5ba   : > { %5473 = vrot.lane.b32.xlu0 %v11052_v30, %s7115_s21  ;;  %v10119_v5 = vsel %vm295_vm0, %v9537_v18, %v10078_v15 }
 0x5bb   : > { %5433 = vrot.lane.b32.xlu1 %v9332_v4, %s7115_s21  ;;  %v4817_v8 = vpop.permute.xlu0 %4816 }
 0x5bc   : > { %v4870_v53 = vsel %vm1492_vm6, %v4817_v8, %v4819_v9 }
 0x5bd   : > { %v4821_v34 = vpop.permute.xlu1 %4820 }
 0x5be   : > { %5477 = vrot.lane.b32.xlu0 %v11057_v32, %s7115_s21  ;;  %v4871_v38 = vsel %vm1492_vm6, %v4819_v9, %v4821_v34  ;;  %v4872_v10 = vsel %vm1492_vm6, %v4821_v34, %v4823_v39 }
 0x5bf   : > { %5471 = vrot.lane.b32.xlu1 %v11054_v58, %s7115_s21  ;;  %4935 = vmatprep.subr.bf16.mxu1 %v4871_v38  ;;  %v4865_v55 = vpop.permute.xlu0 %4864 }
 0x5c0   : > { %4936 = vmatpush1.bf16.msra.mxu1 %v4870_v53 }
 0x5c1   : > { %v4825_v36 = vpop.permute.xlu1 %4824 }
 0x5c2   : > { %5455 = vrot.lane.b32.xlu0 %v9582_v19, %s7115_s21  ;;  %v4873_v48 = vsel %vm1492_vm6, %v4823_v39, %v4825_v36 }
 0x5c3   : > { %5475 = vrot.lane.b32.xlu1 %v9975_v52, %s7115_s21  ;;  %4978 = vmatprep.subr.bf16.mxu0 %v4873_v48  ;;  %v4869_v23 = vpop.permute.xlu0 %4868 }
 0x5c4   : > { %4979 = vmatpush1.bf16.msra.mxu0 %v4872_v10  ;;  %6925 = vmatmul.mubr.msk.bf16.vlgmr.msra.gmra.mxu1 %vm476_vm3, %v10093_v33 }
 0x5c5   : > { %v4863_v51 = vpop.permute.xlu1 %4862  ;;  %5039 = vmatprep.mubr.bf16.mxu1 %v11047_v1 }
 0x5c6   : > { %5459 = vrot.lane.b32.xlu0 %v10078_v15, %s7115_s21  ;;  %v4891_v63 = vsel %vm1492_vm6, %v4863_v51, %v4865_v55  ;;  %v4890_v0 = vsel %vm1492_vm6, %v10038_v40, %v4863_v51 }
 0x5c7   : > { %5453 = vrot.lane.b32.xlu1 %v11060_v44, %s7115_s21  ;;  %5017 = vmatprep.subr.bf16.mxu1 %v4891_v63  ;;  %v4847_v26 = vpop.permute.xlu0 %4846 }
 0x5c8   : > { %5018 = vmatpush1.bf16.msra.mxu1 %v4890_v0  ;;  %6926 = vmatmul.mubr.msk.bf16.vlgmr.msra.gmra.mxu0 %vm476_vm3, %v10093_v33 }
 0x5c9   : > { %v4867_v22 = vpop.permute.xlu1 %4866  ;;  %5082 = vmatprep.mubr.bf16.mxu0 %v11047_v1 }
 0x5ca   : > { %5437 = vrot.lane.b32.xlu0 %v9374_v21, %s7115_s21  ;;  %v4893_v40 = vsel %vm1492_vm6, %v4867_v22, %v4869_v23  ;;  %v4892_v35 = vsel %vm1492_vm6, %v4865_v55, %v4867_v22 }
 0x5cb   : > { %5457 = vrot.lane.b32.xlu1 %v10119_v5, %s7115_s21  ;;  %5060 = vmatprep.subr.bf16.mxu0 %v4893_v40  ;;  %v4851_v28 = vpop.permute.xlu0 %4850 }
 0x5cc   : > { %5061 = vmatpush1.bf16.msra.mxu0 %v4892_v35 }
 0x5cd   : > { %v4845_v12 = vpop.permute.xlu1 %4844 }
 0x5ce   : > { %5441 = vrot.lane.b32.xlu0 %v11061_v17, %s7115_s21  ;;  %v4883_v62 = vsel %vm1492_vm6, %v4845_v12, %v4847_v26  ;;  %v4882_v45 = vsel %vm1492_vm6, %v4843_v41, %v4845_v12 }
 0x5cf   : > { %5435 = vrot.lane.b32.xlu1 %v9371_v14, %s7115_s21  ;;  %5019 = vmatprep.subr.bf16.mxu1 %v4883_v62  ;;  %v4829_v18 = vpop.permute.xlu0 %4828 }
 0x5d0   : > { %5020 = vmatpush1.bf16.msra.mxu1 %v4882_v45 }
 0x5d1   : > { %v4849_v7 = vpop.permute.xlu1 %4848 }
 0x5d2   : > { %5766 = vrot.lane.b32.xlu0 %v9489_v43, %s7116_s24  ;;  %v4885_v50 = vsel %vm1492_vm6, %v4849_v7, %v4851_v28  ;;  %v4884_v56 = vsel %vm1492_vm6, %v4847_v26, %v4849_v7 }
 0x5d3   : > { %5439 = vrot.lane.b32.xlu1 %v9380_v29, %s7115_s21  ;;  %5062 = vmatprep.subr.bf16.mxu0 %v4885_v50  ;;  %v4833_v46 = vpop.permute.xlu0 %4832 }
 0x5d4   : > { %5063 = vmatpush1.bf16.msra.mxu0 %v4884_v56 }
 0x5d5   : > { %v4827_v16 = vpop.permute.xlu1 %4826 }
 0x5d6   : > { %5770 = vrot.lane.b32.xlu0 %v9510_v20, %s7116_s24  ;;  %v4875_v31 = vsel %vm1492_vm6, %v4827_v16, %v4829_v18  ;;  %v4874_v37 = vsel %vm1492_vm6, %v4825_v36, %v4827_v16 }
 0x5d7   : > { %5764 = vrot.lane.b32.xlu1 %v9443_v3, %s7116_s24  ;;  %5021 = vmatprep.subr.bf16.mxu1 %v4875_v31  ;;  %v5162_v11 = vpop.permute.xlu0 %5161 }
 0x5d8   : > { %5022 = vmatpush1.bf16.msra.mxu1 %v4874_v37 }
 0x5d9   : > { %v4831_v57 = vpop.permute.xlu1 %4830 }
 0x5da   : > { %5746 = vrot.lane.b32.xlu0 %v9462_v42, %s7116_s24  ;;  %v4877_v9 = vsel %vm1492_vm6, %v4831_v57, %v4833_v46  ;;  %v4876_v41 = vsel %vm1492_vm6, %v4829_v18, %v4831_v57  ;;  %v10206_v46 = vld [vmem:[%s10915_s2 + $0x20] sm:$0xff]  }
 0x5db   : > { %5768 = vrot.lane.b32.xlu1 %v9528_v13, %s7116_s24  ;;  %5064 = vmatprep.subr.bf16.mxu0 %v4877_v9  ;;  %v10149_v61 = vpop.permute.xlu0 %5165 }
 0x5dc   : > { %5065 = vmatpush1.bf16.msra.mxu0 %v4876_v41  ;;  %6927 = vmatmul.mubr.msk.bf16.vlgmr.msra.gmra.mxu1 %vm476_vm3, %v10093_v33 }
 0x5dd   : > { %v5160_v39 = vpop.permute.xlu1 %5159  ;;  %5258 = vmatprep.mubr.bf16.mxu1 %v11047_v1 }
 0x5de   : > { %5750 = vrot.lane.b32.xlu0 %v9500_v60, %s7116_s24  ;;  %v5192_v25 = vsel %vm1983_vm7, %v5160_v39, %v5162_v11 }
 0x5df   : > { %5762 = vrot.lane.b32.xlu1 %v9438_v27, %s7116_s24  ;;  %5236 = vmatprep.subr.bf16.mxu1 %v5192_v25  ;;  %v5142_v8 = vpop.permute.xlu0 %5141 }
 0x5e0   : > { %6928 = vmatmul.mubr.msk.bf16.vlgmr.msra.gmra.mxu0 %vm476_vm3, %v10093_v33 }
 0x5e1   : > { %v5164_v34 = vpop.permute.xlu1 %5163  ;;  %5301 = vmatprep.mubr.bf16.mxu0 %v11047_v1 }
 0x5e2   : > { %5744 = vrot.lane.b32.xlu0 %v9457_v47, %s7116_s24  ;;  %v5194_v38 = vsel %vm1983_vm7, %v5164_v34, %v10149_v61  ;;  %v5193_v53 = vsel %vm1983_vm7, %v5162_v11, %v5164_v34 }
 0x5e3   : > { %5748 = vrot.lane.b32.xlu1 %v9505_v54, %s7116_s24  ;;  %5279 = vmatprep.subr.bf16.mxu0 %v5194_v38  ;;  %v5146_v55 = vpop.permute.xlu0 %5145 }
 0x5e4   : > { %5280 = vmatpush1.bf16.msra.mxu0 %v5193_v53 }
 0x5e5   : > { %v5158_v36 = vpop.permute.xlu1 %5157 }
 0x5e6   : > { %v5191_v33 = vsel %vm1983_vm7, %v5158_v36, %v5160_v39  ;;  %5730 = vrot.lane.b32.xlu0 %v11051_v59, %s7116_s24 }
 0x5e7   : > { %5752 = vrot.lane.b32.xlu1 %v9517_v6, %s7116_s24  ;;  %5237 = vmatpush1.bf16.msra.mxu1 %v5191_v33  ;;  %v5140_v48 = vpop.permute.xlu0 %5139 }
 0x5e8   : > { %v5183_v51 = vsel %vm1983_vm7, %v5140_v48, %v5142_v8 }
 0x5e9   : > { %v5144_v23 = vpop.permute.xlu1 %5143 }
 0x5ea   : > { %5734 = vrot.lane.b32.xlu0 %v9332_v4, %s7116_s24  ;;  %v5184_v10 = vsel %vm1983_vm7, %v5142_v8, %v5144_v23  ;;  %v5185_v40 = vsel %vm1983_vm7, %v5144_v23, %v5146_v55 }
 0x5eb   : > { %5728 = vrot.lane.b32.xlu1 %v9321_v2, %s7116_s24  ;;  %5238 = vmatprep.subr.bf16.mxu1 %v5184_v10  ;;  %v5126_v63 = vpop.permute.xlu0 %5125 }
 0x5ec   : > { %5239 = vmatpush1.bf16.msra.mxu1 %v5183_v51 }
 0x5ed   : > { %v5148_v0 = vpop.permute.xlu1 %5147 }
 0x5ee   : > { %5772 = vrot.lane.b32.xlu0 %v11054_v58, %s7116_s24  ;;  %v5186_v26 = vsel %vm1983_vm7, %v5146_v55, %v5148_v0 }
 0x5ef   : > { %5732 = vrot.lane.b32.xlu1 %v9328_v24, %s7116_s24  ;;  %5281 = vmatprep.subr.bf16.mxu0 %v5186_v26  ;;  %v10185_v22 = vpop.permute.xlu0 %5129 }
 0x5f0   : > { %5282 = vmatpush1.bf16.msra.mxu0 %v5185_v40 }
 0x5f1   : > { %v5124_v35 = vpop.permute.xlu1 %5123 }
 0x5f2   : > { %5776 = vrot.lane.b32.xlu0 %v9975_v52, %s7116_s24  ;;  %v5176_v28 = vsel %vm1983_vm7, %v5124_v35, %v5126_v63 }
 0x5f3   : > { %5726 = vrot.lane.b32.xlu1 %v9289_v49, %s7116_s24  ;;  %5240 = vmatprep.subr.bf16.mxu1 %v5176_v28  ;;  %v5168_v12 = vpop.permute.xlu0 %5167 }
 0x5f4   : > { %v5195_v11 = vsel %vm1983_vm7, %v10149_v61, %v5168_v12 }
 0x5f5   : > { %v5128_v62 = vpop.permute.xlu1 %5127 }
 0x5f6   : > { %5754 = vrot.lane.b32.xlu0 %v11060_v44, %s7116_s24  ;;  %v5178_v45 = vsel %vm1983_vm7, %v5128_v62, %v10185_v22  ;;  %v5177_v18 = vsel %vm1983_vm7, %v5126_v63, %v5128_v62 }
 0x5f7   : > { %5774 = vrot.lane.b32.xlu1 %v11052_v30, %s7116_s24  ;;  %5283 = vmatprep.subr.bf16.mxu0 %v5178_v45  ;;  %v5172_v7 = vpop.permute.xlu0 %5171 }
 0x5f8   : > { %5284 = vmatpush1.bf16.msra.mxu0 %v5177_v18 }
 0x5f9   : > { %v5122_v50 = vpop.permute.xlu1 %5121 }
 0x5fa   : > { %v5175_v56 = vsel %vm1983_vm7, %v5122_v50, %v5124_v35  ;;  %5758 = vrot.lane.b32.xlu0 %v10119_v5, %s7116_s24 }
 0x5fb   : > { %5778 = vrot.lane.b32.xlu1 %v11057_v32, %s7116_s24  ;;  %5241 = vmatpush1.bf16.msra.mxu1 %v5175_v56 }
 0x5fc   : > { %v5150_v16 = vpop.permute.xlu0 %5149  ;;  %6933 = vmatmul.mubr.msk.bf16.vlgmr.msra.gmra.mxu0 %vm476_vm3, %v10206_v46 }
 0x5fd   : > { %v5170_v31 = vpop.permute.xlu1 %5169  ;;  %5387 = vmatprep.mubr.bf16.mxu0 %v11047_v1  ;;  %v5187_v34 = vsel %vm1983_vm7, %v5148_v0, %v5150_v16 }
 0x5fe   : > { %5736 = vrot.lane.b32.xlu0 %v9371_v14, %s7116_s24  ;;  %v5196_v37 = vsel %vm1983_vm7, %v5168_v12, %v5170_v31  ;;  %6932 = vmatmul.mubr.msk.bf16.vlgmr.msra.gmra.mxu1 %vm476_vm3, %v10206_v46  ;;  %v5197_v39 = vsel %vm1983_vm7, %v5170_v31, %v5172_v7 }
 0x5ff   : > { %5756 = vrot.lane.b32.xlu1 %v9582_v19, %s7116_s24  ;;  %5322 = vmatprep.subr.bf16.mxu1 %v5196_v37 }
 0x600   : > { %v5154_v57 = vpop.permute.xlu0 %5153  ;;  %5323 = vmatpush1.bf16.msra.mxu1 %v5195_v11  ;;  %5344 = vmatprep.mubr.bf16.mxu1 %v11047_v1 }
 0x601   : > { %v5174_v9 = vpop.permute.xlu1 %5173 }
 0x602   : > { %5740 = vrot.lane.b32.xlu0 %v9380_v29, %s7116_s24  ;;  %v5198_v41 = vsel %vm1983_vm7, %v5172_v7, %v5174_v9 }
 0x603   : > { %5760 = vrot.lane.b32.xlu1 %v10078_v15, %s7116_s24  ;;  %5365 = vmatprep.subr.bf16.mxu0 %v5198_v41 }
 0x604   : > { %v5132_v25 = vpop.permute.xlu0 %5131  ;;  %5366 = vmatpush1.bf16.msra.mxu0 %v5197_v39 }
 0x605   : > { %v5152_v8 = vpop.permute.xlu1 %5151  ;;  %v5179_v10 = vsel %vm1983_vm7, %v10185_v22, %v5132_v25 }
 0x606   : > { %6065 = vrot.lane.b32.xlu0 %v9443_v3, %s7117_s27  ;;  %v5188_v61 = vsel %vm1983_vm7, %v5150_v16, %v5152_v8  ;;  %v5189_v36 = vsel %vm1983_vm7, %v5152_v8, %v5154_v57 }
 0x607   : > { %5738 = vrot.lane.b32.xlu1 %v9374_v21, %s7116_s24  ;;  %5324 = vmatprep.subr.bf16.mxu1 %v5188_v61 }
 0x608   : > { %v5136_v38 = vpop.permute.xlu0 %5135  ;;  %5325 = vmatpush1.bf16.msra.mxu1 %v5187_v34 }
 0x609   : > { %v5156_v53 = vpop.permute.xlu1 %5155 }
 0x60a   : > { %6069 = vrot.lane.b32.xlu0 %v9528_v13, %s7117_s27  ;;  %v5190_v55 = vsel %vm1983_vm7, %v5154_v57, %v5156_v53 }
 0x60b   : > { %5742 = vrot.lane.b32.xlu1 %v11061_v17, %s7116_s24  ;;  %5367 = vmatprep.subr.bf16.mxu0 %v5190_v55 }
 0x60c   : > { %v5464_v33 = vpop.permute.xlu0 %5463  ;;  %5368 = vmatpush1.bf16.msra.mxu0 %v5189_v36  ;;  %v10304_v36 = vld [vmem:[%s10915_s2 + $0x28] sm:$0xff]  }
 0x60d   : > { %v5134_v48 = vpop.permute.xlu1 %5133 }
 0x60e   : > { %6063 = vrot.lane.b32.xlu0 %v9438_v27, %s7117_s27  ;;  %v5180_v23 = vsel %vm1983_vm7, %v5132_v25, %v5134_v48  ;;  %v5181_v26 = vsel %vm1983_vm7, %v5134_v48, %v5136_v38 }
 0x60f   : > { %6067 = vrot.lane.b32.xlu1 %v9489_v43, %s7117_s27  ;;  %5326 = vmatprep.subr.bf16.mxu1 %v5180_v23 }
 0x610   : > { %v5468_v51 = vpop.permute.xlu0 %5467  ;;  %5327 = vmatpush1.bf16.msra.mxu1 %v5179_v10 }
 0x611   : > { %v5138_v63 = vpop.permute.xlu1 %5137 }
 0x612   : > { %6049 = vrot.lane.b32.xlu0 %v9505_v54, %s7117_s27  ;;  %v5182_v0 = vsel %vm1983_vm7, %v5136_v38, %v5138_v63 }
 0x613   : > { %6071 = vrot.lane.b32.xlu1 %v9510_v20, %s7117_s27  ;;  %5369 = vmatprep.subr.bf16.mxu0 %v5182_v0 }
 0x614   : > { %v5462_v40 = vpop.permute.xlu0 %5461  ;;  %5370 = vmatpush1.bf16.msra.mxu0 %v5181_v26  ;;  %6934 = vmatmul.mubr.msk.bf16.vlgmr.msra.gmra.mxu1 %vm476_vm3, %v10206_v46 }
 0x615   : > { %v5466_v22 = vpop.permute.xlu1 %5465  ;;  %5562 = vmatprep.mubr.bf16.mxu1 %v11047_v1  ;;  %v5495_v28 = vsel %vm2359_vm8, %v5462_v40, %v5464_v33 }
 0x616   : > { %6053 = vrot.lane.b32.xlu0 %v9517_v6, %s7117_s27  ;;  %v5496_v35 = vsel %vm2359_vm8, %v5464_v33, %v5466_v22  ;;  %v5497_v18 = vsel %vm2359_vm8, %v5466_v22, %v5468_v51 }
 0x617   : > { %6047 = vrot.lane.b32.xlu1 %v9462_v42, %s7117_s27  ;;  %5540 = vmatprep.subr.bf16.mxu1 %v5496_v35 }
 0x618   : > { %v5448_v12 = vpop.permute.xlu0 %5447  ;;  %5541 = vmatpush1.bf16.msra.mxu1 %v5495_v28  ;;  %6935 = vmatmul.mubr.msk.bf16.vlgmr.msra.gmra.mxu0 %vm476_vm3, %v10206_v46  ;;  %v4087_v46 = vpop.f32.mrf.mxu1 }
 0x619   : > { %v5470_v62 = vpop.permute.xlu1 %5469  ;;  %5605 = vmatprep.mubr.bf16.mxu0 %v11047_v1 }
 0x61a   : > { %6029 = vrot.lane.b32.xlu0 %v9321_v2, %s7117_s27  ;;  %v5498_v45 = vsel %vm2359_vm8, %v5468_v51, %v5470_v62  ;;  %v4089_v57 = vpop.f32.mrf.mxu1 }
 0x61b   : > { %6051 = vrot.lane.b32.xlu1 %v9500_v60, %s7117_s27  ;;  %5583 = vmatprep.subr.bf16.mxu0 %v5498_v45 }
 0x61c   : > { %v10272_v7 = vpop.permute.xlu0 %5451  ;;  %5584 = vmatpush1.bf16.msra.mxu0 %v5497_v18  ;;  %v4091_v41 = vpop.f32.mrf.mxu1 }
 0x61d   : > { %v5446_v50 = vpop.permute.xlu1 %5445 }
 0x61e   : > { %6033 = vrot.lane.b32.xlu0 %v9328_v24, %s7117_s27  ;;  %v5488_v56 = vsel %vm2359_vm8, %v5446_v50, %v5448_v12  ;;  %v10289_v8 = vpop.f32.mrf.mxu1 }
 0x61f   : > { %6045 = vrot.lane.b32.xlu1 %v9457_v47, %s7117_s27  ;;  %5542 = vmatprep.subr.bf16.mxu1 %v5488_v56 }
 0x620   : > { %v5428_v16 = vpop.permute.xlu0 %5427 }
 0x621   : > { %v5450_v31 = vpop.permute.xlu1 %5449 }
 0x622   : > { %6027 = vrot.lane.b32.xlu0 %v9289_v49, %s7117_s27  ;;  %v5490_v37 = vsel %vm2359_vm8, %v5450_v31, %v10272_v7  ;;  %v5489_v11 = vsel %vm2359_vm8, %v5448_v12, %v5450_v31 }
 0x623   : > { %6031 = vrot.lane.b32.xlu1 %v11051_v59, %s7117_s27  ;;  %5585 = vmatprep.subr.bf16.mxu0 %v5490_v37  ;;  %v10306_v33 = vpop.f32.mrf.mxu0 }
 0x624   : > { %v5432_v9 = vpop.permute.xlu0 %5431  ;;  %5586 = vmatpush1.bf16.msra.mxu0 %v5489_v11 }
 0x625   : > { %v5444_v39 = vpop.permute.xlu1 %5443  ;;  %v10322_v0 = vpop.f32.mrf.mxu0 }
 0x626   : > { %v5487_v25 = vsel %vm2359_vm8, %v5444_v39, %v5446_v50  ;;  %6075 = vrot.lane.b32.xlu0 %v11052_v30, %s7117_s27 }
 0x627   : > { %6035 = vrot.lane.b32.xlu1 %v9332_v4, %s7117_s27  ;;  %5543 = vmatpush1.bf16.msra.mxu1 %v5487_v25  ;;  %v10293_v38 = vpop.f32.mrf.mxu1  ;;  %v10334_v45 = vpop.f32.mrf.mxu0 }
 0x628   : > { %v5426_v61 = vpop.permute.xlu0 %5425 }
 0x629   : > { %v5430_v34 = vpop.permute.xlu1 %5429  ;;  %v5479_v55 = vsel %vm2359_vm8, %v5426_v61, %v5428_v16  ;;  %v10308_v48 = vpop.f32.mrf.mxu1 }
 0x62a   : > { %6079 = vrot.lane.b32.xlu0 %v11057_v32, %s7117_s27  ;;  %v5480_v53 = vsel %vm2359_vm8, %v5428_v16, %v5430_v34  ;;  %v5481_v26 = vsel %vm2359_vm8, %v5430_v34, %v5432_v9  ;;  %v10347_v11 = vpop.f32.mrf.mxu0 }
 0x62b   : > { %6073 = vrot.lane.b32.xlu1 %v11054_v58, %s7117_s27  ;;  %5544 = vmatprep.subr.bf16.mxu1 %v5480_v53  ;;  %v10312_v51 = vpop.f32.mrf.mxu1 }
 0x62c   : > { %v5474_v23 = vpop.permute.xlu0 %5473  ;;  %5545 = vmatpush1.bf16.msra.mxu1 %v5479_v55 }
 0x62d   : > { %v10310_v10 = vpop.permute.xlu1 %5433  ;;  %v10326_v22 = vpop.f32.mrf.mxu1 }
 0x62e   : > { %6057 = vrot.lane.b32.xlu0 %v9582_v19, %s7117_s27  ;;  %v5482_v63 = vsel %vm2359_vm8, %v5432_v9, %v10310_v10 }
 0x62f   : > { %6077 = vrot.lane.b32.xlu1 %v9975_v52, %s7117_s27  ;;  %6939 = vmatmul.mubr.msk.bf16.vlgmr.msra.gmra.mxu1 %vm476_vm3, %v10304_v36 }
 0x630   : > { %5587 = vmatprep.subr.bf16.mxu0 %v5482_v63  ;;  %v5478_v40 = vpop.permute.xlu0 %5477  ;;  %5648 = vmatprep.mubr.bf16.mxu1 %v11047_v1 }
 0x631   : > { %5588 = vmatpush1.bf16.msra.mxu0 %v5481_v26  ;;  %v5472_v35 = vpop.permute.xlu1 %5471 }
 0x632   : > { %v5499_v28 = vsel %vm2359_vm8, %v5470_v62, %v5472_v35  ;;  %6061 = vrot.lane.b32.xlu0 %v10078_v15, %s7117_s27  ;;  %v5500_v12 = vsel %vm2359_vm8, %v5472_v35, %v5474_v23 }
 0x633   : > { %6055 = vrot.lane.b32.xlu1 %v11060_v44, %s7117_s27  ;;  %5626 = vmatprep.subr.bf16.mxu1 %v5500_v12 }
 0x634   : > { %6940 = vmatmul.mubr.msk.bf16.vlgmr.msra.gmra.mxu0 %vm476_vm3, %v10304_v36  ;;  %v5456_v18 = vpop.permute.xlu0 %5455  ;;  %5627 = vmatpush1.bf16.msra.mxu1 %v5499_v28  ;;  %v4369_v50 = vpop.f32.mrf.mxu1 }
 0x635   : > { %v5476_v56 = vpop.permute.xlu1 %5475  ;;  %5691 = vmatprep.mubr.bf16.mxu0 %v11047_v1  ;;  %v10339_v62 = vadd.f32 %v4369_v50, %v4087_v46 }
 0x636   : > { %v5501_v16 = vsel %vm2359_vm8, %v5474_v23, %v5476_v56  ;;  %6039 = vrot.lane.b32.xlu0 %v9374_v21, %s7117_s27  ;;  %v5502_v31 = vsel %vm2359_vm8, %v5476_v56, %v5478_v40  ;;  %v4371_v37 = vpop.f32.mrf.mxu1 }
 0x637   : > { %6059 = vrot.lane.b32.xlu1 %v10119_v5, %s7117_s27  ;;  %5669 = vmatprep.subr.bf16.mxu0 %v5502_v31  ;;  %v10349_v9 = vadd.f32 %v4371_v37, %v4089_v57 }
 0x638   : > { %v5460_v39 = vpop.permute.xlu0 %5459  ;;  %5670 = vmatpush1.bf16.msra.mxu0 %v5501_v16  ;;  %v4373_v46 = vpop.f32.mrf.mxu1 }
 0x639   : > { %v5454_v25 = vpop.permute.xlu1 %5453  ;;  %v10351_v61 = vadd.f32 %v4373_v46, %v4091_v41 }
 0x63a   : > { %v5491_v34 = vsel %vm2359_vm8, %v10272_v7, %v5454_v25  ;;  %6043 = vrot.lane.b32.xlu0 %v11061_v17, %s7117_s27  ;;  %v5492_v53 = vsel %vm2359_vm8, %v5454_v25, %v5456_v18  ;;  %v4375_v55 = vpop.f32.mrf.mxu1 }
 0x63b   : > { %6037 = vrot.lane.b32.xlu1 %v9371_v14, %s7117_s27  ;;  %5628 = vmatprep.subr.bf16.mxu1 %v5492_v53  ;;  %v10360_v57 = vpop.f32.mrf.mxu0  ;;  %v10363_v23 = vadd.f32 %v4375_v55, %v10289_v8 }
 0x63c   : > { %v5438_v41 = vpop.permute.xlu0 %5437  ;;  %5629 = vmatpush1.bf16.msra.mxu1 %v5491_v34 }
 0x63d   : > { %v5458_v63 = vpop.permute.xlu1 %5457  ;;  %v10365_v26 = vpop.f32.mrf.mxu0 }
 0x63e   : > { %v5493_v7 = vsel %vm2359_vm8, %v5456_v18, %v5458_v63  ;;  %6368 = vrot.lane.b32.xlu0 %v9489_v43, %s7118_s9  ;;  %v5494_v40 = vsel %vm2359_vm8, %v5458_v63, %v5460_v39 }
 0x63f   : > { %6041 = vrot.lane.b32.xlu1 %v9380_v29, %s7117_s27  ;;  %5671 = vmatprep.subr.bf16.mxu0 %v5494_v40  ;;  %v10373_v35 = vpop.f32.mrf.mxu0 }
 0x640   : > { %v5442_v8 = vpop.permute.xlu0 %5441  ;;  %5672 = vmatpush1.bf16.msra.mxu0 %v5493_v7  ;;  %v4455_v28 = vpop.f32.mrf.mxu1 }
 0x641   : > { %v5436_v12 = vpop.permute.xlu1 %5435  ;;  %v10376_v50 = vadd.f32 %v4455_v28, %v10293_v38  ;;  %v10385_v16 = vpop.f32.mrf.mxu0 }
 0x642   : > { %v5483_v18 = vsel %vm2359_vm8, %v10310_v10, %v5436_v12  ;;  %6372 = vrot.lane.b32.xlu0 %v9510_v20, %s7118_s9  ;;  %v5484_v43 = vsel %vm2359_vm8, %v5436_v12, %v5438_v41  ;;  %v4457_v56 = vpop.f32.mrf.mxu1 }
 0x643   : > { %6366 = vrot.lane.b32.xlu1 %v9443_v3, %s7118_s9  ;;  %5630 = vmatprep.subr.bf16.mxu1 %v5484_v43  ;;  %v10388_v31 = vadd.f32 %v4457_v56, %v10308_v48 }
 0x644   : > { %v5767_v38 = vpop.permute.xlu0 %5766  ;;  %5631 = vmatpush1.bf16.msra.mxu1 %v5483_v18  ;;  %v4459_v37 = vpop.f32.mrf.mxu1 }
 0x645   : > { %v5440_v39 = vpop.permute.xlu1 %5439  ;;  %v10391_v10 = vadd.f32 %v4459_v37, %v10312_v51 }
 0x646   : > { %v5485_v20 = vsel %vm2359_vm8, %v5438_v41, %v5440_v39  ;;  %6348 = vrot.lane.b32.xlu0 %v9462_v42, %s7118_s9  ;;  %v5486_v3 = vsel %vm2359_vm8, %v5440_v39, %v5442_v8  ;;  %v4461_v46 = vpop.f32.mrf.mxu1 }
 0x647   : > { %6370 = vrot.lane.b32.xlu1 %v9528_v13, %s7118_s9  ;;  %6941 = vmatmul.mubr.msk.bf16.vlgmr.msra.gmra.mxu1 %vm476_vm3, %v10304_v36  ;;  %v10402_v48 = vadd.f32 %v4461_v46, %v10326_v22 }
 0x648   : > { %5673 = vmatprep.subr.bf16.mxu0 %v5486_v3  ;;  %v10404_v51 = vpop.permute.xlu0 %5770  ;;  %5863 = vmatprep.mubr.bf16.mxu1 %v11047_v1  ;;  %v4412_v25 = vpop.f32.mrf.mxu0 }
 0x649   : > { %5674 = vmatpush1.bf16.msra.mxu0 %v5485_v20  ;;  %v5765_v42 = vpop.permute.xlu1 %5764  ;;  %v10408_v34 = vadd.f32 %v4412_v25, %v10306_v33 }
 0x64a   : > { %6352 = vrot.lane.b32.xlu0 %v9500_v60, %s7118_s9  ;;  %v5797_v13 = vsel %vm2732_vm9, %v5765_v42, %v5767_v38  ;;  %v4414_v53 = vpop.f32.mrf.mxu0 }
 0x64b   : > { %6364 = vrot.lane.b32.xlu1 %v9438_v27, %s7118_s9  ;;  %5841 = vmatprep.subr.bf16.mxu1 %v5797_v13  ;;  %v10416_v22 = vadd.f32 %v4414_v53, %v10322_v0 }
 0x64c   : > { %6942 = vmatmul.mubr.msk.bf16.vlgmr.msra.gmra.mxu0 %vm476_vm3, %v10304_v36  ;;  %v5747_v55 = vpop.permute.xlu0 %5746  ;;  %v4416_v41 = vpop.f32.mrf.mxu0 }
 0x64d   : > { %v5769_v33 = vpop.permute.xlu1 %5768  ;;  %5906 = vmatprep.mubr.bf16.mxu0 %v11047_v1  ;;  %v10422_v60 = vadd.f32 %v4416_v41, %v10334_v45  ;;  %v4654_v63 = vpop.f32.mrf.mxu1 }
 0x64e   : > { %v5798_v7 = vsel %vm2732_vm9, %v5767_v38, %v5769_v33  ;;  %6346 = vrot.lane.b32.xlu0 %v9457_v47, %s7118_s9  ;;  %v5799_v27 = vsel %vm2732_vm9, %v5769_v33, %v10404_v51  ;;  %v4418_v0 = vpop.f32.mrf.mxu0  ;;  %v10430_v36 = vadd.f32 %v4654_v63, %v10339_v62 }
 0x64f   : > { %6350 = vrot.lane.b32.xlu1 %v9505_v54, %s7118_s9  ;;  %5884 = vmatprep.subr.bf16.mxu0 %v5799_v27  ;;  %v10435_v45 = vadd.f32 %v4418_v0, %v10347_v11  ;;  %v4656_v40 = vpop.f32.mrf.mxu1 }
 0x650   : > { %v5751_v8 = vpop.permute.xlu0 %5750  ;;  %5885 = vmatpush1.bf16.msra.mxu0 %v5798_v7  ;;  %v10438_v28 = vadd.f32 %v4656_v40, %v10349_v9 }
 0x651   : > { %v5763_v47 = vpop.permute.xlu1 %5762  ;;  %v4658_v12 = vpop.f32.mrf.mxu1 }
 0x652   : > { %v5796_v18 = vsel %vm2732_vm9, %v5763_v47, %v5765_v42  ;;  %6332 = vrot.lane.b32.xlu0 %v11051_v59, %s7118_s9  ;;  %v10444_v62 = vadd.f32 %v4658_v12, %v10351_v61 }
 0x653   : > { %6354 = vrot.lane.b32.xlu1 %v9517_v6, %s7118_s9  ;;  %5842 = vmatpush1.bf16.msra.mxu1 %v5796_v18  ;;  %v4660_v54 = vpop.f32.mrf.mxu1 }
 0x654   : > { %v5745_v11 = vpop.permute.xlu0 %5744  ;;  %v4498_v43 = vpop.f32.mrf.mxu0  ;;  %v10449_v9 = vadd.f32 %v4660_v54, %v10363_v23 }
 0x655   : > { %v5749_v56 = vpop.permute.xlu1 %5748  ;;  %v10452_v38 = vadd.f32 %v4498_v43, %v10360_v57  ;;  %v5788_v37 = vsel %vm2732_vm9, %v5745_v11, %v5747_v55 }
 0x656   : > { %6336 = vrot.lane.b32.xlu0 %v9332_v4, %s7118_s9  ;;  %v5789_v59 = vsel %vm2732_vm9, %v5747_v55, %v5749_v56  ;;  %v4500_v61 = vpop.f32.mrf.mxu0 }
 0x657   : > { %6330 = vrot.lane.b32.xlu1 %v9321_v2, %s7118_s9  ;;  %5843 = vmatprep.subr.bf16.mxu1 %v5789_v59  ;;  %v10461_v6 = vadd.f32 %v4500_v61, %v10365_v26  ;;  %v5790_v2 = vsel %vm2732_vm9, %v5749_v56, %v5751_v8 }
 0x658   : > { %v5731_v23 = vpop.permute.xlu0 %5730  ;;  %5844 = vmatpush1.bf16.msra.mxu1 %v5788_v37  ;;  %v4502_v39 = vpop.f32.mrf.mxu0 }
 0x659   : > { %v10463_v57 = vpop.permute.xlu1 %5752  ;;  %v10466_v20 = vadd.f32 %v4502_v39, %v10373_v35 }
 0x65a   : > { %6374 = vrot.lane.b32.xlu0 %v11054_v58, %s7118_s9  ;;  %v5791_v4 = vsel %vm2732_vm9, %v5751_v8, %v10463_v57  ;;  %v4504_v3 = vpop.f32.mrf.mxu0 }
 0x65b   : > { %6334 = vrot.lane.b32.xlu1 %v9328_v24, %s7118_s9  ;;  %5886 = vmatprep.subr.bf16.mxu0 %v5791_v4  ;;  %v10476_v26 = vadd.f32 %v4504_v3, %v10385_v16 }
 0x65c   : > { %v10478_v46 = vpop.permute.xlu0 %5734  ;;  %5887 = vmatpush1.bf16.msra.mxu0 %v5790_v2 }
 0x65d   : > { %v5729_v35 = vpop.permute.xlu1 %5728 }
 0x65e   : > { %6378 = vrot.lane.b32.xlu0 %v9975_v52, %s7118_s9  ;;  %v5781_v58 = vsel %vm2732_vm9, %v5729_v35, %v5731_v23 }
 0x65f   : > { %6328 = vrot.lane.b32.xlu1 %v9289_v49, %s7118_s9  ;;  %5845 = vmatprep.subr.bf16.mxu1 %v5781_v58 }
 0x660   : > { %v5773_v25 = vpop.permute.xlu0 %5772  ;;  %v4697_v42 = vpop.f32.mrf.mxu0 }
 0x661   : > { %v5733_v24 = vpop.permute.xlu1 %5732  ;;  %v10486_v13 = vadd.f32 %v4697_v42, %v10408_v34  ;;  %v10501_v34 = vld [vmem:[%s10915_s2 + $0x30] sm:$0xff]   ;;  %v5800_v47 = vsel %vm2732_vm9, %v10404_v51, %v5773_v25 }
 0x662   : > { %v5782_v16 = vsel %vm2732_vm9, %v5731_v23, %v5733_v24  ;;  %6356 = vrot.lane.b32.xlu0 %v11060_v44, %s7118_s9  ;;  %v5783_v52 = vsel %vm2732_vm9, %v5733_v24, %v10478_v46  ;;  %v4699_v53 = vpop.f32.mrf.mxu0 }
 0x663   : > { %6376 = vrot.lane.b32.xlu1 %v11052_v30, %s7118_s9  ;;  %5888 = vmatprep.subr.bf16.mxu0 %v5783_v52  ;;  %v10496_v49 = vadd.f32 %v4699_v53, %v10416_v22  ;;  %v4740_v55 = vpop.f32.mrf.mxu1 }
 0x664   : > { %v5777_v41 = vpop.permute.xlu0 %5776  ;;  %5889 = vmatpush1.bf16.msra.mxu0 %v5782_v16  ;;  %v4701_v44 = vpop.f32.mrf.mxu0  ;;  %v10504_v33 = vadd.f32 %v4740_v55, %v10376_v50 }
 0x665   : > { %v5727_v63 = vpop.permute.xlu1 %5726  ;;  %v10507_v7 = vadd.f32 %v4701_v44, %v10422_v60  ;;  %v4742_v30 = vpop.f32.mrf.mxu1 }
 0x666   : > { %v5780_v22 = vsel %vm2732_vm9, %v5727_v63, %v5729_v35  ;;  %6360 = vrot.lane.b32.xlu0 %v10119_v5, %s7118_s9  ;;  %v4703_v27 = vpop.f32.mrf.mxu0  ;;  %v10513_v0 = vadd.f32 %v4742_v30, %v10388_v31 }
 0x667   : > { %6380 = vrot.lane.b32.xlu1 %v11057_v32, %s7118_s9  ;;  %5846 = vmatpush1.bf16.msra.mxu1 %v5780_v22  ;;  %v10518_v50 = vadd.f32 %v4703_v27, %v10435_v45  ;;  %v4744_v40 = vpop.f32.mrf.mxu1 }
 0x668   : > { %6947 = vmatmul.mubr.msk.bf16.vlgmr.msra.gmra.mxu0 %vm476_vm3, %v10501_v34  ;;  %v5755_v60 = vpop.permute.xlu0 %5754  ;;  %v10523_v8 = vadd.f32 %v4744_v40, %v10391_v10 }
 0x669   : > { %v5775_v5 = vpop.permute.xlu1 %5774  ;;  %5992 = vmatprep.mubr.bf16.mxu0 %v11047_v1  ;;  %v4746_v31 = vpop.f32.mrf.mxu1  ;;  %v5792_v61 = vsel %vm2732_vm9, %v10463_v57, %v5755_v60 }
 0x66a   : > { %6338 = vrot.lane.b32.xlu0 %v9371_v14, %s7118_s9  ;;  %6946 = vmatmul.mubr.msk.bf16.vlgmr.msra.gmra.mxu1 %vm476_vm3, %v10501_v34  ;;  %v5801_v32 = vsel %vm2732_vm9, %v5773_v25, %v5775_v5  ;;  %v10532_v45 = vadd.f32 %v4746_v31, %v10402_v48  ;;  %v5802_v51 = vsel %vm2732_vm9, %v5775_v5, %v5777_v41 }
 0x66b   : > { %6358 = vrot.lane.b32.xlu1 %v9582_v19, %s7118_s9  ;;  %5927 = vmatprep.subr.bf16.mxu1 %v5801_v32 }
 0x66c   : > { %v5759_v10 = vpop.permute.xlu0 %5758  ;;  %5928 = vmatpush1.bf16.msra.mxu1 %v5800_v47  ;;  %5949 = vmatprep.mubr.bf16.mxu1 %v11047_v1  ;;  %v4783_v14 = vpop.f32.mrf.mxu0 }
 0x66d   : > { %v5779_v12 = vpop.permute.xlu1 %5778  ;;  %v10540_v18 = vadd.f32 %v4783_v14, %v10452_v38 }
 0x66e   : > { %6342 = vrot.lane.b32.xlu0 %v9380_v29, %s7118_s9  ;;  %v5803_v48 = vsel %vm2732_vm9, %v5777_v41, %v5779_v12  ;;  %v4785_v54 = vpop.f32.mrf.mxu0 }
 0x66f   : > { %6362 = vrot.lane.b32.xlu1 %v10078_v15, %s7118_s9  ;;  %5970 = vmatprep.subr.bf16.mxu0 %v5803_v48  ;;  %v10549_v19 = vadd.f32 %v4785_v54, %v10461_v6 }
 0x670   : > { %v5737_v11 = vpop.permute.xlu0 %5736  ;;  %5971 = vmatpush1.bf16.msra.mxu0 %v5802_v51  ;;  %v4787_v43 = vpop.f32.mrf.mxu0 }
 0x671   : > { %v5757_v56 = vpop.permute.xlu1 %5756  ;;  %v10552_v38 = vadd.f32 %v4787_v43, %v10466_v20  ;;  %v5784_v4 = vsel %vm2732_vm9, %v10478_v46, %v5737_v11 }
 0x672   : > { %v5793_v29 = vsel %vm2732_vm9, %v5755_v60, %v5757_v56  ;;  %v4789_v59 = vpop.f32.mrf.mxu0  ;;  %v5794_v39 = vsel %vm2732_vm9, %v5757_v56, %v5759_v10 }
 0x673   : > { %6340 = vrot.lane.b32.xlu1 %v9374_v21, %s7118_s9  ;;  %5929 = vmatprep.subr.bf16.mxu1 %v5793_v29  ;;  %v10560_v15 = vadd.f32 %v4789_v59, %v10476_v26 }
 0x674   : > { %v5741_v37 = vpop.permute.xlu0 %5740  ;;  %5930 = vmatpush1.bf16.msra.mxu1 %v5792_v61 }
 0x675   : > { %v5761_v6 = vpop.permute.xlu1 %5760 }
 0x676   : > { %v5795_v23 = vsel %vm2732_vm9, %v5759_v10, %v5761_v6 }
 0x677   : > { %6344 = vrot.lane.b32.xlu1 %v11061_v17, %s7118_s9  ;;  %5972 = vmatprep.subr.bf16.mxu0 %v5795_v23 }
 0x678   : > { %v6066_v20 = vpop.permute.xlu0 %6065  ;;  %5973 = vmatpush1.bf16.msra.mxu0 %v5794_v39 }
 0x679   : > { %v5739_v57 = vpop.permute.xlu1 %5738 }
 0x67a   : > { %v5785_v21 = vsel %vm2732_vm9, %v5737_v11, %v5739_v57  ;;  %v5786_v35 = vsel %vm2732_vm9, %v5739_v57, %v5741_v37 }
 0x67b   : > { %5931 = vmatprep.subr.bf16.mxu1 %v5785_v21 }
 0x67c   : > { %v6070_v3 = vpop.permute.xlu0 %6069  ;;  %5932 = vmatpush1.bf16.msra.mxu1 %v5784_v4 }
 0x67d   : > { %v5743_v2 = vpop.permute.xlu1 %5742 }
 0x67e   : > { %v5787_v26 = vsel %vm2732_vm9, %v5741_v37, %v5743_v2 }
 0x67f   : > { %6948 = vmatmul.mubr.msk.bf16.vlgmr.msra.gmra.mxu1 %vm476_vm3, %v10501_v34  ;;  %5974 = vmatprep.subr.bf16.mxu0 %v5787_v26 }
 0x680   : > { %v6064_v17 = vpop.permute.xlu0 %6063  ;;  %5975 = vmatpush1.bf16.msra.mxu0 %v5786_v35  ;;  %6164 = vmatprep.mubr.bf16.mxu1 %v11047_v1 }
 0x681   : > { %v6068_v58 = vpop.permute.xlu1 %6067  ;;  %v6097_v46 = vsel %vm3105_vm10, %v6064_v17, %v6066_v20 }
 0x682   : > { %v6098_v25 = vsel %vm3105_vm10, %v6066_v20, %v6068_v58  ;;  %v6099_v41 = vsel %vm3105_vm10, %v6068_v58, %v6070_v3 }
 0x683   : > { %6949 = vmatmul.mubr.msk.bf16.vlgmr.msra.gmra.mxu0 %vm476_vm3, %v10501_v34  ;;  %6142 = vmatprep.subr.bf16.mxu1 %v6098_v25 }
 0x684   : > { %v6050_v42 = vpop.permute.xlu0 %6049  ;;  %6143 = vmatpush1.bf16.msra.mxu1 %v6097_v46  ;;  %6207 = vmatprep.mubr.bf16.mxu0 %v11047_v1  ;;  %v4955_v24 = vpop.f32.mrf.mxu1 }
 0x685   : > { %v6072_v16 = vpop.permute.xlu1 %6071  ;;  %v10580_v52 = vadd.f32 %v4955_v24, %v10430_v36 }
 0x686   : > { %v6100_v53 = vsel %vm3105_vm10, %v6070_v3, %v6072_v16  ;;  %v4957_v55 = vpop.f32.mrf.mxu1 }
 0x687   : > { %6185 = vmatprep.subr.bf16.mxu0 %v6100_v53  ;;  %v10585_v44 = vadd.f32 %v4957_v55, %v10438_v28 }
 0x688   : > { %v10587_v34 = vpop.permute.xlu0 %6053  ;;  %6186 = vmatpush1.bf16.msra.mxu0 %v6099_v41  ;;  %v4959_v63 = vpop.f32.mrf.mxu1 }
 0x689   : > { %v6048_v30 = vpop.permute.xlu1 %6047  ;;  %v10590_v22 = vadd.f32 %v4959_v63, %v10444_v62  ;;  %v4998_v27 = vpop.f32.mrf.mxu0 }
 0x68a   : > { %v6090_v36 = vsel %vm3105_vm10, %v6048_v30, %v6050_v42  ;;  %v10594_v40 = vadd.f32 %v4998_v27, %v10486_v13  ;;  %v4961_v60 = vpop.f32.mrf.mxu1 }
 0x68b   : > { %6144 = vmatprep.subr.bf16.mxu1 %v6090_v36  ;;  %v10597_v5 = vadd.f32 %v4961_v60, %v10449_v9  ;;  %v5000_v28 = vpop.f32.mrf.mxu0 }
 0x68c   : > { %v6030_v31 = vpop.permute.xlu0 %6029  ;;  %v10600_v32 = vadd.f32 %v5000_v28, %v10496_v49 }
 0x68d   : > { %v6052_v47 = vpop.permute.xlu1 %6051  ;;  %v5002_v10 = vpop.f32.mrf.mxu0 }
 0x68e   : > { %v6091_v62 = vsel %vm3105_vm10, %v6050_v42, %v6052_v47  ;;  %v6092_v14 = vsel %vm3105_vm10, %v6052_v47, %v10587_v34  ;;  %v10606_v13 = vadd.f32 %v5002_v10, %v10507_v7  ;;  %v10617_v7 = vld [vmem:[%s10915_s2 + $0x38] sm:$0xff]  }
 0x68f   : > { %6187 = vmatprep.subr.bf16.mxu0 %v6092_v14  ;;  %v5004_v12 = vpop.f32.mrf.mxu0 }
 0x690   : > { %v6034_v48 = vpop.permute.xlu0 %6033  ;;  %6188 = vmatpush1.bf16.msra.mxu0 %v6091_v62  ;;  %v10609_v9 = vadd.f32 %v5004_v12, %v10518_v50 }
 0x691   : > { %v6046_v54 = vpop.permute.xlu1 %6045 }
 0x692   : > { %v6089_v49 = vsel %vm3105_vm10, %v6046_v54, %v6048_v30 }
 0x693   : > { %6145 = vmatpush1.bf16.msra.mxu1 %v6089_v49 }
 0x694   : > { %v6028_v51 = vpop.permute.xlu0 %6027 }
 0x695   : > { %v6032_v11 = vpop.permute.xlu1 %6031  ;;  %v6081_v56 = vsel %vm3105_vm10, %v6028_v51, %v6030_v31 }
 0x696   : > { %v6082_v43 = vsel %vm3105_vm10, %v6030_v31, %v6032_v11  ;;  %v6083_v61 = vsel %vm3105_vm10, %v6032_v11, %v6034_v48 }
 0x697   : > { %6146 = vmatprep.subr.bf16.mxu1 %v6082_v43 }
 0x698   : > { %v6076_v29 = vpop.permute.xlu0 %6075  ;;  %6147 = vmatpush1.bf16.msra.mxu1 %v6081_v56 }
 0x699   : > { %v6036_v50 = vpop.permute.xlu1 %6035 }
 0x69a   : > { %v6084_v59 = vsel %vm3105_vm10, %v6034_v48, %v6036_v50 }
 0x69b   : > { %6953 = vmatmul.mubr.msk.bf16.vlgmr.msra.gmra.mxu1 %vm476_vm3, %v10617_v7  ;;  %6189 = vmatprep.subr.bf16.mxu0 %v6084_v59 }
 0x69c   : > { %v6080_v37 = vpop.permute.xlu0 %6079  ;;  %6190 = vmatpush1.bf16.msra.mxu0 %v6083_v61  ;;  %6250 = vmatprep.mubr.bf16.mxu1 %v11047_v1  ;;  %v5041_v6 = vpop.f32.mrf.mxu1 }
 0x69d   : > { %v6074_v23 = vpop.permute.xlu1 %6073  ;;  %v10625_v39 = vadd.f32 %v5041_v6, %v10504_v33 }
 0x69e   : > { %v6101_v20 = vsel %vm3105_vm10, %v6072_v16, %v6074_v23  ;;  %v6102_v57 = vsel %vm3105_vm10, %v6074_v23, %v6076_v29  ;;  %v5043_v21 = vpop.f32.mrf.mxu1 }
 0x69f   : > { %6954 = vmatmul.mubr.msk.bf16.vlgmr.msra.gmra.mxu0 %vm476_vm3, %v10617_v7  ;;  %6228 = vmatprep.subr.bf16.mxu1 %v6102_v57  ;;  %v10632_v4 = vadd.f32 %v5043_v21, %v10513_v0 }
 0x6a0   : > { %v6058_v3 = vpop.permute.xlu0 %6057  ;;  %6229 = vmatpush1.bf16.msra.mxu1 %v6101_v20  ;;  %6293 = vmatprep.mubr.bf16.mxu0 %v11047_v1  ;;  %v5045_v2 = vpop.f32.mrf.mxu1 }
 0x6a1   : > { %v6078_v26 = vpop.permute.xlu1 %6077  ;;  %v10636_v33 = vadd.f32 %v5045_v2, %v10523_v8  ;;  %v5084_v35 = vpop.f32.mrf.mxu0 }
 0x6a2   : > { %v6103_v17 = vsel %vm3105_vm10, %v6076_v29, %v6078_v26  ;;  %v6104_v58 = vsel %vm3105_vm10, %v6078_v26, %v6080_v37  ;;  %v10641_v25 = vadd.f32 %v5084_v35, %v10540_v18  ;;  %v5047_v46 = vpop.f32.mrf.mxu1 }
 0x6a3   : > { %6271 = vmatprep.subr.bf16.mxu0 %v6104_v58  ;;  %v10644_v0 = vadd.f32 %v5047_v46, %v10532_v45  ;;  %v5086_v42 = vpop.f32.mrf.mxu0 }
 0x6a4   : > { %v6062_v24 = vpop.permute.xlu0 %6061  ;;  %6272 = vmatpush1.bf16.msra.mxu0 %v6103_v17  ;;  %v10647_v16 = vadd.f32 %v5086_v42, %v10549_v19 }
 0x6a5   : > { %v6056_v8 = vpop.permute.xlu1 %6055  ;;  %v5088_v53 = vpop.f32.mrf.mxu0 }
 0x6a6   : > { %v6093_v55 = vsel %vm3105_vm10, %v10587_v34, %v6056_v8  ;;  %v6094_v41 = vsel %vm3105_vm10, %v6056_v8, %v6058_v3  ;;  %v10653_v18 = vadd.f32 %v5088_v53, %v10552_v38  ;;  %v10700_v8 = vld [vmem:[%s10915_s2 + $0x40] sm:$0xff]  }
 0x6a7   : > { %6230 = vmatprep.subr.bf16.mxu1 %v6094_v41  ;;  %v5090_v63 = vpop.f32.mrf.mxu0 }
 0x6a8   : > { %v6040_v45 = vpop.permute.xlu0 %6039  ;;  %6231 = vmatpush1.bf16.msra.mxu1 %v6093_v55  ;;  %v10656_v30 = vadd.f32 %v5090_v63, %v10560_v15 }
 0x6a9   : > { %v6060_v27 = vpop.permute.xlu1 %6059 }
 0x6aa   : > { %v6095_v19 = vsel %vm3105_vm10, %v6058_v3, %v6060_v27  ;;  %v6096_v36 = vsel %vm3105_vm10, %v6060_v27, %v6062_v24 }
 0x6ab   : > { %6273 = vmatprep.subr.bf16.mxu0 %v6096_v36 }
 0x6ac   : > { %v6044_v60 = vpop.permute.xlu0 %6043  ;;  %6274 = vmatpush1.bf16.msra.mxu0 %v6095_v19 }
 0x6ad   : > { %v6038_v34 = vpop.permute.xlu1 %6037 }
 0x6ae   : > { %v6085_v28 = vsel %vm3105_vm10, %v6036_v50, %v6038_v34  ;;  %v6086_v38 = vsel %vm3105_vm10, %v6038_v34, %v6040_v45 }
 0x6af   : > { %6232 = vmatprep.subr.bf16.mxu1 %v6086_v38 }
 0x6b0   : > { %v6369_v31 = vpop.permute.xlu0 %6368  ;;  %6233 = vmatpush1.bf16.msra.mxu1 %v6085_v28 }
 0x6b1   : > { %v6042_v47 = vpop.permute.xlu1 %6041 }
 0x6b2   : > { %v6087_v15 = vsel %vm3105_vm10, %v6040_v45, %v6042_v47  ;;  %v6088_v10 = vsel %vm3105_vm10, %v6042_v47, %v6044_v60 }
 0x6b3   : > { %6955 = vmatmul.mubr.msk.bf16.vlgmr.msra.gmra.mxu1 %vm476_vm3, %v10617_v7  ;;  %6275 = vmatprep.subr.bf16.mxu0 %v6088_v10 }
 0x6b4   : > { %v10666_v62 = vpop.permute.xlu0 %6372  ;;  %6276 = vmatpush1.bf16.msra.mxu0 %v6087_v15  ;;  %6465 = vmatprep.mubr.bf16.mxu1 %v11047_v1 }
 0x6b5   : > { %v6367_v14 = vpop.permute.xlu1 %6366 }
 0x6b6   : > { %v6399_v12 = vsel %vm3478_vm11, %v6367_v14, %v6369_v31 }
 0x6b7   : > { %6956 = vmatmul.mubr.msk.bf16.vlgmr.msra.gmra.mxu0 %vm476_vm3, %v10617_v7  ;;  %6443 = vmatprep.subr.bf16.mxu1 %v6399_v12 }
 0x6b8   : > { %v6349_v48 = vpop.permute.xlu0 %6348  ;;  %6508 = vmatprep.mubr.bf16.mxu0 %v11047_v1 }
 0x6b9   : > { %v6371_v54 = vpop.permute.xlu1 %6370 }
 0x6ba   : > { %v6400_v49 = vsel %vm3478_vm11, %v6369_v31, %v6371_v54  ;;  %v6401_v51 = vsel %vm3478_vm11, %v6371_v54, %v10666_v62 }
 0x6bb   : > { %6486 = vmatprep.subr.bf16.mxu0 %v6401_v51 }
 0x6bc   : > { %v6353_v11 = vpop.permute.xlu0 %6352  ;;  %6487 = vmatpush1.bf16.msra.mxu0 %v6400_v49  ;;  %v10687_v2 = vpop.f32.mrf.mxu0 }
 0x6bd   : > { %v6365_v43 = vpop.permute.xlu1 %6364 }
 0x6be   : > { %v6398_v56 = vsel %vm3478_vm11, %v6365_v43, %v6367_v14  ;;  %v10679_v37 = vpop.f32.mrf.mxu1  ;;  %v10692_v46 = vpop.f32.mrf.mxu0 }
 0x6bf   : > { %6444 = vmatpush1.bf16.msra.mxu1 %v6398_v56 }
 0x6c0   : > { %v6347_v29 = vpop.permute.xlu0 %6346  ;;  %v10685_v21 = vpop.f32.mrf.mxu1 }
 0x6c1   : > { %v6351_v50 = vpop.permute.xlu1 %6350  ;;  %v6390_v59 = vsel %vm3478_vm11, %v6347_v29, %v6349_v48  ;;  %v10704_v63 = vpop.f32.mrf.mxu0 }
 0x6c2   : > { %v6391_v7 = vsel %vm3478_vm11, %v6349_v48, %v6351_v50  ;;  %v6392_v20 = vsel %vm3478_vm11, %v6351_v50, %v6353_v11  ;;  %v10690_v17 = vpop.f32.mrf.mxu1 }
 0x6c3   : > { %6445 = vmatprep.subr.bf16.mxu1 %v6391_v7  ;;  %v10713_v60 = vpop.f32.mrf.mxu0 }
 0x6c4   : > { %v6333_v61 = vpop.permute.xlu0 %6332  ;;  %6446 = vmatpush1.bf16.msra.mxu1 %v6390_v59  ;;  %v10702_v55 = vpop.f32.mrf.mxu1 }
 0x6c5   : > { %v6355_v6 = vpop.permute.xlu1 %6354 }
 0x6c6   : > { %v6393_v23 = vsel %vm3478_vm11, %v6353_v11, %v6355_v6 }
 0x6c7   : > { %6488 = vmatprep.subr.bf16.mxu0 %v6393_v23 }
 0x6c8   : > { %v10683_v57 = vpop.permute.xlu0 %6336  ;;  %6489 = vmatpush1.bf16.msra.mxu0 %v6392_v20 }
 0x6c9   : > { %v6331_v3 = vpop.permute.xlu1 %6330 }
 0x6ca   : > { %v6383_v26 = vsel %vm3478_vm11, %v6331_v3, %v6333_v61 }
 0x6cb   : > { %6447 = vmatprep.subr.bf16.mxu1 %v6383_v26 }
 0x6cc   : > { %v6375_v35 = vpop.permute.xlu0 %6374 }
 0x6cd   : > { %v6335_v58 = vpop.permute.xlu1 %6334  ;;  %v6402_v31 = vsel %vm3478_vm11, %v10666_v62, %v6375_v35 }
 0x6ce   : > { %v6384_v42 = vsel %vm3478_vm11, %v6333_v61, %v6335_v58  ;;  %v6385_v24 = vsel %vm3478_vm11, %v6335_v58, %v10683_v57 }
 0x6cf   : > { %6490 = vmatprep.subr.bf16.mxu0 %v6385_v24 }
 0x6d0   : > { %v6379_v53 = vpop.permute.xlu0 %6378  ;;  %6491 = vmatpush1.bf16.msra.mxu0 %v6384_v42 }
 0x6d1   : > { %v6329_v41 = vpop.permute.xlu1 %6328 }
 0x6d2   : > { %v6382_v45 = vsel %vm3478_vm11, %v6329_v41, %v6331_v3 }
 0x6d3   : > { %6448 = vmatpush1.bf16.msra.mxu1 %v6382_v45  ;;  %6961 = vmatmul.mubr.msk.bf16.vlgmr.msra.gmra.mxu0 %vm476_vm3, %v10700_v8 }
 0x6d4   : > { %v5346_v27 = vpop.f32.mrf.mxu1  ;;  %6594 = vmatprep.mubr.bf16.mxu0 %v11047_v1  ;;  %v6357_v34 = vpop.permute.xlu0 %6356 }
 0x6d5   : > { %v6377_v19 = vpop.permute.xlu1 %6376  ;;  %v10711_v36 = vadd.f32 %v5346_v27, %v10625_v39  ;;  %v6394_v56 = vsel %vm3478_vm11, %v6355_v6, %v6357_v34 }
 0x6d6   : > { %6960 = vmatmul.mubr.msk.bf16.vlgmr.msra.gmra.mxu1 %vm476_vm3, %v10700_v8  ;;  %v6403_v28 = vsel %vm3478_vm11, %v6375_v35, %v6377_v19  ;;  %v5348_v38 = vpop.f32.mrf.mxu1  ;;  %v6404_v62 = vsel %vm3478_vm11, %v6377_v19, %v6379_v53 }
 0x6d7   : > { %6529 = vmatprep.subr.bf16.mxu1 %v6403_v28  ;;  %v10721_v47 = vadd.f32 %v5348_v38, %v10632_v4  ;;  %6551 = vmatprep.mubr.bf16.mxu1 %v11047_v1 }
 0x6d8   : > { %6530 = vmatpush1.bf16.msra.mxu1 %v6402_v31  ;;  %v5350_v39 = vpop.f32.mrf.mxu1  ;;  %v5389_v14 = vpop.f32.mrf.mxu0 }
 0x6d9   : > { %v6381_v15 = vpop.permute.xlu1 %6380  ;;  %v10725_v10 = vadd.f32 %v5350_v39, %v10636_v33  ;;  %v10729_v48 = vadd.f32 %v5389_v14, %v10641_v25  ;;  %v6361_v49 = vpop.permute.xlu0 %6360 }
 0x6da   : > { %v6405_v12 = vsel %vm3478_vm11, %v6379_v53, %v6381_v15  ;;  %v5352_v54 = vpop.f32.mrf.mxu1  ;;  %v5391_v1 = vpop.f32.mrf.mxu0 }
 0x6db   : > { %6572 = vmatprep.subr.bf16.mxu0 %v6405_v12  ;;  %v10733_v4 = vadd.f32 %v5352_v54, %v10644_v0  ;;  %v10736_v51 = vadd.f32 %v5391_v1, %v10647_v16 }
 0x6dc   : > { %6573 = vmatpush1.bf16.msra.mxu0 %v6404_v62  ;;  %v5393_v11 = vpop.f32.mrf.mxu0 }
 0x6dd   : > { %v6359_v33 = vpop.permute.xlu1 %6358  ;;  %v10740_v25 = vadd.f32 %v5393_v11, %v10653_v18  ;;  %v6339_v16 = vpop.permute.xlu0 %6338 }
 0x6de   : > { %v6395_v43 = vsel %vm3478_vm11, %v6357_v34, %v6359_v33  ;;  %v5395_v29 = vpop.f32.mrf.mxu0  ;;  %v6396_v59 = vsel %vm3478_vm11, %v6359_v33, %v6361_v49  ;;  %v6386_v6 = vsel %vm3478_vm11, %v10683_v57, %v6339_v16 }
 0x6df   : > { %11062 = vst [vmem:[#allocation21_spill] sm:$0xff] %v10740_v25  ;;  %6531 = vmatprep.subr.bf16.mxu1 %v6395_v43  ;;  %v10744_v0 = vadd.f32 %v5395_v29, %v10656_v30 }
 0x6e0   : > { %6532 = vmatpush1.bf16.msra.mxu1 %v6394_v56 }
 0x6e1   : > { %11063 = vst [vmem:[#allocation13_spill] sm:$0xff] %v10744_v0  ;;  %v6363_v50 = vpop.permute.xlu1 %6362  ;;  %v6343_v23 = vpop.permute.xlu0 %6342 }
 0x6e2   : > { %v6397_v7 = vsel %vm3478_vm11, %v6361_v49, %v6363_v50 }
 0x6e3   : > { %6574 = vmatprep.subr.bf16.mxu0 %v6397_v7 }
 0x6e4   : > { %6575 = vmatpush1.bf16.msra.mxu0 %v6396_v59 }
 0x6e5   : > { %v6341_v61 = vpop.permute.xlu1 %6340 }
 0x6e6   : > { %v6387_v18 = vsel %vm3478_vm11, %v6339_v16, %v6341_v61  ;;  %v6388_v3 = vsel %vm3478_vm11, %v6341_v61, %v6343_v23 }
 0x6e7   : > { %6533 = vmatprep.subr.bf16.mxu1 %v6387_v18 }
 0x6e8   : > { %6534 = vmatpush1.bf16.msra.mxu1 %v6386_v6 }
 0x6e9   : > { %v6345_v20 = vpop.permute.xlu1 %6344 }
 0x6ea   : > { %v6389_v30 = vsel %vm3478_vm11, %v6343_v23, %v6345_v20 }
 0x6eb   : > { %6962 = vmatmul.mubr.msk.bf16.vlgmr.msra.gmra.mxu1 %vm476_vm3, %v10700_v8  ;;  %6576 = vmatprep.subr.bf16.mxu0 %v6389_v30 }
 0x6ec   : > { %6577 = vmatpush1.bf16.msra.mxu0 %v6388_v3 }
 0x6ef   : > { %6963 = vmatmul.mubr.msk.bf16.vlgmr.msra.gmra.mxu0 %vm476_vm3, %v10700_v8  ;;  %v5564_v35 = vpop.f32.mrf.mxu1 }
 0x6f1   : > { %v5566_v57 = vpop.f32.mrf.mxu1 }
 0x6f3   : > { %v5568_v24 = vpop.f32.mrf.mxu1 }
 0x6f4   : > { %v5607_v26 = vpop.f32.mrf.mxu0 }
 0x6f5   : > { %v5570_v45 = vpop.f32.mrf.mxu1 }
 0x6f6   : > { %v5609_v58 = vpop.f32.mrf.mxu0 }
 0x6f8   : > { %v5611_v42 = vpop.f32.mrf.mxu0 }
 0x6fa   : > { %v5613_v53 = vpop.f32.mrf.mxu0 }
 0x707   : > { %v10759_v27 = vpop.f32.mrf.mxu1 }
 0x709   : > { %v10763_v34 = vpop.f32.mrf.mxu1 }
 0x70b   : > { %v10767_v38 = vpop.f32.mrf.mxu1 }
 0x70c   : > { %v10757_v41 = vpop.f32.mrf.mxu0 }
 0x70d   : > { %v10771_v39 = vpop.f32.mrf.mxu1 }
 0x70e   : > { %v10761_v19 = vpop.f32.mrf.mxu0 }
 0x70f   : > { %11064 = vst [vmem:[#allocation19_spill] sm:$0xff] %v10761_v19 }
 0x710   : > { %v10765_v28 = vpop.f32.mrf.mxu0 }
 0x711   : > { %11065 = vst [vmem:[#allocation12_spill] sm:$0xff] %v10765_v28  ;;  %v5399_v28 = vadd.f32 %v10685_v21, %v10585_v44 }
 0x712   : > { %v10769_v8 = vpop.f32.mrf.mxu0 }
 0x713   : > { %11066 = vst [vmem:[#allocation8_spill] sm:$0xff] %v10769_v8 }
 0x728   : > { %v5908_v31 = vpop.f32.mrf.mxu0 }
 0x72a   : > { %v5865_v15 = vpop.f32.mrf.mxu1  ;;  %v5910_v14 = vpop.f32.mrf.mxu0 }
 0x72c   : > { %v5867_v12 = vpop.f32.mrf.mxu1  ;;  %v5912_v54 = vpop.f32.mrf.mxu0 }
 0x72e   : > { %v10773_v62 = vpop.f32.mrf.mxu1  ;;  %v5914_v1 = vpop.f32.mrf.mxu0 }
 0x730   : > { %v10777_v33 = vpop.f32.mrf.mxu1 }
 0x73f   : > { %v10779_v11 = vpop.f32.mrf.mxu1 }
 0x741   : > { %v10783_v56 = vpop.f32.mrf.mxu1 }
 0x743   : > { %v10775_v49 = vpop.f32.mrf.mxu0  ;;  %v10787_v50 = vpop.f32.mrf.mxu1 }
 0x744   : > { %11067 = vst [vmem:[#allocation7_spill] sm:$0xff] %v10775_v49  ;;  %11070 = vst [vmem:[#allocation18_spill] sm:$0xff] %v10787_v50  ;;  %v5401_v49 = vadd.f32 %v10692_v46, %v10600_v32  ;;  %v6622_v32 = vld [vmem:[#allocation2 + $0x10] sm:$0xff]  ;;  %v5703_v46 = vadd.f32 %v5566_v57, %v5399_v28 }
 0x745   : > { %v10781_v43 = vpop.f32.mrf.mxu0  ;;  %v10791_v59 = vpop.f32.mrf.mxu1 }
 0x746   : > { %11068 = vst [vmem:[#allocation16_spill] sm:$0xff] %v10781_v43  ;;  %11072 = vst [vmem:[#allocation10_spill] sm:$0xff] %v10791_v59 }
 0x747   : > { %v10785_v29 = vpop.f32.mrf.mxu0 }
 0x748   : > { %11069 = vst [vmem:[#allocation11_spill] sm:$0xff] %v10785_v29 }
 0x749   : > { %v10789_v7 = vpop.f32.mrf.mxu0 }
 0x74a   : > { %11071 = vst [vmem:[#allocation17_spill] sm:$0xff] %v10789_v7  ;;  %v5400_v7 = vadd.f32 %v10687_v2, %v10594_v40  ;;  %v5407_v40 = vadd.f32 %v10702_v55, %v10597_v5  ;;  %v5408_v2 = vadd.f32 %v10704_v63, %v10606_v13 }
 0x74c   : > { %v5704_v50 = vadd.f32 %v5607_v26, %v5400_v7  ;;  %v5712_v26 = vadd.f32 %v5611_v42, %v5408_v2  ;;  %v6626_v7 = vld [vmem:[#allocation2 + $0x40] sm:$0xff] }
 0x74d   : > { %v6639_v28 = vunpack.c.l.bf16 %v6626_v7 }
 0x75b   : > { %v6166_v61 = vpop.f32.mrf.mxu1 }
 0x75d   : > { %v6168_v6 = vpop.f32.mrf.mxu1 }
 0x75f   : > { %v6209_v16 = vpop.f32.mrf.mxu0  ;;  %v10793_v20 = vpop.f32.mrf.mxu1 }
 0x761   : > { %v6211_v18 = vpop.f32.mrf.mxu0  ;;  %v10797_v43 = vpop.f32.mrf.mxu1 }
 0x763   : > { %v6213_v23 = vpop.f32.mrf.mxu0 }
 0x765   : > { %v6215_v30 = vpop.f32.mrf.mxu0 }
 0x773   : > { %v10799_v8 = vpop.f32.mrf.mxu1 }
 0x775   : > { %v10805_v0 = vpop.f32.mrf.mxu1 }
 0x776   : > { %11075 = vst [vmem:[#allocation9_spill] sm:$0xff] %v10805_v0  ;;  %v6005_v0 = vadd.f32 %v5908_v31, %v5704_v50  ;;  %v6631_v31 = vunpack.c.l.bf16 %v6622_v32  ;;  %v6013_v50 = vadd.f32 %v5912_v54, %v5712_v26 }
 0x777   : > { %v10795_v3 = vpop.f32.mrf.mxu0  ;;  %v10821_v25 = vpop.f32.mrf.mxu1 }
 0x778   : > { %11073 = vst [vmem:[#allocation14_spill] sm:$0xff] %v10795_v3  ;;  %v5398_v3 = vadd.f32 %v10679_v37, %v10580_v52  ;;  %11077 = vst [vmem:[#allocation22_spill] sm:$0xff] %v10821_v25  ;;  %v5409_v52 = vadd.f32 %v10713_v60, %v10609_v9  ;;  %v6306_v55 = vadd.f32 %v6209_v16, %v6005_v0 }
 0x779   : > { %v10801_v29 = vpop.f32.mrf.mxu0  ;;  %v10827_v19 = vpop.f32.mrf.mxu1 }
 0x77a   : > { %11074 = vst [vmem:[#allocation15_spill] sm:$0xff] %v10801_v29  ;;  %v5406_v29 = vadd.f32 %v10690_v17, %v10590_v22  ;;  %v5702_v37 = vadd.f32 %v5564_v35, %v5398_v3  ;;  %v6621_v22 = vld [vmem:[#allocation2 + $0x8] sm:$0xff]  ;;  %v5711_v17 = vadd.f32 %v5570_v45, %v5407_v40  ;;  %v5713_v13 = vadd.f32 %v5613_v53, %v5409_v52  ;;  %v6625_v3 = vld [vmem:[#allocation2 + $0x38] sm:$0xff] }
 0x77b   : > { %v10807_v59 = vpop.f32.mrf.mxu0  ;;  %v6629_v60 = vunpack.c.l.bf16 %v6621_v22  ;;  %v6004_v35 = vadd.f32 %v5867_v12, %v5703_v46  ;;  %v6630_v45 = vunpack.c.h.bf16 %v6621_v22 }
 0x77c   : > { %11076 = vst [vmem:[#allocation20_spill] sm:$0xff] %v10807_v59  ;;  %v5705_v59 = vadd.f32 %v5609_v58, %v5401_v49  ;;  %v5710_v44 = vadd.f32 %v5568_v24, %v5406_v29  ;;  %v6003_v63 = vadd.f32 %v5865_v15, %v5702_v37  ;;  %v6632_v49 = vunpack.c.h.bf16 %v6622_v32 }
 0x77d   : > { %v10825_v21 = vpop.f32.mrf.mxu0  ;;  %v6014_v42 = vadd.f32 %v5914_v1, %v5713_v13  ;;  %v6305_v16 = vadd.f32 %v6168_v6, %v6004_v35  ;;  %v6012_v1 = vadd.f32 %v10777_v33, %v5711_v17 }
 0x77e   : > { %v6006_v5 = vadd.f32 %v5910_v14, %v5705_v59  ;;  %v6304_v57 = vadd.f32 %v6166_v61, %v6003_v63  ;;  %v6314_v14 = vadd.f32 %v6213_v23, %v6013_v50  ;;  %v6011_v15 = vadd.f32 %v10773_v62, %v5710_v44 }
 0x77f   : > { %v6315_v40 = vadd.f32 %v6215_v30, %v6014_v42  ;;  %v6637_v30 = vunpack.c.l.bf16 %v6625_v3  ;;  %v6313_v22 = vadd.f32 %v10797_v43, %v6012_v1 }
 0x780   : > { %v6307_v25 = vadd.f32 %v6211_v18, %v6006_v5  ;;  %v6640_v18 = vunpack.c.h.bf16 %v6626_v7  ;;  %v6312_v23 = vadd.f32 %v10793_v20, %v6011_v15  ;;  %v11082_v15 = vld [vmem:[#allocation7_spill] sm:$0xff] }
 0x793   : > { %v6510_v58 = vpop.f32.mrf.mxu0 }
 0x794   : > { %v6607_v9 = vadd.f32 %v6510_v58, %v6306_v55  ;;  %v6638_v58 = vunpack.c.h.bf16 %v6625_v3 }
 0x795   : > { %v6512_v24 = vpop.f32.mrf.mxu0 }
 0x796   : > { %v6647_v0 = vmax.f32 %v6607_v9, 0.0  ;;  %v6608_v29 = vadd.f32 %v6512_v24, %v6307_v25  ;;  %v6467_v53 = vpop.f32.mrf.mxu1  ;;  %v5706_v9 = vadd.f32 %v10759_v27, %v10711_v36  ;;  %v5714_v24 = vadd.f32 %v10767_v38, %v10725_v10  ;;  %v11078_v27 = vld [vmem:[#allocation19_spill] sm:$0xff]  ;;  %v11081_v10 = vld [vmem:[#allocation18_spill] sm:$0xff] }
 0x797   : > { %v6605_v54 = vadd.f32 %v6467_v53, %v6304_v57  ;;  %v6514_v59 = vpop.f32.mrf.mxu0  ;;  %v6623_v57 = vld [vmem:[#allocation2 + $0x18] sm:$0xff]  ;;  %v5715_v36 = vadd.f32 %v10771_v39, %v10733_v4  ;;  %v11086_v4 = vld [vmem:[#allocation10_spill] sm:$0xff] }
 0x798   : > { %v6663_v2 = vadd.f32 %v6647_v0, %v6631_v31  ;;  %v6648_v12 = vmax.f32 %v6608_v29, 0.0  ;;  %v6615_v61 = vadd.f32 %v6514_v59, %v6314_v14  ;;  %v6469_v32 = vpop.f32.mrf.mxu1  ;;  %v6007_v35 = vadd.f32 %v10779_v11, %v5706_v9  ;;  %v6627_v14 = vld [vmem:[#allocation2 + $0x48] sm:$0xff]  ;;  %v11080_v11 = vld [vmem:[#allocation12_spill] sm:$0xff] }
 0x799   : > { %v6645_v25 = vmax.f32 %v6605_v54, 0.0  ;;  %v6606_v52 = vadd.f32 %v6469_v32, %v6305_v16  ;;  %v6516_v62 = vpop.f32.mrf.mxu0  ;;  %v6633_v53 = vunpack.c.l.bf16 %v6623_v57  ;;  %v6015_v38 = vadd.f32 %v11081_v10, %v5714_v24  ;;  %v11084_v54 = vld [vmem:[#allocation13_spill] sm:$0xff]  ;;  %v11085_v59 = vld [vmem:[#allocation8_spill] sm:$0xff] }
 0x79a   : > { %6679 = vst [vmem:[%s7192_s29 + $0x10] sm:$0xff] %v6663_v2  ;;  %v6664_v6 = vadd.f32 %v6648_v12, %v6632_v49  ;;  %v6655_v37 = vmax.f32 %v6615_v61, 0.0  ;;  %v6616_v46 = vadd.f32 %v6516_v62, %v6315_v40  ;;  %v6471_v44 = vpop.f32.mrf.mxu1  ;;  %v6308_v42 = vadd.f32 %v10799_v8, %v6007_v35  ;;  %v6624_v8 = vld [vmem:[#allocation2 + $0x20] sm:$0xff]  ;;  %v11087_v2 = vld [vmem:[#allocation22_spill] sm:$0xff]  ;;  %v11090_v62 = vld [vmem:[#allocation11_spill] sm:$0xff] }
 0x79b   : > { %v6661_v26 = vadd.f32 %v6645_v25, %v6629_v60  ;;  %v6646_v5 = vmax.f32 %v6606_v52, 0.0  ;;  %v6613_v33 = vadd.f32 %v6471_v44, %v6312_v23  ;;  %v5707_v60 = vadd.f32 %v10763_v34, %v10721_v47  ;;  %v11079_v34 = vld [vmem:[#allocation21_spill] sm:$0xff]  ;;  %v11088_v61 = vld [vmem:[#allocation14_spill] sm:$0xff]  ;;  %v11089_v25 = vld [vmem:[#allocation16_spill] sm:$0xff] }
 0x79c   : > { %6680 = vst [vmem:[%s7192_s29 + $0x18] sm:$0xff] %v6664_v6  ;;  %v6671_v20 = vadd.f32 %v6655_v37, %v6639_v28  ;;  %v6656_v17 = vmax.f32 %v6616_v46, 0.0  ;;  %v6473_v55 = vpop.f32.mrf.mxu1  ;;  %v5708_v28 = vadd.f32 %v10757_v41, %v10729_v48  ;;  %v5709_v47 = vadd.f32 %v11078_v27, %v10736_v51  ;;  %v11083_v41 = vld [vmem:[#allocation9_spill] sm:$0xff] }
 0x79d   : > { %6677 = vst [vmem:[%s7192_s29] sm:$0xff] %v6661_v26  ;;  %v6662_v7 = vadd.f32 %v6646_v5, %v6630_v45  ;;  %v6653_v13 = vmax.f32 %v6613_v33, 0.0  ;;  %v6614_v63 = vadd.f32 %v6473_v55, %v6313_v22  ;;  %v6008_v45 = vadd.f32 %v10783_v56, %v5707_v60 }
 0x79e   : > { %6687 = vst [vmem:[%s7192_s29 + $0x50] sm:$0xff] %v6671_v20  ;;  %v6672_v31 = vadd.f32 %v6656_v17, %v6640_v18  ;;  %v5716_v0 = vadd.f32 %v11080_v11, %v11079_v34  ;;  %v6009_v48 = vadd.f32 %v11082_v15, %v5708_v28  ;;  %v5717_v18 = vadd.f32 %v11085_v59, %v11084_v54  ;;  %v6628_v20 = vld [vmem:[#allocation2 + $0x50] sm:$0xff]  ;;  %v11091_v17 = vld [vmem:[#allocation17_spill] sm:$0xff] }
 0x79f   : > { %6678 = vst [vmem:[%s7192_s29 + $0x8] sm:$0xff] %v6662_v7  ;;  %v6669_v49 = vadd.f32 %v6653_v13, %v6637_v30  ;;  %v6654_v43 = vmax.f32 %v6614_v63, 0.0  ;;  %v6309_v56 = vadd.f32 %v11083_v41, %v6008_v45  ;;  %v6016_v39 = vadd.f32 %v11086_v4, %v5715_v36  ;;  %v11092_v7 = vld [vmem:[#allocation15_spill] sm:$0xff]  ;;  %v11093_v63 = vld [vmem:[#allocation20_spill] sm:$0xff] }
 0x7a0   : > { %6688 = vst [vmem:[%s7192_s29 + $0x58] sm:$0xff] %v6672_v31  ;;  %v6634_v51 = vunpack.c.h.bf16 %v6623_v57  ;;  %v6641_v40 = vunpack.c.l.bf16 %v6627_v14  ;;  %v6316_v12 = vadd.f32 %v11087_v2, %v6015_v38  ;;  %v6310_v32 = vadd.f32 %v11088_v61, %v6009_v48 }
 0x7a1   : > { %6685 = vst [vmem:[%s7192_s29 + $0x40] sm:$0xff] %v6669_v49  ;;  %v6670_v50 = vadd.f32 %v6654_v43, %v6638_v58  ;;  %v6010_v52 = vadd.f32 %v11089_v25, %v5709_v47  ;;  %v6017_v6 = vadd.f32 %v11090_v62, %v5716_v0  ;;  %v6317_v37 = vadd.f32 %v10827_v19, %v6016_v39 }
 0x7a2   : > { %v6635_v30 = vunpack.c.l.bf16 %v6624_v8  ;;  %v6018_v55 = vadd.f32 %v11091_v17, %v5717_v18  ;;  %v6642_v49 = vunpack.c.h.bf16 %v6627_v14  ;;  %v6636_v24 = vunpack.c.h.bf16 %v6624_v8 }
 0x7a3   : > { %6686 = vst [vmem:[%s7192_s29 + $0x48] sm:$0xff] %v6670_v50  ;;  %v6311_v13 = vadd.f32 %v11092_v7, %v6010_v52  ;;  %v6318_v58 = vadd.f32 %v11093_v63, %v6017_v6  ;;  %v6643_v45 = vunpack.c.l.bf16 %v6628_v20 }
 0x7a4   : > { %v6319_v35 = vadd.f32 %v10825_v21, %v6018_v55  ;;  %v6715_v48 = vld [vmem:[%s7192_s29] sm:$0xff] (%p7161_p4) }
 0x7a5   : > { %6716 = vst [vmem:[%s6702_s4] sm:$0xff] (%p7161_p4), %v6715_v48 }
 0x7a6   : > { %v6717_v41 = vld [vmem:[%s7192_s29 + $0x8] sm:$0xff] (%p7161_p4) }
 0x7a7   : > { %6718 = vst [vmem:[%s6702_s4 + $0x8] sm:$0xff] (%p7161_p4), %v6717_v41 }
 0x7a8   : > { %v6731_v4 = vld [vmem:[%s7192_s29 + $0x40] sm:$0xff] (%p7161_p4) }
 0x7a9   : > { %6732 = vst [vmem:[%s6702_s4 + $0x80] sm:$0xff] (%p7161_p4), %v6731_v4 }
 0x7aa   : > { %v6733_v39 = vld [vmem:[%s7192_s29 + $0x48] sm:$0xff] (%p7161_p4) }
 0x7ab   : > { %v6553_v29 = vpop.f32.mrf.mxu1  ;;  %6734 = vst [vmem:[%s6702_s4 + $0x88] sm:$0xff] (%p7161_p4), %v6733_v39 }
 0x7ac   : > { %v6609_v16 = vadd.f32 %v6553_v29, %v6308_v42  ;;  %v6644_v29 = vunpack.c.h.bf16 %v6628_v20 }
 0x7ad   : > { %v6555_v3 = vpop.f32.mrf.mxu1 }
 0x7ae   : > { %v6649_v1 = vmax.f32 %v6609_v16, 0.0  ;;  %v6610_v23 = vadd.f32 %v6555_v3, %v6309_v56  ;;  %v6719_v56 = vld [vmem:[%s7192_s29 + $0x10] sm:$0xff] (%p7161_p4)  ;;  %v6721_v16 = vld [vmem:[%s7192_s29 + $0x18] sm:$0xff] (%p7161_p4) }
 0x7af   : > { %v6557_v46 = vpop.f32.mrf.mxu1  ;;  %v6596_v44 = vpop.f32.mrf.mxu0  ;;  %6720 = vst [vmem:[%s6702_s4 + $0x10] sm:$0xff] (%p7161_p4), %v6719_v56  ;;  %6722 = vst [vmem:[%s6702_s4 + $0x18] sm:$0xff] (%p7161_p4), %v6721_v16  ;;  %v6735_v3 = vld [vmem:[%s7192_s29 + $0x50] sm:$0xff] (%p7161_p4) }
 0x7b0   : > { %v6665_v22 = vadd.f32 %v6649_v1, %v6633_v53  ;;  %v6650_v26 = vmax.f32 %v6610_v23, 0.0  ;;  %v6617_v5 = vadd.f32 %v6557_v46, %v6316_v12  ;;  %v6611_v33 = vadd.f32 %v6596_v44, %v6310_v32  ;;  %6736 = vst [vmem:[%s6702_s4 + $0x90] sm:$0xff] (%p7161_p4), %v6735_v3 }
 0x7b1   : > { %v6559_v31 = vpop.f32.mrf.mxu1  ;;  %v6598_v43 = vpop.f32.mrf.mxu0 }
 0x7b2   : > { %6681 = vst [vmem:[%s7192_s29 + $0x20] sm:$0xff] %v6665_v22  ;;  %v6666_v19 = vadd.f32 %v6650_v26, %v6634_v51  ;;  %v6657_v50 = vmax.f32 %v6617_v5, 0.0  ;;  %v6651_v9 = vmax.f32 %v6611_v33, 0.0  ;;  %v6618_v60 = vadd.f32 %v6559_v31, %v6317_v37  ;;  %v6737_v51 = vld [vmem:[%s7192_s29 + $0x58] sm:$0xff] (%p7161_p4) }
 0x7b3   : > { %v6612_v57 = vadd.f32 %v6598_v43, %v6311_v13  ;;  %v6600_v28 = vpop.f32.mrf.mxu0  ;;  %6738 = vst [vmem:[%s6702_s4 + $0x98] sm:$0xff] (%p7161_p4), %v6737_v51 }
 0x7b4   : > { %6682 = vst [vmem:[%s7192_s29 + $0x28] sm:$0xff] %v6666_v19  ;;  %v6673_v42 = vadd.f32 %v6657_v50, %v6641_v40  ;;  %v6667_v36 = vadd.f32 %v6651_v9, %v6635_v30  ;;  %v6658_v14 = vmax.f32 %v6618_v60, 0.0  ;;  %v6619_v27 = vadd.f32 %v6600_v28, %v6318_v58 }
 0x7b5   : > { %v6652_v47 = vmax.f32 %v6612_v57, 0.0  ;;  %v6602_v34 = vpop.f32.mrf.mxu0 }
 0x7b6   : > { %6689 = vst [vmem:[%s7192_s29 + $0x60] sm:$0xff] %v6673_v42  ;;  %6683 = vst [vmem:[%s7192_s29 + $0x30] sm:$0xff] %v6667_v36  ;;  %v6674_v11 = vadd.f32 %v6658_v14, %v6642_v49  ;;  %v6659_v0 = vmax.f32 %v6619_v27, 0.0  ;;  %v6620_v21 = vadd.f32 %v6602_v34, %v6319_v35 }
 0x7b7   : > { %v6668_v53 = vadd.f32 %v6652_v47, %v6636_v24 }
 0x7b8   : > { %6690 = vst [vmem:[%s7192_s29 + $0x68] sm:$0xff] %v6674_v11  ;;  %v6675_v10 = vadd.f32 %v6659_v0, %v6643_v45  ;;  %v6660_v38 = vmax.f32 %v6620_v21, 0.0  ;;  %6699 = sbr.rel (!%p7161_p4) target bundleno = 1989 (0x7c5), region = 66 }
 0x7b9   : > { %6684 = vst [vmem:[%s7192_s29 + $0x38] sm:$0xff] %v6668_v53  ;;  %v6723_v8 = vld [vmem:[%s7192_s29 + $0x20] sm:$0xff] (%p7161_p4) }
 0x7ba   : > { %6691 = vst [vmem:[%s7192_s29 + $0x70] sm:$0xff] %v6675_v10  ;;  %v6676_v15 = vadd.f32 %v6660_v38, %v6644_v29  ;;  %6724 = vst [vmem:[%s6702_s4 + $0x20] sm:$0xff] (%p7161_p4), %v6723_v8 }
 0x7bb   : > { %v6725_v54 = vld [vmem:[%s7192_s29 + $0x28] sm:$0xff] (%p7161_p4) }
 0x7bc   : > { %6692 = vst [vmem:[%s7192_s29 + $0x78] sm:$0xff] %v6676_v15  ;;  %6726 = vst [vmem:[%s6702_s4 + $0x28] sm:$0xff] (%p7161_p4), %v6725_v54 }
 0x7bd   : > { %v6727_v59 = vld [vmem:[%s7192_s29 + $0x30] sm:$0xff]  ;;  %v6739_v40 = vld [vmem:[%s7192_s29 + $0x60] sm:$0xff] }
 0x7be   : > { %6728 = vst [vmem:[%s6702_s4 + $0x30] sm:$0xff] %v6727_v59  ;;  %6740 = vst [vmem:[%s6702_s4 + $0xa0] sm:$0xff] %v6739_v40 }
 0x7bf   : > { %v6741_v2 = vld [vmem:[%s7192_s29 + $0x68] sm:$0xff] }
 0x7c0   : > { %v6729_v18 = vld [vmem:[%s7192_s29 + $0x38] sm:$0xff]  ;;  %6742 = vst [vmem:[%s6702_s4 + $0xa8] sm:$0xff] %v6741_v2 }
 0x7c1   : > { %6730 = vst [vmem:[%s6702_s4 + $0x38] sm:$0xff] %v6729_v18  ;;  %v6743_v12 = vld [vmem:[%s7192_s29 + $0x70] sm:$0xff] }
 0x7c2   : > { %6744 = vst [vmem:[%s6702_s4 + $0xb0] sm:$0xff] %v6743_v12 }
 0x7c3   : > { %v6745_v61 = vld [vmem:[%s7192_s29 + $0x78] sm:$0xff] }
 0x7c4   : > { %6746 = vst [vmem:[%s6702_s4 + $0xb8] sm:$0xff] %v6745_v61 }
 0x7c5 PF: > { %p10_p7 = scmp.ge.s32.totalorder %s7152_s16, 4   ;;  %s11094_s12 = smov %s7101_s13 }
 0x7c6   : > { %s11095_s13 = smov %s7159_s19  ;;  %s11096_s14 = smov %s7152_s16 }
 0x7c7   :  { %12 = sbr.rel (!%p10_p7) target bundleno = 2 (0x2), region = 137 }
 0x7cc   :  { %6762 = vsyncmov [#allocation3] }
 0x7cf   :  { %s6763_s15 = vpop.sfrf %6762 }
 0x7d0   :  { %p6969_p8 = scmp.ne.s32.totalorder %s6763_s15, 0 }
 0x7d2   :  { %6767 = shalt.err (%p6969_p8)  }

</bundles_post_ra>
